<compile_context>
chip_gen: v6e
topology: v6e:2x2x1
jax: 0.10.0
libtpu: 0.0.40
codegen_flags: <defaults>
</compile_context>

<pallas_src>
import math

import jax
import jax.numpy as jnp
from jax.experimental import pallas as pl
from jax.experimental.pallas import tpu as pltpu

_LANE = 128


def _round_up(n, m):
    return ((n + m - 1) // m) * m


def _ae_kernel(
    x_ref,
    w1_ref, b1_ref, w2_ref, b2_ref, w3_ref, b3_ref, wz_ref, bz_ref,
    w4_ref, b4_ref, w5_ref, b5_ref, w6_ref, b6_ref, wx_ref, bx_ref,
    xbar_ref, enc2_ref, enc3_ref, enc4_ref, z_ref,
):
    def linear(h, w_ref, b_ref, relu):
        y = jnp.dot(h, w_ref[...], preferred_element_type=jnp.float32)
        y = y + b_ref[...]            # (1, out) broadcasts over batch rows
        if relu:
            y = jnp.maximum(y, 0.0)
        return y

    x = x_ref[...]
    enc_z2 = linear(x,      w1_ref, b1_ref, relu=True)
    enc_z3 = linear(enc_z2, w2_ref, b2_ref, relu=True)
    enc_z4 = linear(enc_z3, w3_ref, b3_ref, relu=True)
    z      = linear(enc_z4, wz_ref, bz_ref, relu=False)
    dec_z2 = linear(z,      w4_ref, b4_ref, relu=True)
    dec_z3 = linear(dec_z2, w5_ref, b5_ref, relu=True)
    dec_z4 = linear(dec_z3, w6_ref, b6_ref, relu=True)
    x_bar  = linear(dec_z4, wx_ref, bx_ref, relu=False)

    enc2_ref[...] = enc_z2.astype(enc2_ref.dtype)
    enc3_ref[...] = enc_z3.astype(enc3_ref.dtype)
    enc4_ref[...] = enc_z4.astype(enc4_ref.dtype)
    z_ref[...]    = z.astype(z_ref.dtype)
    xbar_ref[...] = x_bar.astype(xbar_ref.dtype)


def ae_forward(x, params, *, batch_tile=256):
    """Runs the AE forward pass.

    `params` is a list of 8 (W, b) pairs with W shaped (in_features,
    out_features) and b shaped (1, out_features).  Batch and all feature
    widths are zero-padded internally to MXU/lane friendly sizes and the
    padding is sliced off before returning.
    """
    B, n_input = x.shape
    dims_in = [w.shape[0] for (w, _) in params]
    dims_out = [w.shape[1] for (w, _) in params]
    assert len(params) == 8
    assert dims_in[0] == n_input and dims_out[-1] == n_input
    for k in range(1, 8):
        assert dims_in[k] == dims_out[k - 1], "layer chain mismatch"

    # --- lane-pad every feature width to a multiple of 128 ------------------
    pad_in = [_round_up(d, _LANE) for d in dims_in]
    pad_out = [_round_up(d, _LANE) for d in dims_out]

    # --- pad batch to a multiple of batch_tile -------------------------------
    Bp = _round_up(B, batch_tile)

    xp = jnp.zeros((Bp, pad_in[0]), x.dtype).at[:B, :n_input].set(x)

    flat_params = []
    param_specs = []
    for k, (w, b) in enumerate(params):
        wp = (jnp.zeros((pad_in[k], pad_out[k]), w.dtype)
              .at[: w.shape[0], : w.shape[1]].set(w))
        bp = (jnp.zeros((1, pad_out[k]), b.dtype)
              .at[:, : b.shape[-1]].set(b.reshape(1, -1)))
        flat_params.extend([wp, bp])
        # Constant block index: parameters stay resident in VMEM across steps.
        param_specs.append(pl.BlockSpec(wp.shape, lambda i: (0, 0)))
        param_specs.append(pl.BlockSpec(bp.shape, lambda i: (0, 0)))

    x_spec = pl.BlockSpec((batch_tile, pad_in[0]), lambda i: (i, 0))

    # Output order: x_bar, enc_z2, enc_z3, enc_z4, z (padded widths).
    out_pad_widths = (pad_out[7], pad_out[0], pad_out[1], pad_out[2], pad_out[3])
    out_shapes = tuple(
        jax.ShapeDtypeStruct((Bp, w_), x.dtype) for w_ in out_pad_widths
    )
    out_specs = [
        pl.BlockSpec((batch_tile, w_), lambda i: (i, 0)) for w_ in out_pad_widths
    ]

    # --- advisory cost estimate ----------------------------------------------
    itemsize = jnp.dtype(x.dtype).itemsize
    flops = 2 * Bp * sum(pi * po for pi, po in zip(pad_in, pad_out))
    param_bytes = sum(int(a.size) * jnp.dtype(a.dtype).itemsize for a in flat_params)
    act_bytes = (int(xp.size) * itemsize
                 + sum(math.prod(s.shape) * jnp.dtype(s.dtype).itemsize
                       for s in out_shapes))
    cost = pl.CostEstimate(flops=flops, transcendentals=0,
                           bytes_accessed=param_bytes + act_bytes)

    grid_spec = pltpu.PrefetchScalarGridSpec(
        num_scalar_prefetch=0,
        grid=(Bp // batch_tile,),
        in_specs=[x_spec] + param_specs,
        out_specs=out_specs,
    )

    fn = pl.pallas_call(
        _ae_kernel,
        out_shape=out_shapes,
        grid_spec=grid_spec,
        compiler_params=pltpu.CompilerParams(
            dimension_semantics=("parallel",),
        ),
        cost_estimate=cost,
    )
    xbar_p, enc2_p, enc3_p, enc4_p, z_p = fn(xp, *flat_params)

    # Slice off lane / batch padding.
    x_bar  = xbar_p[:B, :dims_out[7]]
    enc_z2 = enc2_p[:B, :dims_out[0]]
    enc_z3 = enc3_p[:B, :dims_out[1]]
    enc_z4 = enc4_p[:B, :dims_out[2]]
    z      = z_p[:B, :dims_out[3]]
    return x_bar, enc_z2, enc_z3, enc_z4, z


def init_linear(key, n_in, n_out, dtype=jnp.float32):
    """Deterministic init mimicking PyTorch's default Linear init:
    U(-1/sqrt(fan_in), 1/sqrt(fan_in)). Weight returned as (in, out)."""
    kw, kb = jax.random.split(key)
    bound = 1.0 / jnp.sqrt(jnp.float32(n_in))
    w = jax.random.uniform(kw, (n_in, n_out), dtype, -bound, bound)
    b = jax.random.uniform(kb, (1, n_out), dtype, -bound, bound)
    return w, b


def reference_forward(x, params):
    """Plain-JAX reference for correctness checking."""
    def lin(h, wb, relu):
        y = h @ wb[0] + wb[1]
        return jnp.maximum(y, 0.0) if relu else y

    enc_z2 = lin(x, params[0], True)
    enc_z3 = lin(enc_z2, params[1], True)
    enc_z4 = lin(enc_z3, params[2], True)
    z      = lin(enc_z4, params[3], False)
    dec_z2 = lin(z, params[4], True)
    dec_z3 = lin(dec_z2, params[5], True)
    dec_z4 = lin(dec_z3, params[6], True)
    x_bar  = lin(dec_z4, params[7], False)
    return x_bar, enc_z2, enc_z3, enc_z4, z


if __name__ == "__main__":
    # Small AE configuration (forward implies x: (batch, n_input)).
    n_input = 32
    n_enc_1, n_enc_2, n_enc_3 = 64, 64, 128
    n_z = 16
    n_dec_1, n_dec_2, n_dec_3 = 128, 64, 64
    # batch chosen so the kernel runs 2 grid steps of batch_tile=256
    # (full MXU M tiles, and both TensorCores busy on v7x).
    batch = 512
    batch_tile = 256

    key = jax.random.PRNGKey(0)
    keys = jax.random.split(key, 9)

    layer_dims = [
        (n_input, n_enc_1),
        (n_enc_1, n_enc_2),
        (n_enc_2, n_enc_3),
        (n_enc_3, n_z),
        (n_z, n_dec_1),
        (n_dec_1, n_dec_2),
        (n_dec_2, n_dec_3),
        (n_dec_3, n_input),
    ]
    params = [init_linear(keys[i], din, dout)
              for i, (din, dout) in enumerate(layer_dims)]

    x = jax.random.normal(keys[8], (batch, n_input), jnp.float32)

    outs = jax.block_until_ready(ae_forward(x, params, batch_tile=batch_tile))
    refs = reference_forward(x, params)

    names = ("x_bar", "enc_z2", "enc_z3", "enc_z4", "z")
    for name, o, r in zip(names, outs, refs):
        assert o.shape == r.shape, (name, o.shape, r.shape)
        assert jnp.allclose(o, r, atol=2e-5, rtol=2e-5), f"mismatch in {name}"

    print("KERNEL_OK")
</pallas_src>

<mosaic_0001>
module attributes {stable_mosaic.version = 11 : i64} {
  func.func @_ae_kernel(%arg0: i32, %arg1: memref<256x128xf32, #tpu.memory_space<vmem>>, %arg2: memref<128x128xf32, #tpu.memory_space<vmem>>, %arg3: memref<1x128xf32, #tpu.memory_space<vmem>>, %arg4: memref<128x128xf32, #tpu.memory_space<vmem>>, %arg5: memref<1x128xf32, #tpu.memory_space<vmem>>, %arg6: memref<128x128xf32, #tpu.memory_space<vmem>>, %arg7: memref<1x128xf32, #tpu.memory_space<vmem>>, %arg8: memref<128x128xf32, #tpu.memory_space<vmem>>, %arg9: memref<1x128xf32, #tpu.memory_space<vmem>>, %arg10: memref<128x128xf32, #tpu.memory_space<vmem>>, %arg11: memref<1x128xf32, #tpu.memory_space<vmem>>, %arg12: memref<128x128xf32, #tpu.memory_space<vmem>>, %arg13: memref<1x128xf32, #tpu.memory_space<vmem>>, %arg14: memref<128x128xf32, #tpu.memory_space<vmem>>, %arg15: memref<1x128xf32, #tpu.memory_space<vmem>>, %arg16: memref<128x128xf32, #tpu.memory_space<vmem>>, %arg17: memref<1x128xf32, #tpu.memory_space<vmem>>, %arg18: memref<256x128xf32, #tpu.memory_space<vmem>>, %arg19: memref<256x128xf32, #tpu.memory_space<vmem>>, %arg20: memref<256x128xf32, #tpu.memory_space<vmem>>, %arg21: memref<256x128xf32, #tpu.memory_space<vmem>>, %arg22: memref<256x128xf32, #tpu.memory_space<vmem>>) attributes {dimension_semantics = [#tpu.dimension_semantics<parallel>], iteration_bounds = array<i64: 2>, scalar_prefetch = 0 : i64, scratch_operands = 0 : i64, tpu.core_type = #tpu.core_type<tc>, window_params = [{transform_indices = @transform_0, window_bounds = array<i64: 256, 128>}, {pipeline_mode = #tpu.pipeline_mode<synchronous>, transform_indices = @transform_1, window_bounds = array<i64: 128, 128>}, {pipeline_mode = #tpu.pipeline_mode<synchronous>, transform_indices = @transform_2, window_bounds = array<i64: 1, 128>}, {pipeline_mode = #tpu.pipeline_mode<synchronous>, transform_indices = @transform_3, window_bounds = array<i64: 128, 128>}, {pipeline_mode = #tpu.pipeline_mode<synchronous>, transform_indices = @transform_4, window_bounds = array<i64: 1, 128>}, {pipeline_mode = #tpu.pipeline_mode<synchronous>, transform_indices = @transform_5, window_bounds = array<i64: 128, 128>}, {pipeline_mode = #tpu.pipeline_mode<synchronous>, transform_indices = @transform_6, window_bounds = array<i64: 1, 128>}, {pipeline_mode = #tpu.pipeline_mode<synchronous>, transform_indices = @transform_7, window_bounds = array<i64: 128, 128>}, {pipeline_mode = #tpu.pipeline_mode<synchronous>, transform_indices = @transform_8, window_bounds = array<i64: 1, 128>}, {pipeline_mode = #tpu.pipeline_mode<synchronous>, transform_indices = @transform_9, window_bounds = array<i64: 128, 128>}, {pipeline_mode = #tpu.pipeline_mode<synchronous>, transform_indices = @transform_10, window_bounds = array<i64: 1, 128>}, {pipeline_mode = #tpu.pipeline_mode<synchronous>, transform_indices = @transform_11, window_bounds = array<i64: 128, 128>}, {pipeline_mode = #tpu.pipeline_mode<synchronous>, transform_indices = @transform_12, window_bounds = array<i64: 1, 128>}, {pipeline_mode = #tpu.pipeline_mode<synchronous>, transform_indices = @transform_13, window_bounds = array<i64: 128, 128>}, {pipeline_mode = #tpu.pipeline_mode<synchronous>, transform_indices = @transform_14, window_bounds = array<i64: 1, 128>}, {pipeline_mode = #tpu.pipeline_mode<synchronous>, transform_indices = @transform_15, window_bounds = array<i64: 128, 128>}, {pipeline_mode = #tpu.pipeline_mode<synchronous>, transform_indices = @transform_16, window_bounds = array<i64: 1, 128>}, {transform_indices = @transform_17, window_bounds = array<i64: 256, 128>}, {transform_indices = @transform_18, window_bounds = array<i64: 256, 128>}, {transform_indices = @transform_19, window_bounds = array<i64: 256, 128>}, {transform_indices = @transform_20, window_bounds = array<i64: 256, 128>}, {transform_indices = @transform_21, window_bounds = array<i64: 256, 128>}]} {
    %c0 = arith.constant 0 : index
    %c0_0 = arith.constant 0 : index
    %0 = vector.load %arg1[%c0, %c0_0] : memref<256x128xf32, #tpu.memory_space<vmem>>, vector<256x128xf32>
    %c0_1 = arith.constant 0 : index
    %c0_2 = arith.constant 0 : index
    %1 = vector.load %arg2[%c0_1, %c0_2] : memref<128x128xf32, #tpu.memory_space<vmem>>, vector<128x128xf32>
    %cst = arith.constant dense<0.000000e+00> : vector<256x128xf32>
    %2 = tpu.matmul %0, %1, %cst {dimension_numbers = #tpu.dot_dimension_numbers<[1], [0], [0], [1], [0, 0, 1, 1], [], []>} : vector<256x128xf32>, vector<128x128xf32>, vector<256x128xf32> -> vector<256x128xf32>
    %c0_3 = arith.constant 0 : index
    %c0_4 = arith.constant 0 : index
    %3 = vector.load %arg3[%c0_3, %c0_4] : memref<1x128xf32, #tpu.memory_space<vmem>>, vector<1x128xf32>
    %4 = vector.broadcast %3 : vector<1x128xf32> to vector<256x128xf32>
    %5 = arith.addf %2, %4 : vector<256x128xf32>
    %cst_5 = arith.constant 0.000000e+00 : f32
    %6 = vector.broadcast %cst_5 : f32 to vector<256x128xf32>
    %7 = arith.maximumf %5, %6 : vector<256x128xf32>
    %c0_6 = arith.constant 0 : index
    %c0_7 = arith.constant 0 : index
    %8 = vector.load %arg4[%c0_6, %c0_7] : memref<128x128xf32, #tpu.memory_space<vmem>>, vector<128x128xf32>
    %cst_8 = arith.constant dense<0.000000e+00> : vector<256x128xf32>
    %9 = tpu.matmul %7, %8, %cst_8 {dimension_numbers = #tpu.dot_dimension_numbers<[1], [0], [0], [1], [0, 0, 1, 1], [], []>} : vector<256x128xf32>, vector<128x128xf32>, vector<256x128xf32> -> vector<256x128xf32>
    %c0_9 = arith.constant 0 : index
    %c0_10 = arith.constant 0 : index
    %10 = vector.load %arg5[%c0_9, %c0_10] : memref<1x128xf32, #tpu.memory_space<vmem>>, vector<1x128xf32>
    %11 = vector.broadcast %10 : vector<1x128xf32> to vector<256x128xf32>
    %12 = arith.addf %9, %11 : vector<256x128xf32>
    %cst_11 = arith.constant 0.000000e+00 : f32
    %13 = vector.broadcast %cst_11 : f32 to vector<256x128xf32>
    %14 = arith.maximumf %12, %13 : vector<256x128xf32>
    %c0_12 = arith.constant 0 : index
    %c0_13 = arith.constant 0 : index
    %15 = vector.load %arg6[%c0_12, %c0_13] : memref<128x128xf32, #tpu.memory_space<vmem>>, vector<128x128xf32>
    %cst_14 = arith.constant dense<0.000000e+00> : vector<256x128xf32>
    %16 = tpu.matmul %14, %15, %cst_14 {dimension_numbers = #tpu.dot_dimension_numbers<[1], [0], [0], [1], [0, 0, 1, 1], [], []>} : vector<256x128xf32>, vector<128x128xf32>, vector<256x128xf32> -> vector<256x128xf32>
    %c0_15 = arith.constant 0 : index
    %c0_16 = arith.constant 0 : index
    %17 = vector.load %arg7[%c0_15, %c0_16] : memref<1x128xf32, #tpu.memory_space<vmem>>, vector<1x128xf32>
    %18 = vector.broadcast %17 : vector<1x128xf32> to vector<256x128xf32>
    %19 = arith.addf %16, %18 : vector<256x128xf32>
    %cst_17 = arith.constant 0.000000e+00 : f32
    %20 = vector.broadcast %cst_17 : f32 to vector<256x128xf32>
    %21 = arith.maximumf %19, %20 : vector<256x128xf32>
    %c0_18 = arith.constant 0 : index
    %c0_19 = arith.constant 0 : index
    %22 = vector.load %arg8[%c0_18, %c0_19] : memref<128x128xf32, #tpu.memory_space<vmem>>, vector<128x128xf32>
    %cst_20 = arith.constant dense<0.000000e+00> : vector<256x128xf32>
    %23 = tpu.matmul %21, %22, %cst_20 {dimension_numbers = #tpu.dot_dimension_numbers<[1], [0], [0], [1], [0, 0, 1, 1], [], []>} : vector<256x128xf32>, vector<128x128xf32>, vector<256x128xf32> -> vector<256x128xf32>
    %c0_21 = arith.constant 0 : index
    %c0_22 = arith.constant 0 : index
    %24 = vector.load %arg9[%c0_21, %c0_22] : memref<1x128xf32, #tpu.memory_space<vmem>>, vector<1x128xf32>
    %25 = vector.broadcast %24 : vector<1x128xf32> to vector<256x128xf32>
    %26 = arith.addf %23, %25 : vector<256x128xf32>
    %c0_23 = arith.constant 0 : index
    %c0_24 = arith.constant 0 : index
    %27 = vector.load %arg10[%c0_23, %c0_24] : memref<128x128xf32, #tpu.memory_space<vmem>>, vector<128x128xf32>
    %cst_25 = arith.constant dense<0.000000e+00> : vector<256x128xf32>
    %28 = tpu.matmul %26, %27, %cst_25 {dimension_numbers = #tpu.dot_dimension_numbers<[1], [0], [0], [1], [0, 0, 1, 1], [], []>} : vector<256x128xf32>, vector<128x128xf32>, vector<256x128xf32> -> vector<256x128xf32>
    %c0_26 = arith.constant 0 : index
    %c0_27 = arith.constant 0 : index
    %29 = vector.load %arg11[%c0_26, %c0_27] : memref<1x128xf32, #tpu.memory_space<vmem>>, vector<1x128xf32>
    %30 = vector.broadcast %29 : vector<1x128xf32> to vector<256x128xf32>
    %31 = arith.addf %28, %30 : vector<256x128xf32>
    %cst_28 = arith.constant 0.000000e+00 : f32
    %32 = vector.broadcast %cst_28 : f32 to vector<256x128xf32>
    %33 = arith.maximumf %31, %32 : vector<256x128xf32>
    %c0_29 = arith.constant 0 : index
    %c0_30 = arith.constant 0 : index
    %34 = vector.load %arg12[%c0_29, %c0_30] : memref<128x128xf32, #tpu.memory_space<vmem>>, vector<128x128xf32>
    %cst_31 = arith.constant dense<0.000000e+00> : vector<256x128xf32>
    %35 = tpu.matmul %33, %34, %cst_31 {dimension_numbers = #tpu.dot_dimension_numbers<[1], [0], [0], [1], [0, 0, 1, 1], [], []>} : vector<256x128xf32>, vector<128x128xf32>, vector<256x128xf32> -> vector<256x128xf32>
    %c0_32 = arith.constant 0 : index
    %c0_33 = arith.constant 0 : index
    %36 = vector.load %arg13[%c0_32, %c0_33] : memref<1x128xf32, #tpu.memory_space<vmem>>, vector<1x128xf32>
    %37 = vector.broadcast %36 : vector<1x128xf32> to vector<256x128xf32>
    %38 = arith.addf %35, %37 : vector<256x128xf32>
    %cst_34 = arith.constant 0.000000e+00 : f32
    %39 = vector.broadcast %cst_34 : f32 to vector<256x128xf32>
    %40 = arith.maximumf %38, %39 : vector<256x128xf32>
    %c0_35 = arith.constant 0 : index
    %c0_36 = arith.constant 0 : index
    %41 = vector.load %arg14[%c0_35, %c0_36] : memref<128x128xf32, #tpu.memory_space<vmem>>, vector<128x128xf32>
    %cst_37 = arith.constant dense<0.000000e+00> : vector<256x128xf32>
    %42 = tpu.matmul %40, %41, %cst_37 {dimension_numbers = #tpu.dot_dimension_numbers<[1], [0], [0], [1], [0, 0, 1, 1], [], []>} : vector<256x128xf32>, vector<128x128xf32>, vector<256x128xf32> -> vector<256x128xf32>
    %c0_38 = arith.constant 0 : index
    %c0_39 = arith.constant 0 : index
    %43 = vector.load %arg15[%c0_38, %c0_39] : memref<1x128xf32, #tpu.memory_space<vmem>>, vector<1x128xf32>
    %44 = vector.broadcast %43 : vector<1x128xf32> to vector<256x128xf32>
    %45 = arith.addf %42, %44 : vector<256x128xf32>
    %cst_40 = arith.constant 0.000000e+00 : f32
    %46 = vector.broadcast %cst_40 : f32 to vector<256x128xf32>
    %47 = arith.maximumf %45, %46 : vector<256x128xf32>
    %c0_41 = arith.constant 0 : index
    %c0_42 = arith.constant 0 : index
    %48 = vector.load %arg16[%c0_41, %c0_42] : memref<128x128xf32, #tpu.memory_space<vmem>>, vector<128x128xf32>
    %cst_43 = arith.constant dense<0.000000e+00> : vector<256x128xf32>
    %49 = tpu.matmul %47, %48, %cst_43 {dimension_numbers = #tpu.dot_dimension_numbers<[1], [0], [0], [1], [0, 0, 1, 1], [], []>} : vector<256x128xf32>, vector<128x128xf32>, vector<256x128xf32> -> vector<256x128xf32>
    %c0_44 = arith.constant 0 : index
    %c0_45 = arith.constant 0 : index
    %50 = vector.load %arg17[%c0_44, %c0_45] : memref<1x128xf32, #tpu.memory_space<vmem>>, vector<1x128xf32>
    %51 = vector.broadcast %50 : vector<1x128xf32> to vector<256x128xf32>
    %52 = arith.addf %49, %51 : vector<256x128xf32>
    %c0_46 = arith.constant 0 : index
    %c0_47 = arith.constant 0 : index
    %53 = vector.load %arg19[%c0_46, %c0_47] : memref<256x128xf32, #tpu.memory_space<vmem>>, vector<256x128xf32>
    tpu.vector_store %arg19[%c0_46, %c0_47], %7 {strides = array<i32>} : memref<256x128xf32, #tpu.memory_space<vmem>>, vector<256x128xf32>,
    %c0_48 = arith.constant 0 : index
    %c0_49 = arith.constant 0 : index
    %54 = vector.load %arg20[%c0_48, %c0_49] : memref<256x128xf32, #tpu.memory_space<vmem>>, vector<256x128xf32>
    tpu.vector_store %arg20[%c0_48, %c0_49], %14 {strides = array<i32>} : memref<256x128xf32, #tpu.memory_space<vmem>>, vector<256x128xf32>,
    %c0_50 = arith.constant 0 : index
    %c0_51 = arith.constant 0 : index
    %55 = vector.load %arg21[%c0_50, %c0_51] : memref<256x128xf32, #tpu.memory_space<vmem>>, vector<256x128xf32>
    tpu.vector_store %arg21[%c0_50, %c0_51], %21 {strides = array<i32>} : memref<256x128xf32, #tpu.memory_space<vmem>>, vector<256x128xf32>,
    %c0_52 = arith.constant 0 : index
    %c0_53 = arith.constant 0 : index
    %56 = vector.load %arg22[%c0_52, %c0_53] : memref<256x128xf32, #tpu.memory_space<vmem>>, vector<256x128xf32>
    tpu.vector_store %arg22[%c0_52, %c0_53], %26 {strides = array<i32>} : memref<256x128xf32, #tpu.memory_space<vmem>>, vector<256x128xf32>,
    %c0_54 = arith.constant 0 : index
    %c0_55 = arith.constant 0 : index
    %57 = vector.load %arg18[%c0_54, %c0_55] : memref<256x128xf32, #tpu.memory_space<vmem>>, vector<256x128xf32>
    tpu.vector_store %arg18[%c0_54, %c0_55], %52 {strides = array<i32>} : memref<256x128xf32, #tpu.memory_space<vmem>>, vector<256x128xf32>,
    return
  }
  func.func @transform_0(%arg0: i32) -> (i32, i32) {
    %c0_i32 = arith.constant 0 : i32
    %c0_i32_0 = arith.constant 0 : i32
    return %arg0, %c0_i32 : i32, i32
  }
  func.func @transform_1(%arg0: i32) -> (i32, i32) {
    %c0_i32 = arith.constant 0 : i32
    %c0_i32_0 = arith.constant 0 : i32
    %c0_i32_1 = arith.constant 0 : i32
    return %c0_i32, %c0_i32_0 : i32, i32
  }
  func.func @transform_2(%arg0: i32) -> (i32, i32) {
    %c0_i32 = arith.constant 0 : i32
    %c0_i32_0 = arith.constant 0 : i32
    %c0_i32_1 = arith.constant 0 : i32
    return %c0_i32, %c0_i32_0 : i32, i32
  }
  func.func @transform_3(%arg0: i32) -> (i32, i32) {
    %c0_i32 = arith.constant 0 : i32
    %c0_i32_0 = arith.constant 0 : i32
    %c0_i32_1 = arith.constant 0 : i32
    return %c0_i32, %c0_i32_0 : i32, i32
  }
  func.func @transform_4(%arg0: i32) -> (i32, i32) {
    %c0_i32 = arith.constant 0 : i32
    %c0_i32_0 = arith.constant 0 : i32
    %c0_i32_1 = arith.constant 0 : i32
    return %c0_i32, %c0_i32_0 : i32, i32
  }
  func.func @transform_5(%arg0: i32) -> (i32, i32) {
    %c0_i32 = arith.constant 0 : i32
    %c0_i32_0 = arith.constant 0 : i32
    %c0_i32_1 = arith.constant 0 : i32
    return %c0_i32, %c0_i32_0 : i32, i32
  }
  func.func @transform_6(%arg0: i32) -> (i32, i32) {
    %c0_i32 = arith.constant 0 : i32
    %c0_i32_0 = arith.constant 0 : i32
    %c0_i32_1 = arith.constant 0 : i32
    return %c0_i32, %c0_i32_0 : i32, i32
  }
  func.func @transform_7(%arg0: i32) -> (i32, i32) {
    %c0_i32 = arith.constant 0 : i32
    %c0_i32_0 = arith.constant 0 : i32
    %c0_i32_1 = arith.constant 0 : i32
    return %c0_i32, %c0_i32_0 : i32, i32
  }
  func.func @transform_8(%arg0: i32) -> (i32, i32) {
    %c0_i32 = arith.constant 0 : i32
    %c0_i32_0 = arith.constant 0 : i32
    %c0_i32_1 = arith.constant 0 : i32
    return %c0_i32, %c0_i32_0 : i32, i32
  }
  func.func @transform_9(%arg0: i32) -> (i32, i32) {
    %c0_i32 = arith.constant 0 : i32
    %c0_i32_0 = arith.constant 0 : i32
    %c0_i32_1 = arith.constant 0 : i32
    return %c0_i32, %c0_i32_0 : i32, i32
  }
  func.func @transform_10(%arg0: i32) -> (i32, i32) {
    %c0_i32 = arith.constant 0 : i32
    %c0_i32_0 = arith.constant 0 : i32
    %c0_i32_1 = arith.constant 0 : i32
    return %c0_i32, %c0_i32_0 : i32, i32
  }
  func.func @transform_11(%arg0: i32) -> (i32, i32) {
    %c0_i32 = arith.constant 0 : i32
    %c0_i32_0 = arith.constant 0 : i32
    %c0_i32_1 = arith.constant 0 : i32
    return %c0_i32, %c0_i32_0 : i32, i32
  }
  func.func @transform_12(%arg0: i32) -> (i32, i32) {
    %c0_i32 = arith.constant 0 : i32
    %c0_i32_0 = arith.constant 0 : i32
    %c0_i32_1 = arith.constant 0 : i32
    return %c0_i32, %c0_i32_0 : i32, i32
  }
  func.func @transform_13(%arg0: i32) -> (i32, i32) {
    %c0_i32 = arith.constant 0 : i32
    %c0_i32_0 = arith.constant 0 : i32
    %c0_i32_1 = arith.constant 0 : i32
    return %c0_i32, %c0_i32_0 : i32, i32
  }
  func.func @transform_14(%arg0: i32) -> (i32, i32) {
    %c0_i32 = arith.constant 0 : i32
    %c0_i32_0 = arith.constant 0 : i32
    %c0_i32_1 = arith.constant 0 : i32
    return %c0_i32, %c0_i32_0 : i32, i32
  }
  func.func @transform_15(%arg0: i32) -> (i32, i32) {
    %c0_i32 = arith.constant 0 : i32
    %c0_i32_0 = arith.constant 0 : i32
    %c0_i32_1 = arith.constant 0 : i32
    return %c0_i32, %c0_i32_0 : i32, i32
  }
  func.func @transform_16(%arg0: i32) -> (i32, i32) {
    %c0_i32 = arith.constant 0 : i32
    %c0_i32_0 = arith.constant 0 : i32
    %c0_i32_1 = arith.constant 0 : i32
    return %c0_i32, %c0_i32_0 : i32, i32
  }
  func.func @transform_17(%arg0: i32) -> (i32, i32) {
    %c0_i32 = arith.constant 0 : i32
    %c0_i32_0 = arith.constant 0 : i32
    return %arg0, %c0_i32 : i32, i32
  }
  func.func @transform_18(%arg0: i32) -> (i32, i32) {
    %c0_i32 = arith.constant 0 : i32
    %c0_i32_0 = arith.constant 0 : i32
    return %arg0, %c0_i32 : i32, i32
  }
  func.func @transform_19(%arg0: i32) -> (i32, i32) {
    %c0_i32 = arith.constant 0 : i32
    %c0_i32_0 = arith.constant 0 : i32
    return %arg0, %c0_i32 : i32, i32
  }
  func.func @transform_20(%arg0: i32) -> (i32, i32) {
    %c0_i32 = arith.constant 0 : i32
    %c0_i32_0 = arith.constant 0 : i32
    return %arg0, %c0_i32 : i32, i32
  }
  func.func @transform_21(%arg0: i32) -> (i32, i32) {
    %c0_i32 = arith.constant 0 : i32
    %c0_i32_0 = arith.constant 0 : i32
    return %arg0, %c0_i32 : i32, i32
  }
}

</mosaic_0001>

<bundles_post_ra>
// kernel: tpu_custom_call.1
= control target key start
LH: loop header
LB: loop body
LE: loop exit
PB: predicated region body
PF: predicated region fallthrough
CT: control target
= control target key end

     0   :  { %s6297_s0 = inlined_call_operand.hbm [shape: f32[512,128], index: 0, kind: input, shape index: {}]   ;;  %s6298_s1 = inlined_call_operand.hbm [shape: f32[128,128], index: 1, kind: input, shape index: {}]   ;;  %s6299_s2 = inlined_call_operand.vmem [shape: f32[1,128], index: 2, kind: input, shape index: {}]   ;;  %s6300_s3 = inlined_call_operand.hbm [shape: f32[128,128], index: 3, kind: input, shape index: {}]   ;;  %s6301_s4 = inlined_call_operand.vmem [shape: f32[1,128], index: 4, kind: input, shape index: {}]   ;;  %s6302_s5 = inlined_call_operand.hbm [shape: f32[128,128], index: 5, kind: input, shape index: {}]   ;;  %s6303_s6 = inlined_call_operand.vmem [shape: f32[1,128], index: 6, kind: input, shape index: {}]   ;;  %s6304_s7 = inlined_call_operand.hbm [shape: f32[128,128], index: 7, kind: input, shape index: {}]   ;;  %s6305_s8 = inlined_call_operand.vmem [shape: f32[1,128], index: 8, kind: input, shape index: {}]   ;;  %s6306_s9 = inlined_call_operand.hbm [shape: f32[128,128], index: 9, kind: input, shape index: {}]   ;;  %s6307_s10 = inlined_call_operand.vmem [shape: f32[1,128], index: 10, kind: input, shape index: {}]   ;;  %s6308_s11 = inlined_call_operand.hbm [shape: f32[128,128], index: 11, kind: input, shape index: {}]   ;;  %s6309_s12 = inlined_call_operand.vmem [shape: f32[1,128], index: 12, kind: input, shape index: {}]   ;;  %s6310_s13 = inlined_call_operand.hbm [shape: f32[128,128], index: 13, kind: input, shape index: {}]   ;;  %s6311_s14 = inlined_call_operand.vmem [shape: f32[1,128], index: 14, kind: input, shape index: {}]   ;;  %s6312_s15 = inlined_call_operand.hbm [shape: f32[128,128], index: 15, kind: input, shape index: {}]   ;;  %s6313_s16 = inlined_call_operand.vmem [shape: f32[1,128], index: 16, kind: input, shape index: {}]   ;;  %s6314_s17 = inlined_call_operand.hbm [shape: f32[512,128], index: 17, kind: output, shape index: {0}]   ;;  %s6315_s18 = inlined_call_operand.hbm [shape: f32[512,128], index: 18, kind: output, shape index: {1}]   ;;  %s6316_s19 = inlined_call_operand.hbm [shape: f32[512,128], index: 19, kind: output, shape index: {2}]   ;;  %s6317_s20 = inlined_call_operand.hbm [shape: f32[512,128], index: 20, kind: output, shape index: {3}]   ;;  %s6318_s21 = inlined_call_operand.hbm [shape: f32[512,128], index: 21, kind: output, shape index: {4}]  }
   0x1   :  { %6332 = sst [smem:[#allocation34_spill]] %s6297_s0 }
   0x2   :  { %6333 = sst [smem:[#allocation35_spill]] %s6298_s1 }
   0x3   :  { %6334 = sst [smem:[#allocation36_spill]] %s6299_s2 }
   0x4   :  { %6335 = sst [smem:[#allocation37_spill]] %s6300_s3 }
   0x5   :  { %6336 = sst [smem:[#allocation38_spill]] %s6301_s4 }
   0x6   :  { %6337 = sst [smem:[#allocation39_spill]] %s6302_s5 }
   0x7   :  { %6338 = sst [smem:[#allocation40_spill]] %s6303_s6 }
   0x8   :  { %6339 = sst [smem:[#allocation41_spill]] %s6304_s7 }
   0x9   :  { %6340 = sst [smem:[#allocation42_spill]] %s6305_s8 }
   0xa   :  { %6341 = sst [smem:[#allocation43_spill]] %s6306_s9 }
   0xb   :  { %6342 = sst [smem:[#allocation44_spill]] %s6307_s10 }
   0xc   :  { %6343 = sst [smem:[#allocation45_spill]] %s6308_s11 }
   0xd   :  { %6344 = sst [smem:[#allocation46_spill]] %s6309_s12 }
   0xe   :  { %6345 = sst [smem:[#allocation47_spill]] %s6310_s13 }
   0xf   :  { %6346 = sst [smem:[#allocation48_spill]] %s6312_s15 }
  0x10   :  { %6347 = sst [smem:[#allocation49_spill]] %s6313_s16 }
  0x11   :  { %6348 = sst [smem:[#allocation50_spill]] %s6314_s17 }
  0x12   :  { %6349 = sst [smem:[#allocation51_spill]] %s6318_s21 }
  0x13   :  { %27 = vsyncpa [#allocation3], 0 }
  0x14   :  { %29 = vsyncpa [#allocation3 + $0x1], 0 }
  0x15   :  { %30 = vsyncpa [#allocation6], 0 }
  0x16   :  { %31 = vsyncpa [#allocation9], 0 }
  0x17   :  { %32 = vsyncpa [#allocation12], 0 }
  0x18   :  { %33 = vsyncpa [#allocation15], 0 }
  0x19   :  { %34 = vsyncpa [#allocation4], 0 }
  0x1a   :  { %36 = vsyncpa [#allocation4 + $0x1], 0 }
  0x1b   :  { %37 = vsyncpa [#allocation19], 0 }
  0x1c   :  { %39 = vsyncpa [#allocation19 + $0x1], 0 }
  0x1d   :  { %40 = vsyncpa [#allocation22], 0 }
  0x1e   :  { %42 = vsyncpa [#allocation22 + $0x1], 0  ;;  %s5362_s2 = smov 0   ;;  %s5364_s25 = smov 0  }
  0x1f   :  { %s5366_s26 = smov 0   ;;  %s5368_s27 = smov 0  }
  0x20 LB: > { %6350 = sst [smem:[#allocation32_spill]] %s5228_s26  ;;  %s5234_s3 = smov [#allocation5]   ;;  %s5232_s27 = sphi %s5368_s27, %s6399_s27   ;;  %s5228_s26 = sphi %s5366_s26, %s6396_s26   ;;  %s5224_s25 = sphi %s5364_s25, %s6398_s25   ;;  %s5220_s2 = sphi %s5362_s2, %s6397_s2  }
  0x21   : > { %s557_s28 = sshll.u32 %s5234_s3, 4  ;;  %s5383_s29 = sadd.s32 4294967295, %s5232_s27   ;;  %s558_s28 = int_to_ptr.vmem [resolvable:$true] %s557_s28 }
  0x22   : > { %p3570_p0 = scmp.ge.s32.totalorder %s5232_s27, 1  ;;  %p6325_p1 = scmp.eq.s32.totalorder %s5383_s29, 0 }
  0x23   : > { %p545_p2 = scmp.lt.s32.totalorder %s5232_s27, 3  ;;  %s5235_s4 = smov [#allocation8]  }
  0x24   : > { %s589_s30 = sshll.u32 %s5235_s4, 4  ;;  %s5236_s22 = smov [#allocation11]   ;;  %s5401_s30 = int_to_ptr.vmem [resolvable:$true] %s589_s30 }
  0x25   : > { %p5388_p3 = pnand %p3570_p0, %p545_p2  ;;  %s621_s23 = sshll.u32 %s5236_s22, 4  ;;  %s5403_s23 = int_to_ptr.vmem [resolvable:$true] %s621_s23 }
  0x26   : > { %s4815_s24 = scalar_lea.vmem %s558_s28, 2048  ;;  %p4823_p11 = scmp.lt.s32.totalorder %s558_s28, %s558_s28 }
  0x27   : > { %s6351_s0 = scalar_select %p5388_p3, 1, 0 }
  0x28   : > { %p4697_p5 = pneg %p5388_p3  ;;  %p4816_p8 = scmp.ne.s32.totalorder %s558_s28, %s4815_s24 }
  0x29   : > { %p4824_p12 = scmp.lt.s32.totalorder %s4815_s24, %s4815_s24 }
  0x2a   : > { %p5397_p6 = pnand %p4697_p5, %p6325_p1 }
  0x2b   : > { %p4825_p13 = por %p4824_p12, %p4823_p11 }
  0x2c   : > { %p5407_p7 = pneg %p5397_p6 }
  0x2e   : > { %p4818_p9 = pnand %p4816_p8, %p5407_p7 }
  0x30   : > { %p4819_p10 = pneg %p4818_p9 }
  0x32   : > { %p4826_p0 = pnand %p4825_p13, %p4819_p10 }
  0x34   : > { %4829 = shalt.err (!%p4826_p0)
}
  0x35   : > { %s6322_s3 = smov 128   ;;  %s6323_s4 = smov 8  }
  0x36   : > { %s6354_s16 = sld [smem:[#allocation35_spill]]  ;;  %s4841_s21 = scalar_lea.vmem %s5401_s30, 2048 }
  0x37   : > { %p4842_p2 = scmp.ne.s32.totalorder %s5401_s30, %s4841_s21  ;;  %p4849_p9 = scmp.lt.s32.totalorder %s5401_s30, %s5401_s30 }
  0x38   : > { %p4850_p10 = scmp.lt.s32.totalorder %s4841_s21, %s4841_s21 }
  0x39   : > { %p4844_p5 = pnand %p4842_p2, %p5407_p7 }
  0x3a   : > { %p4851_p11 = por %p4850_p10, %p4849_p9 }
  0x3b   : > { %p4845_p8 = pneg %p4844_p5 }
  0x3c   : > { %4700 = dma.hbm_to_vmem [thread:$0]  (!%p5397_p6), %s6354_s16, 2048, %s558_s28, [#allocation6], %s6322_s3, %s6322_s3, %s6323_s4  }
  0x3d   : > { %p4852_p12 = pnand %p4851_p11, %p4845_p8 }
  0x3f   : > { %4855 = shalt.err (!%p4852_p12)
}
  0x40   : > { %s6355_s16 = sld [smem:[#allocation39_spill]]  ;;  %s4867_s28 = scalar_lea.vmem %s5403_s23, 2048 }
  0x41   : > { %p4868_p13 = scmp.ne.s32.totalorder %s5403_s23, %s4867_s28  ;;  %p4875_p5 = scmp.lt.s32.totalorder %s5403_s23, %s5403_s23 }
  0x42   : > { %p4876_p8 = scmp.lt.s32.totalorder %s4867_s28, %s4867_s28 }
  0x43   : > { %p4870_p0 = pnand %p4868_p13, %p5407_p7 }
  0x44   : > { %p4877_p9 = por %p4876_p8, %p4875_p5 }
  0x45   : > { %p4871_p2 = pneg %p4870_p0 }
  0x46   : > { %4706 = dma.hbm_to_vmem [thread:$0]  (!%p5397_p6), %s6355_s16, 2048, %s5401_s30, [#allocation9], %s6322_s3, %s6322_s3, %s6323_s4  }
  0x47   : > { %p4878_p10 = pnand %p4877_p9, %p4871_p2 }
  0x49   : > { %4881 = shalt.err (!%p4878_p10)
}
  0x4a   : > { %s6356_s9 = sld [smem:[#allocation43_spill]]  ;;  %s5239_s30 = smov [#allocation14]  }
  0x4b   : > { %s653_s24 = sshll.u32 %s5239_s30, 4  ;;  %s5240_s17 = smov [#allocation7]   ;;  %s654_s24 = int_to_ptr.vmem [resolvable:$true] %s653_s24 }
  0x4c   : > { %s573_s16 = sshll.u32 %s5240_s17, 4  ;;  %s4893_s28 = scalar_lea.vmem %s654_s24, 2048  ;;  %s574_s16 = int_to_ptr.vmem [resolvable:$true] %s573_s16 }
  0x4d   : > { %p4894_p11 = scmp.ne.s32.totalorder %s654_s24, %s4893_s28  ;;  %p4901_p0 = scmp.lt.s32.totalorder %s654_s24, %s654_s24 }
  0x4e   : > { %p4902_p2 = scmp.lt.s32.totalorder %s4893_s28, %s4893_s28 }
  0x4f   : > { %p4896_p12 = pnand %p4894_p11, %p5407_p7 }
  0x50   : > { %4712 = dma.hbm_to_vmem [thread:$0]  (!%p5397_p6), %s6356_s9, 2048, %s5403_s23, [#allocation12], %s6322_s3, %s6322_s3, %s6323_s4  }
  0x51   : > { %p4897_p13 = pneg %p4896_p12  ;;  %p4903_p5 = por %p4902_p2, %p4901_p0 }
  0x53   : > { %p4904_p8 = pnand %p4903_p5, %p4897_p13 }
  0x55   : > { %4907 = shalt.err (!%p4904_p8)
}
  0x56   : > { %s6357_s13 = sld [smem:[#allocation47_spill]]  ;;  %s4919_s22 = scalar_lea.vmem %s574_s16, 2048 }
  0x57   : > { %p4920_p9 = scmp.ne.s32.totalorder %s574_s16, %s4919_s22  ;;  %p4927_p12 = scmp.lt.s32.totalorder %s574_s16, %s574_s16 }
  0x58   : > { %p4928_p0 = scmp.lt.s32.totalorder %s4919_s22, %s4919_s22 }
  0x59   : > { %p4922_p10 = pnand %p4920_p9, %p5407_p7 }
  0x5a   : > { %p4929_p13 = por %p4928_p0, %p4927_p12 }
  0x5b   : > { %p4923_p11 = pneg %p4922_p10 }
  0x5c   : > { %4718 = dma.hbm_to_vmem [thread:$0]  (!%p5397_p6), %s6357_s13, 2048, %s654_s24, [#allocation15], %s6322_s3, %s6322_s3, %s6323_s4  }
  0x5d   : > { %p4930_p2 = pnand %p4929_p13, %p4923_p11 }
  0x5f   : > { %4933 = shalt.err (!%p4930_p2)
}
  0x60   : > { %s6358_s28 = sld [smem:[#allocation37_spill]]  ;;  %s5241_s24 = smov [#allocation10]  }
  0x61   : > { %s605_s23 = sshll.u32 %s5241_s24, 4  ;;  %s5242_s21 = smov [#allocation13]   ;;  %s606_s23 = int_to_ptr.vmem [resolvable:$true] %s605_s23 }
  0x62   : > { %s637_s9 = sshll.u32 %s5242_s21, 4  ;;  %s4945_s13 = scalar_lea.vmem %s606_s23, 2048  ;;  %s638_s9 = int_to_ptr.vmem [resolvable:$true] %s637_s9 }
  0x63   : > { %p4946_p5 = scmp.ne.s32.totalorder %s606_s23, %s4945_s13  ;;  %p4953_p10 = scmp.lt.s32.totalorder %s606_s23, %s606_s23 }
  0x64   : > { %p4954_p11 = scmp.lt.s32.totalorder %s4945_s13, %s4945_s13 }
  0x65   : > { %p4948_p8 = pnand %p4946_p5, %p5407_p7 }
  0x66   : > { %4703 = dma.hbm_to_vmem [thread:$0]  (!%p5397_p6), %s6358_s28, 2048, %s574_s16, [#allocation6], %s6322_s3, %s6322_s3, %s6323_s4  }
  0x67   : > { %p4949_p9 = pneg %p4948_p8  ;;  %p4955_p12 = por %p4954_p11, %p4953_p10 }
  0x69   : > { %p4956_p0 = pnand %p4955_p12, %p4949_p9 }
  0x6b   : > { %4959 = shalt.err (!%p4956_p0)
}
  0x6c   : > { %s6359_s7 = sld [smem:[#allocation41_spill]]  ;;  %s4971_s30 = scalar_lea.vmem %s638_s9, 2048 }
  0x6d   : > { %p4972_p13 = scmp.ne.s32.totalorder %s638_s9, %s4971_s30  ;;  %p4979_p8 = scmp.lt.s32.totalorder %s638_s9, %s638_s9 }
  0x6e   : > { %p4980_p10 = scmp.lt.s32.totalorder %s4971_s30, %s4971_s30 }
  0x6f   : > { %p4974_p2 = pnand %p4972_p13, %p5407_p7 }
  0x70   : > { %p4981_p9 = por %p4980_p10, %p4979_p8 }
  0x71   : > { %p4975_p5 = pneg %p4974_p2 }
  0x72   : > { %4709 = dma.hbm_to_vmem [thread:$0]  (!%p5397_p6), %s6359_s7, 2048, %s606_s23, [#allocation9], %s6322_s3, %s6322_s3, %s6323_s4  }
  0x73   : > { %p4982_p11 = pnand %p4981_p9, %p4975_p5 }
  0x75   : > { %4985 = shalt.err (!%p4982_p11)
}
  0x76   : > { %s6360_s11 = sld [smem:[#allocation45_spill]]  ;;  %s5243_s28 = smov [#allocation16]  }
  0x77   : > { %s669_s24 = sshll.u32 %s5243_s28, 4  ;;  %s670_s24 = int_to_ptr.vmem [resolvable:$true] %s669_s24 }
  0x78   : > { %s4997_s23 = scalar_lea.vmem %s670_s24, 2048  ;;  %p5005_p2 = scmp.lt.s32.totalorder %s670_s24, %s670_s24 }
  0x79   : > { %p4998_p12 = scmp.ne.s32.totalorder %s670_s24, %s4997_s23  ;;  %p5006_p5 = scmp.lt.s32.totalorder %s4997_s23, %s4997_s23 }
  0x7b   : > { %p5000_p0 = pnand %p4998_p12, %p5407_p7  ;;  %p5007_p8 = por %p5006_p5, %p5005_p2 }
  0x7c   : > { %4715 = dma.hbm_to_vmem [thread:$0]  (!%p5397_p6), %s6360_s11, 2048, %s638_s9, [#allocation12], %s6322_s3, %s6322_s3, %s6323_s4  }
  0x7d   : > { %p5001_p13 = pneg %p5000_p0 }
  0x7f   : > { %p5008_p10 = pnand %p5007_p8, %p5001_p13 }
  0x81   : > { %5011 = shalt.err (!%p5008_p10)
}
  0x82   : > { %s6361_s15 = sld [smem:[#allocation48_spill]]  ;;  %s6324_s5 = sadd.s32 4294967294, %s5232_s27  }
  0x83   : > { %s5503_s1 = sadd.s32 1, %s5232_s27   ;;  %s55_s22 = sadd.s32 1, %s5228_s26 }
  0x84   : > { %s52_s16 = ssub.s32 %s5232_s27, %s5503_s1  ;;  %p62_p9 = scmp.ne.s32.totalorder %s5228_s26, %s5224_s25 }
  0x85   : > { %p53_p7 = scmp.eq.s32.totalorder %s52_s16, 0  ;;  %p63_p11 = scmp.eq.s32.totalorder %s5232_s27, 0 }
  0x86   : > { %p68_p12 = scmp.ne.s32.totalorder %s5224_s25, %s5220_s2  ;;  %p428_p13 = scmp.eq.s32.totalorder %s5383_s29, 1 }
  0x87   : > { %s5514_s30 = scalar_select %p53_p7, %s5228_s26, %s55_s22  }
  0x88   : > { %4721 = dma.hbm_to_vmem [thread:$0]  (!%p5397_p6), %s6361_s15, 2048, %s670_s24, [#allocation15], %s6322_s3, %s6322_s3, %s6323_s4  }
  0x89   : > { %6362 = sst [smem:[#allocation33_spill]] %s5514_s30  ;;  %p5516_p0 = por %p63_p11, %p62_p9 }
  0x8a   : > { %p5522_p6 = por %p6325_p1, %p68_p12  ;;  %p434_p2 = scmp.eq.s32.totalorder %s6324_s5, 1 }
  0x8b   : > { %p4750_p5 = scmp.lt.s32.totalorder %s5232_s27, 2  ;;  %s686_s28 = sand.u32 1, %s5228_s26  }
  0x8c   : > { %s6364_s17 = scalar_select %p5522_p6, 1, 0 }
  0x8d   : > { %p5531_p8 = por %p428_p13, %p62_p9  ;;  %p5535_p10 = por %p434_p2, %p68_p12 }
  0x8e   : > { %s3580_s21 = sshll.u32 %s686_s28, 8  ;;  %s3623_s9 = sshll.u32 %s5232_s27, 12 }
  0x8f   : > { %s6365_s24 = scalar_select %p5531_p8, 1, 0 }
  0x90   : > { %s6366_s23 = scalar_select %p5535_p10, 1, 0 }
  0x91   : > { %s6367_s3 = sld [smem:[#allocation34_spill]]  ;;  %s690_s5 = scalar_lea.vmem [#allocation2], %s3580_s21 }
  0x92   : > { %s697_s7 = sshll.u32 %s690_s5, 4  ;;  %p5549_p7 = pnand %p4750_p5, %p5516_p0  ;;  %s5545_s7 = int_to_ptr.vmem [resolvable:$true] %s697_s7 }
  0x93   : > { %s5553_s15 = scalar_lea.sflag [#allocation3], %s686_s28 }
  0x94   : > { %p5014_p11 = pneg %p5549_p7 }
  0x97   : > { %s5543_s4 = scalar_lea.hbm %s6367_s3, %s3623_s9  ;;  %s5017_s5 = scalar_lea.hbm %s6367_s3, 8192 }
  0x98   : > { %s5012_s30 = scalar_lea.hbm %s5543_s4, 4096  ;;  %p5018_p0 = scmp.lt.s32.totalorder %s5543_s4, %s6367_s3 }
  0x99   : > { %p5013_p9 = scmp.ne.s32.totalorder %s5543_s4, %s5012_s30  ;;  %p5019_p2 = scmp.lt.s32.totalorder %s5017_s5, %s5012_s30 }
  0x9b   : > { %p5015_p12 = pnand %p5014_p11, %p5013_p9  ;;  %p5020_p5 = por %p5019_p2, %p5018_p0 }
  0x9d   : > { %p5016_p13 = pneg %p5015_p12 }
  0x9f   : > { %p5021_p4 = pnand %p5020_p5, %p5016_p13 }
  0xa1   : > { %5024 = shalt.err (!%p5021_p4)
}
  0xa2   : > { %s5025_s13 = scalar_lea.vmem %s5545_s7, 4096  ;;  %s5244_s28 = smov [#allocation2]  }
  0xa3   : > { %p5026_p1 = scmp.ne.s32.totalorder %s5545_s7, %s5025_s13  ;;  %s5030_s26 = sshll.u32 %s5244_s28, 4  ;;  %s5031_s26 = int_to_ptr.vmem [resolvable:$false] %s5030_s26 }
  0xa4   : > { %s5032_s9 = scalar_lea.vmem %s5031_s26, 8192  ;;  %p5033_p12 = scmp.lt.s32.totalorder %s5545_s7, %s5031_s26 }
  0xa5   : > { %p5028_p10 = pnand %p5026_p1, %p5014_p11  ;;  %p5034_p8 = scmp.lt.s32.totalorder %s5032_s9, %s5025_s13 }
  0xa7   : > { %p5029_p9 = pneg %p5028_p10  ;;  %p5035_p6 = por %p5034_p8, %p5033_p12 }
  0xa9   : > { %p5036_p3 = pnand %p5035_p6, %p5029_p9 }
  0xab   : > { %5039 = shalt.err (!%p5036_p3)
}
  0xac   : > { %s6369_s30 = smov 8   ;;  %s6370_s16 = smov 128  }
  0xad   : > { %4725 = dma.hbm_to_vmem [thread:$0]  (!%p5549_p7), %s5543_s4, 4096, %s5545_s7, %s5553_s15, %s6370_s16, %s6370_s16, %s6369_s30  }
  0xae   : > { %p6371_p1 = scmp.ne.s32.totalorder %s6351_s0, 0 }
  0xaf   : > { %s5580_s5 = sand.u32 (!%p6371_p1), 1, %s5224_s25   ;;  %p6372_p3 = scmp.ne.s32.totalorder (!%p6371_p1), %s6364_s17, 0 }
  0xb0   : > { %709 = sbr.rel (%p6371_p1) target bundleno = 1895 (0x767), region = 88  ;;  %s5583_s26 = sshll.u32 (!%p6371_p1), %s5580_s5, 8 }
  0xb1   : > { %s712_s11 = scalar_lea.sflag (!%p6371_p1), [#allocation3], %s5580_s5  ;;  %s5587_s21 = scalar_lea.vmem (!%p6371_p1), [#allocation2], %s5583_s26 }
  0xb5   : > { %5187 = dma.done.wait (%p6372_p3), %s712_s11, 4096  }
  0xb6   : > { %5189 = vsyncadd (%p6372_p3), %s712_s11, 4294963200  ;;  %p6373_p4 = scmp.eq.s32.totalorder %s5383_s29, 0 }
  0xb8   : > { %5191 = dma.done.wait (%p6373_p4), [#allocation6], 4096   ;;  %p6374_p6 = pmov %p6373_p4 }
  0xb9   : > { %p6375_p8 = pmov %p6373_p4 }
  0xba   : > { %5193 = vsyncadd (%p6374_p6), [#allocation6], 4294963200 }
  0xbb   : > { %5195 = dma.done.wait (%p6375_p8), [#allocation9], 4096   ;;  %p6376_p10 = pmov %p6373_p4 }
  0xbc   : > { %p6377_p7 = pmov %p6373_p4 }
  0xbd   : > { %5197 = vsyncadd (%p6376_p10), [#allocation9], 4294963200 }
  0xbe   : > { %5199 = dma.done.wait (%p6377_p7), [#allocation12], 4096   ;;  %p6378_p11 = pmov %p6373_p4 }
  0xbf   : > { %p6379_p13 = pmov %p6373_p4 }
  0xc0   : > { %5201 = vsyncadd (%p6378_p11), [#allocation12], 4294963200 }
  0xc1   : > { %5203 = dma.done.wait (%p6379_p13), [#allocation15], 4096   ;;  %p6380_p0 = pmov %p6373_p4 }
  0xc2   : > { %v879_v0 = vld [vmem:[#allocation5 + $0x78] sm:$0xff]  ;;  %v878_v1 = vld [vmem:[#allocation5 + $0x70] sm:$0xff]  ;;  %v877_v2 = vld [vmem:[#allocation5 + $0x68] sm:$0xff]  ;;  %s6381_s0 = sld [smem:[#allocation36_spill]]  ;;  %s5649_s4 = scalar_lea.vmem [#allocation18], %s5583_s26 }
  0xc3   : > { %5205 = vsyncadd (%p6380_p0), [#allocation15], 4294963200  ;;  %4013 = vmatprep.subr.mxu0 %v879_v0  ;;  %v876_v3 = vld [vmem:[#allocation5 + $0x60] sm:$0xff]  ;;  %v875_v5 = vld [vmem:[#allocation5 + $0x58] sm:$0xff]  ;;  %s6382_s13 = sld [smem:[#allocation38_spill]]  ;;  %s5721_s28 = scalar_lea.vmem [#allocation20], %s5583_s26 }
  0xc4   : > { %4014 = vmatpush3.msra.mxu0 %v879_v0  ;;  %v832_v4 = vld [vmem:[%s5587_s21] sm:$0xff]  ;;  %v874_v6 = vld [vmem:[#allocation5 + $0x50] sm:$0xff]  ;;  %v873_v7 = vld [vmem:[#allocation5 + $0x48] sm:$0xff]  ;;  %s6383_s6 = sld [smem:[#allocation40_spill]]  ;;  %s5793_s16 = scalar_lea.vmem [#allocation21], %s5583_s26 }
  0xc5   : > { %4015 = vmatprep.subr.mxu0 %v878_v1  ;;  %4045 = vmatprep.mubr.f32.mxu0 %v832_v4  ;;  %v872_v8 = vld [vmem:[#allocation5 + $0x40] sm:$0xff]  ;;  %v871_v9 = vld [vmem:[#allocation5 + $0x38] sm:$0xff]  ;;  %v870_v10 = vld [vmem:[#allocation5 + $0x30] sm:$0xff]  ;;  %s6384_s8 = sld [smem:[#allocation42_spill]]  ;;  %s5864_s7 = scalar_lea.vmem [#allocation23], %s5583_s26 }
  0xc6   : > { %4016 = vmatpush3.msra.mxu0 %v878_v1  ;;  %v1159_v11 = vld [vmem:[#allocation7 + $0x78] sm:$0xff]  ;;  %v1158_v12 = vld [vmem:[#allocation7 + $0x70] sm:$0xff]  ;;  %v869_v13 = vld [vmem:[#allocation5 + $0x28] sm:$0xff]  ;;  %s6385_s10 = sld [smem:[#allocation44_spill]]  ;;  %s6331_s30 = sand.u32 1, %s5383_s29  }
  0xc7   : > { %4017 = vmatprep.subr.mxu0 %v877_v2  ;;  %4093 = vmatprep.subr.mxu1 %v1159_v11  ;;  %v1157_v14 = vld [vmem:[#allocation7 + $0x68] sm:$0xff]  ;;  %v868_v15 = vld [vmem:[#allocation5 + $0x20] sm:$0xff]  ;;  %v867_v17 = vld [vmem:[#allocation5 + $0x18] sm:$0xff]  ;;  %s6386_s12 = sld [smem:[#allocation46_spill]]  ;;  %s6042_s11 = sshll.u32 %s5383_s29, 12 }
  0xc8   : > { %4018 = vmatpush3.msra.mxu0 %v877_v2  ;;  %4094 = vmatpush3.msra.mxu1 %v1159_v11  ;;  %v1156_v16 = vld [vmem:[#allocation7 + $0x60] sm:$0xff]  ;;  %v1155_v18 = vld [vmem:[#allocation7 + $0x58] sm:$0xff]  ;;  %v866_v19 = vld [vmem:[#allocation5 + $0x10] sm:$0xff]  ;;  %s3250_s17 = sshll.u32 %s5649_s4, 4  ;;  %s6055_s22 = scalar_lea.sflag [#allocation19], %s6331_s30  ;;  %s6051_s17 = int_to_ptr.vmem [resolvable:$true] %s3250_s17 }
  0xc9   : > { %4019 = vmatprep.subr.mxu0 %v876_v3  ;;  %4095 = vmatprep.subr.mxu1 %v1158_v12  ;;  %v1154_v20 = vld [vmem:[#allocation7 + $0x50] sm:$0xff]  ;;  %v865_v21 = vld [vmem:[#allocation5 + $0x8] sm:$0xff]  ;;  %v864_v23 = vld [vmem:[#allocation5] sm:$0xff]  ;;  %p6387_p5 = scmp.ne.s32.totalorder %s6365_s24, 0  ;;  %s5245_s9 = smov [#allocation18]  }
  0xca   : > { %4020 = vmatpush3.msra.mxu0 %v876_v3  ;;  %4096 = vmatpush3.msra.mxu1 %v1158_v12  ;;  %v1153_v22 = vld [vmem:[#allocation7 + $0x48] sm:$0xff]  ;;  %v1152_v24 = vld [vmem:[#allocation7 + $0x40] sm:$0xff]  ;;  %v1151_v26 = vld [vmem:[#allocation7 + $0x38] sm:$0xff]  ;;  %s5044_s3 = sshll.u32 %s5245_s9, 4  ;;  %s5045_s3 = int_to_ptr.vmem [resolvable:$false] %s5044_s3 }
  0xcb   : > { %4021 = vmatprep.subr.mxu0 %v875_v5  ;;  %4097 = vmatprep.subr.mxu1 %v1157_v14  ;;  %v833_v25 = vld [vmem:[%s5587_s21 + $0x8] sm:$0xff]  ;;  %v834_v27 = vld [vmem:[%s5587_s21 + $0x10] sm:$0xff]  ;;  %v835_v29 = vld [vmem:[%s5587_s21 + $0x18] sm:$0xff]  ;;  %p5047_p1 = scmp.lt.s32.totalorder %s6051_s17, %s5045_s3 }
  0xcc   : > { %4022 = vmatpush3.msra.mxu0 %v875_v5  ;;  %4098 = vmatpush3.msra.mxu1 %v1157_v14  ;;  %v1150_v28 = vld [vmem:[#allocation7 + $0x30] sm:$0xff]  ;;  %v1149_v30 = vld [vmem:[#allocation7 + $0x28] sm:$0xff]  ;;  %v836_v31 = vld [vmem:[%s5587_s21 + $0x20] sm:$0xff] }
  0xcd   : > { %4023 = vmatprep.subr.mxu0 %v874_v6  ;;  %4099 = vmatprep.subr.mxu1 %v1156_v16  ;;  %v1148_v32 = vld [vmem:[#allocation7 + $0x20] sm:$0xff]  ;;  %v837_v33 = vld [vmem:[%s5587_s21 + $0x28] sm:$0xff]  ;;  %v838_v34 = vld [vmem:[%s5587_s21 + $0x30] sm:$0xff] }
  0xce   : > { %4024 = vmatpush3.msra.mxu0 %v874_v6  ;;  %4100 = vmatpush3.msra.mxu1 %v1156_v16  ;;  %v839_v35 = vld [vmem:[%s5587_s21 + $0x38] sm:$0xff]  ;;  %v840_v36 = vld [vmem:[%s5587_s21 + $0x40] sm:$0xff]  ;;  %v841_v37 = vld [vmem:[%s5587_s21 + $0x48] sm:$0xff] }
  0xcf   : > { %4025 = vmatprep.subr.mxu0 %v873_v7  ;;  %4101 = vmatprep.subr.mxu1 %v1155_v18  ;;  %v842_v38 = vld [vmem:[%s5587_s21 + $0x50] sm:$0xff]  ;;  %v843_v39 = vld [vmem:[%s5587_s21 + $0x58] sm:$0xff]  ;;  %v844_v40 = vld [vmem:[%s5587_s21 + $0x60] sm:$0xff] }
  0xd0   : > { %4026 = vmatpush3.msra.mxu0 %v873_v7  ;;  %4102 = vmatpush3.msra.mxu1 %v1155_v18  ;;  %v845_v41 = vld [vmem:[%s5587_s21 + $0x68] sm:$0xff]  ;;  %v846_v42 = vld [vmem:[%s5587_s21 + $0x70] sm:$0xff]  ;;  %v847_v43 = vld [vmem:[%s5587_s21 + $0x78] sm:$0xff] }
  0xd1   : > { %4027 = vmatprep.subr.mxu0 %v872_v8  ;;  %4103 = vmatprep.subr.mxu1 %v1154_v20  ;;  %v848_v44 = vld [vmem:[%s5587_s21 + $0x80] sm:$0xff]  ;;  %v849_v45 = vld [vmem:[%s5587_s21 + $0x88] sm:$0xff]  ;;  %v850_v46 = vld [vmem:[%s5587_s21 + $0x90] sm:$0xff] }
  0xd2   : > { %4028 = vmatpush3.msra.mxu0 %v872_v8  ;;  %4104 = vmatpush3.msra.mxu1 %v1154_v20  ;;  %v851_v47 = vld [vmem:[%s5587_s21 + $0x98] sm:$0xff]  ;;  %v852_v48 = vld [vmem:[%s5587_s21 + $0xa0] sm:$0xff]  ;;  %v853_v49 = vld [vmem:[%s5587_s21 + $0xa8] sm:$0xff] }
  0xd3   : > { %4029 = vmatprep.subr.mxu0 %v871_v9  ;;  %4105 = vmatprep.subr.mxu1 %v1153_v22  ;;  %v854_v50 = vld [vmem:[%s5587_s21 + $0xb0] sm:$0xff]  ;;  %v855_v51 = vld [vmem:[%s5587_s21 + $0xb8] sm:$0xff]  ;;  %v856_v52 = vld [vmem:[%s5587_s21 + $0xc0] sm:$0xff] }
  0xd4   : > { %4030 = vmatpush3.msra.mxu0 %v871_v9  ;;  %4106 = vmatpush3.msra.mxu1 %v1153_v22  ;;  %v857_v53 = vld [vmem:[%s5587_s21 + $0xc8] sm:$0xff]  ;;  %v858_v54 = vld [vmem:[%s5587_s21 + $0xd0] sm:$0xff]  ;;  %v859_v55 = vld [vmem:[%s5587_s21 + $0xd8] sm:$0xff] }
  0xd5   : > { %4031 = vmatprep.subr.mxu0 %v870_v10  ;;  %4107 = vmatprep.subr.mxu1 %v1152_v24  ;;  %v860_v56 = vld [vmem:[%s5587_s21 + $0xe0] sm:$0xff]  ;;  %v861_v57 = vld [vmem:[%s5587_s21 + $0xe8] sm:$0xff]  ;;  %v862_v58 = vld [vmem:[%s5587_s21 + $0xf0] sm:$0xff] }
  0xd6   : > { %4032 = vmatpush3.msra.mxu0 %v870_v10  ;;  %4108 = vmatpush3.msra.mxu1 %v1152_v24  ;;  %v863_v59 = vld [vmem:[%s5587_s21 + $0xf8] sm:$0xff]  ;;  %v1146_v61 = vld [vmem:[#allocation7 + $0x10] sm:$0xff]  ;;  %v1145_v62 = vld [vmem:[#allocation7 + $0x8] sm:$0xff]  ;;  %s5046_s21 = scalar_lea.vmem %s5045_s3, 8192 }
  0xd7   : > { %4033 = vmatprep.subr.mxu0 %v869_v13  ;;  %4109 = vmatprep.subr.mxu1 %v1151_v26  ;;  %v1147_v60 = vld [vmem:[#allocation7 + $0x18] sm:$0xff]  ;;  %v1144_v63 = vld [vmem:[#allocation7] sm:$0xff]  ;;  %v1438_v1 = vld [vmem:[#allocation8 + $0x70] sm:$0xff] }
  0xd8   : > { %4034 = vmatpush3.msra.mxu0 %v869_v13  ;;  %4110 = vmatpush3.msra.mxu1 %v1151_v26  ;;  %v1439_v0 = vld [vmem:[#allocation8 + $0x78] sm:$0xff]  ;;  %v1437_v2 = vld [vmem:[#allocation8 + $0x68] sm:$0xff]  ;;  %v1436_v3 = vld [vmem:[#allocation8 + $0x60] sm:$0xff] }
  0xd9   : > { %4035 = vmatprep.subr.mxu0 %v868_v15  ;;  %4111 = vmatprep.subr.mxu1 %v1150_v28  ;;  %v1435_v4 = vld [vmem:[#allocation8 + $0x58] sm:$0xff]  ;;  %v1434_v5 = vld [vmem:[#allocation8 + $0x50] sm:$0xff]  ;;  %v1433_v6 = vld [vmem:[#allocation8 + $0x48] sm:$0xff] }
  0xda   : > { %4036 = vmatpush3.msra.mxu0 %v868_v15  ;;  %4112 = vmatpush3.msra.mxu1 %v1150_v28  ;;  %v1432_v7 = vld [vmem:[#allocation8 + $0x40] sm:$0xff]  ;;  %v1431_v8 = vld [vmem:[#allocation8 + $0x38] sm:$0xff]  ;;  %v1430_v9 = vld [vmem:[#allocation8 + $0x30] sm:$0xff] }
  0xdb   : > { %4037 = vmatprep.subr.mxu0 %v867_v17  ;;  %4113 = vmatprep.subr.mxu1 %v1149_v30  ;;  %v1429_v10 = vld [vmem:[#allocation8 + $0x28] sm:$0xff]  ;;  %v1428_v11 = vld [vmem:[#allocation8 + $0x20] sm:$0xff]  ;;  %v1427_v12 = vld [vmem:[#allocation8 + $0x18] sm:$0xff] }
  0xdc   : > { %4038 = vmatpush3.msra.mxu0 %v867_v17  ;;  %4114 = vmatpush3.msra.mxu1 %v1149_v30  ;;  %v1426_v13 = vld [vmem:[#allocation8 + $0x10] sm:$0xff]  ;;  %v1425_v14 = vld [vmem:[#allocation8 + $0x8] sm:$0xff]  ;;  %v5644_v15 = vld [vmem:[%s6381_s0] ss:$0 sm:$0xff]  ;;  %s6048_s0 = scalar_lea.hbm %s6315_s18, %s6042_s11 }
  0xdd   : > { %4039 = vmatprep.subr.mxu0 %v866_v19  ;;  %4115 = vmatprep.subr.mxu1 %v1148_v32 }
  0xde   : > { %4040 = vmatpush3.msra.mxu0 %v866_v19  ;;  %4116 = vmatpush3.msra.mxu1 %v1148_v32 }
  0xdf   : > { %4041 = vmatprep.subr.mxu0 %v865_v21  ;;  %4117 = vmatprep.subr.mxu1 %v1147_v60 }
  0xe0   : > { %4042 = vmatpush3.msra.mxu0 %v865_v21  ;;  %4118 = vmatpush3.msra.mxu1 %v1147_v60 }
  0xe1   : > { %4043 = vmatprep.subr.mxu0 %v864_v23  ;;  %4119 = vmatprep.subr.mxu1 %v1146_v61 }
  0xe2   : > { %4044 = vmatpush3.msra.mxu0 %v864_v23  ;;  %4120 = vmatpush3.msra.mxu1 %v1146_v61 }
  0xe3   : > { %4046 = vmatmul.mubr.f32.vlgmr.msra.gmra.mxu0 %v833_v25  ;;  %4121 = vmatprep.subr.mxu1 %v1145_v62 }
  0xe4   : > { %4048 = vmatprep.mubr.f32.mxu0 %v834_v27  ;;  %4122 = vmatpush3.msra.mxu1 %v1145_v62 }
  0xe5   : > { %4123 = vmatprep.subr.mxu1 %v1144_v63  ;;  %4173 = vmatprep.subr.mxu0 %v1439_v0 }
  0xe6   : > { %4124 = vmatpush3.msra.mxu1 %v1144_v63  ;;  %4174 = vmatpush3.msra.mxu0 %v1439_v0 }
  0xe7   : > { %4049 = vmatmul.mubr.f32.gmra.mxu0 %v835_v29  ;;  %4175 = vmatprep.subr.mxu0 %v1438_v1 }
  0xe8   : > { %4051 = vmatprep.mubr.f32.mxu0 %v836_v31  ;;  %4176 = vmatpush3.msra.mxu0 %v1438_v1 }
  0xe9   : > { %4177 = vmatprep.subr.mxu0 %v1437_v2 }
  0xea   : > { %4178 = vmatpush3.msra.mxu0 %v1437_v2 }
  0xeb   : > { %4052 = vmatmul.mubr.f32.gmra.mxu0 %v837_v33  ;;  %4179 = vmatprep.subr.mxu0 %v1436_v3 }
  0xec   : > { %4054 = vmatprep.mubr.f32.mxu0 %v838_v34  ;;  %4180 = vmatpush3.msra.mxu0 %v1436_v3 }
  0xed   : > { %4181 = vmatprep.subr.mxu0 %v1435_v4 }
  0xee   : > { %4182 = vmatpush3.msra.mxu0 %v1435_v4 }
  0xef   : > { %4055 = vmatmul.mubr.f32.gmra.mxu0 %v839_v35  ;;  %4183 = vmatprep.subr.mxu0 %v1434_v5 }
  0xf0   : > { %4057 = vmatprep.mubr.f32.mxu0 %v840_v36  ;;  %4184 = vmatpush3.msra.mxu0 %v1434_v5 }
  0xf1   : > { %4185 = vmatprep.subr.mxu0 %v1433_v6 }
  0xf2   : > { %4186 = vmatpush3.msra.mxu0 %v1433_v6 }
  0xf3   : > { %4058 = vmatmul.mubr.f32.gmra.mxu0 %v841_v37  ;;  %4187 = vmatprep.subr.mxu0 %v1432_v7 }
  0xf4   : > { %4060 = vmatprep.mubr.f32.mxu0 %v842_v38  ;;  %4188 = vmatpush3.msra.mxu0 %v1432_v7 }
  0xf5   : > { %4189 = vmatprep.subr.mxu0 %v1431_v8 }
  0xf6   : > { %4190 = vmatpush3.msra.mxu0 %v1431_v8 }
  0xf7   : > { %4061 = vmatmul.mubr.f32.gmra.mxu0 %v843_v39  ;;  %4191 = vmatprep.subr.mxu0 %v1430_v9 }
  0xf8   : > { %4063 = vmatprep.mubr.f32.mxu0 %v844_v40  ;;  %4192 = vmatpush3.msra.mxu0 %v1430_v9 }
  0xf9   : > { %4193 = vmatprep.subr.mxu0 %v1429_v10 }
  0xfa   : > { %4194 = vmatpush3.msra.mxu0 %v1429_v10 }
  0xfb   : > { %4064 = vmatmul.mubr.f32.gmra.mxu0 %v845_v41  ;;  %4195 = vmatprep.subr.mxu0 %v1428_v11 }
  0xfc   : > { %4066 = vmatprep.mubr.f32.mxu0 %v846_v42  ;;  %4196 = vmatpush3.msra.mxu0 %v1428_v11 }
  0xfd   : > { %4197 = vmatprep.subr.mxu0 %v1427_v12 }
  0xfe   : > { %4198 = vmatpush3.msra.mxu0 %v1427_v12 }
  0xff   : > { %4067 = vmatmul.mubr.f32.gmra.mxu0 %v847_v43  ;;  %4199 = vmatprep.subr.mxu0 %v1426_v13 }
 0x100   : > { %4069 = vmatprep.mubr.f32.mxu0 %v848_v44  ;;  %4200 = vmatpush3.msra.mxu0 %v1426_v13 }
 0x101   : > { %4201 = vmatprep.subr.mxu0 %v1425_v14 }
 0x102   : > { %4202 = vmatpush3.msra.mxu0 %v1425_v14 }
 0x103   : > { %4070 = vmatmul.mubr.f32.gmra.mxu0 %v849_v45 }
 0x104   : > { %4072 = vmatprep.mubr.f32.mxu0 %v850_v46 }
 0x107   : > { %4073 = vmatmul.mubr.f32.gmra.mxu0 %v851_v47 }
 0x108   : > { %4075 = vmatprep.mubr.f32.mxu0 %v852_v48 }
 0x10b   : > { %4076 = vmatmul.mubr.f32.gmra.mxu0 %v853_v49 }
 0x10c   : > { %4078 = vmatprep.mubr.f32.mxu0 %v854_v50 }
 0x10f   : > { %4079 = vmatmul.mubr.f32.gmra.mxu0 %v855_v51 }
 0x110   : > { %4081 = vmatprep.mubr.f32.mxu0 %v856_v52 }
 0x113   : > { %4082 = vmatmul.mubr.f32.gmra.mxu0 %v857_v53 }
 0x114   : > { %4084 = vmatprep.mubr.f32.mxu0 %v858_v54 }
 0x117   : > { %4085 = vmatmul.mubr.f32.gmra.mxu0 %v859_v55 }
 0x118   : > { %4087 = vmatprep.mubr.f32.mxu0 %v860_v56 }
 0x11b   : > { %4088 = vmatmul.mubr.f32.gmra.mxu0 %v861_v57 }
 0x11c   : > { %4090 = vmatprep.mubr.f32.mxu0 %v862_v58 }
 0x11f   : > { %4091 = vmatmul.mubr.f32.gmra.mxu0 %v863_v59 }
 0x1a3   : > { %v4047_v16 = vpop.f32.mrf.mxu0 }
 0x1a4   : > { %v959_v17 = vadd.f32 %v4047_v16, %v5644_v15 }
 0x1a5   : > { %v953_v18 = vpop.f32.mrf.mxu0 }
 0x1a6   : > { %v1113_v19 = vmax.f32 %v959_v17, 0.0  ;;  %v954_v20 = vadd.f32 %v5644_v15, %v953_v18 }
 0x1a7   : > { %v4050_v21 = vpop.f32.mrf.mxu0 }
 0x1a8   : > { %3041 = vst [vmem:[%s5649_s4 + $0x8] sm:$0xff] %v1113_v19  ;;  %v969_v22 = vadd.f32 %v4050_v21, %v5644_v15  ;;  %v1112_v23 = vmax.f32 %v954_v20, 0.0 }
 0x1a9   : > { %v963_v24 = vpop.f32.mrf.mxu0 }
 0x1aa   : > { %v1115_v25 = vmax.f32 %v969_v22, 0.0  ;;  %v964_v26 = vadd.f32 %v5644_v15, %v963_v24  ;;  %4125 = vmatprep.mubr.f32.mxu1 %v1112_v23  ;;  %3040 = vst [vmem:[%s5649_s4] sm:$0xff] %v1112_v23 }
 0x1ab   : > { %v4053_v27 = vpop.f32.mrf.mxu0  ;;  %4126 = vmatmul.mubr.f32.vlgmr.msra.gmra.mxu1 %v1113_v19 }
 0x1ac   : > { %3043 = vst [vmem:[%s5649_s4 + $0x18] sm:$0xff] %v1115_v25  ;;  %v1114_v28 = vmax.f32 %v964_v26, 0.0  ;;  %v979_v29 = vadd.f32 %v4053_v27, %v5644_v15 }
 0x1ad   : > { %v973_v30 = vpop.f32.mrf.mxu0 }
 0x1ae   : > { %3042 = vst [vmem:[%s5649_s4 + $0x10] sm:$0xff] %v1114_v28  ;;  %v1117_v31 = vmax.f32 %v979_v29, 0.0  ;;  %v974_v32 = vadd.f32 %v5644_v15, %v973_v30  ;;  %4128 = vmatprep.mubr.f32.mxu1 %v1114_v28 }
 0x1af   : > { %v4056_v33 = vpop.f32.mrf.mxu0  ;;  %4129 = vmatmul.mubr.f32.gmra.mxu1 %v1115_v25 }
 0x1b0   : > { %3045 = vst [vmem:[%s5649_s4 + $0x28] sm:$0xff] %v1117_v31  ;;  %v1116_v34 = vmax.f32 %v974_v32, 0.0  ;;  %v989_v35 = vadd.f32 %v4056_v33, %v5644_v15 }
 0x1b1   : > { %v983_v36 = vpop.f32.mrf.mxu0 }
 0x1b2   : > { %3044 = vst [vmem:[%s5649_s4 + $0x20] sm:$0xff] %v1116_v34  ;;  %v1119_v37 = vmax.f32 %v989_v35, 0.0  ;;  %v984_v38 = vadd.f32 %v5644_v15, %v983_v36  ;;  %4131 = vmatprep.mubr.f32.mxu1 %v1116_v34 }
 0x1b3   : > { %v4059_v39 = vpop.f32.mrf.mxu0  ;;  %4132 = vmatmul.mubr.f32.gmra.mxu1 %v1117_v31 }
 0x1b4   : > { %3047 = vst [vmem:[%s5649_s4 + $0x38] sm:$0xff] %v1119_v37  ;;  %v1118_v40 = vmax.f32 %v984_v38, 0.0  ;;  %v999_v41 = vadd.f32 %v4059_v39, %v5644_v15 }
 0x1b5   : > { %v993_v42 = vpop.f32.mrf.mxu0 }
 0x1b6   : > { %3046 = vst [vmem:[%s5649_s4 + $0x30] sm:$0xff] %v1118_v40  ;;  %v1121_v43 = vmax.f32 %v999_v41, 0.0  ;;  %v994_v44 = vadd.f32 %v5644_v15, %v993_v42  ;;  %4134 = vmatprep.mubr.f32.mxu1 %v1118_v40 }
 0x1b7   : > { %v4062_v45 = vpop.f32.mrf.mxu0  ;;  %4135 = vmatmul.mubr.f32.gmra.mxu1 %v1119_v37 }
 0x1b8   : > { %3049 = vst [vmem:[%s5649_s4 + $0x48] sm:$0xff] %v1121_v43  ;;  %v1120_v46 = vmax.f32 %v994_v44, 0.0  ;;  %v1009_v47 = vadd.f32 %v4062_v45, %v5644_v15 }
 0x1b9   : > { %v1003_v48 = vpop.f32.mrf.mxu0 }
 0x1ba   : > { %3048 = vst [vmem:[%s5649_s4 + $0x40] sm:$0xff] %v1120_v46  ;;  %v1123_v49 = vmax.f32 %v1009_v47, 0.0  ;;  %v1004_v50 = vadd.f32 %v5644_v15, %v1003_v48  ;;  %4137 = vmatprep.mubr.f32.mxu1 %v1120_v46 }
 0x1bb   : > { %v4065_v51 = vpop.f32.mrf.mxu0  ;;  %4138 = vmatmul.mubr.f32.gmra.mxu1 %v1121_v43 }
 0x1bc   : > { %3051 = vst [vmem:[%s5649_s4 + $0x58] sm:$0xff] %v1123_v49  ;;  %v1122_v52 = vmax.f32 %v1004_v50, 0.0  ;;  %v1019_v53 = vadd.f32 %v4065_v51, %v5644_v15  ;;  %v1719_v50 = vld [vmem:[#allocation10 + $0x78] sm:$0xff]  ;;  %v1718_v51 = vld [vmem:[#allocation10 + $0x70] sm:$0xff] }
 0x1bd   : > { %v1013_v54 = vpop.f32.mrf.mxu0  ;;  %4253 = vmatprep.subr.mxu1 %v1719_v50 }
 0x1be   : > { %3050 = vst [vmem:[%s5649_s4 + $0x50] sm:$0xff] %v1122_v52  ;;  %v1125_v55 = vmax.f32 %v1019_v53, 0.0  ;;  %v1014_v56 = vadd.f32 %v5644_v15, %v1013_v54  ;;  %4140 = vmatprep.mubr.f32.mxu1 %v1122_v52  ;;  %4254 = vmatpush3.msra.mxu1 %v1719_v50  ;;  %v1717_v52 = vld [vmem:[#allocation10 + $0x68] sm:$0xff]  ;;  %v1716_v53 = vld [vmem:[#allocation10 + $0x60] sm:$0xff]  ;;  %v1714_v54 = vld [vmem:[#allocation10 + $0x50] sm:$0xff] }
 0x1bf   : > { %v4068_v57 = vpop.f32.mrf.mxu0  ;;  %4141 = vmatmul.mubr.f32.gmra.mxu1 %v1123_v49  ;;  %v1424_v49 = vld [vmem:[#allocation8] sm:$0xff]  ;;  %4255 = vmatprep.subr.mxu1 %v1718_v51 }
 0x1c0   : > { %3053 = vst [vmem:[%s5649_s4 + $0x68] sm:$0xff] %v1125_v55  ;;  %v1124_v58 = vmax.f32 %v1014_v56, 0.0  ;;  %v1029_v59 = vadd.f32 %v4068_v57, %v5644_v15  ;;  %4203 = vmatprep.subr.mxu0 %v1424_v49  ;;  %4256 = vmatpush3.msra.mxu1 %v1718_v51  ;;  %v1712_v56 = vld [vmem:[#allocation10 + $0x40] sm:$0xff]  ;;  %v1711_v57 = vld [vmem:[#allocation10 + $0x38] sm:$0xff] }
 0x1c1   : > { %v1023_v60 = vpop.f32.mrf.mxu0  ;;  %4204 = vmatpush3.msra.mxu0 %v1424_v49  ;;  %4257 = vmatprep.subr.mxu1 %v1717_v52 }
 0x1c2   : > { %3052 = vst [vmem:[%s5649_s4 + $0x60] sm:$0xff] %v1124_v58  ;;  %v1127_v61 = vmax.f32 %v1029_v59, 0.0  ;;  %v1024_v62 = vadd.f32 %v5644_v15, %v1023_v60  ;;  %4143 = vmatprep.mubr.f32.mxu1 %v1124_v58  ;;  %4258 = vmatpush3.msra.mxu1 %v1717_v52  ;;  %v1710_v58 = vld [vmem:[#allocation10 + $0x30] sm:$0xff]  ;;  %v1709_v59 = vld [vmem:[#allocation10 + $0x28] sm:$0xff]  ;;  %v1708_v60 = vld [vmem:[#allocation10 + $0x20] sm:$0xff] }
 0x1c3   : > { %v4071_v63 = vpop.f32.mrf.mxu0  ;;  %4144 = vmatmul.mubr.f32.gmra.mxu1 %v1125_v55  ;;  %4259 = vmatprep.subr.mxu1 %v1716_v53  ;;  %v1713_v55 = vld [vmem:[#allocation10 + $0x48] sm:$0xff] }
 0x1c4   : > { %3055 = vst [vmem:[%s5649_s4 + $0x78] sm:$0xff] %v1127_v61  ;;  %v1126_v0 = vmax.f32 %v1024_v62, 0.0  ;;  %v1039_v1 = vadd.f32 %v4071_v63, %v5644_v15  ;;  %4260 = vmatpush3.msra.mxu1 %v1716_v53  ;;  %v1706_v62 = vld [vmem:[#allocation10 + $0x10] sm:$0xff]  ;;  %v1705_v63 = vld [vmem:[#allocation10 + $0x8] sm:$0xff] }
 0x1c5   : > { %v1033_v2 = vpop.f32.mrf.mxu0 }
 0x1c6   : > { %3054 = vst [vmem:[%s5649_s4 + $0x70] sm:$0xff] %v1126_v0  ;;  %v1129_v3 = vmax.f32 %v1039_v1, 0.0  ;;  %v1034_v4 = vadd.f32 %v5644_v15, %v1033_v2  ;;  %4146 = vmatprep.mubr.f32.mxu1 %v1126_v0  ;;  %v5716_v0 = vld [vmem:[%s6382_s13] ss:$0 sm:$0xff]  ;;  %s5040_s13 = scalar_lea.vmem %s6051_s17, 4096 }
 0x1c7   : > { %v4074_v5 = vpop.f32.mrf.mxu0  ;;  %4147 = vmatmul.mubr.f32.gmra.mxu1 %v1127_v61  ;;  %v1707_v61 = vld [vmem:[#allocation10 + $0x18] sm:$0xff]  ;;  %p5041_p2 = scmp.ne.s32.totalorder %s6051_s17, %s5040_s13  ;;  %p5048_p3 = scmp.lt.s32.totalorder %s5046_s21, %s5040_s13 }
 0x1c8   : > { %3057 = vst [vmem:[%s5649_s4 + $0x88] sm:$0xff] %v1129_v3  ;;  %v1128_v6 = vmax.f32 %v1034_v4, 0.0  ;;  %v1049_v7 = vadd.f32 %v4074_v5, %v5644_v15 }
 0x1c9   : > { %v1043_v8 = vpop.f32.mrf.mxu0  ;;  %p5042_p9 = pnand %p5041_p2, %p6387_p5  ;;  %p5049_p4 = por %p5048_p3, %p5047_p1 }
 0x1ca   : > { %3056 = vst [vmem:[%s5649_s4 + $0x80] sm:$0xff] %v1128_v6  ;;  %v1131_v9 = vmax.f32 %v1049_v7, 0.0  ;;  %v1044_v10 = vadd.f32 %v5644_v15, %v1043_v8  ;;  %4149 = vmatprep.mubr.f32.mxu1 %v1128_v6 }
 0x1cb   : > { %v4077_v11 = vpop.f32.mrf.mxu0  ;;  %4150 = vmatmul.mubr.f32.gmra.mxu1 %v1129_v3  ;;  %p5043_p12 = pneg %p5042_p9 }
 0x1cc   : > { %3059 = vst [vmem:[%s5649_s4 + $0x98] sm:$0xff] %v1131_v9  ;;  %v1130_v12 = vmax.f32 %v1044_v10, 0.0  ;;  %v1059_v13 = vadd.f32 %v4077_v11, %v5644_v15 }
 0x1cd   : > { %v1053_v14 = vpop.f32.mrf.mxu0  ;;  %p5050_p6 = pnand %p5049_p4, %p5043_p12 }
 0x1ce   : > { %3058 = vst [vmem:[%s5649_s4 + $0x90] sm:$0xff] %v1130_v12  ;;  %v1133_v16 = vmax.f32 %v1059_v13, 0.0  ;;  %v1054_v17 = vadd.f32 %v5644_v15, %v1053_v14  ;;  %4152 = vmatprep.mubr.f32.mxu1 %v1130_v12 }
 0x1cf   : > { %v4080_v18 = vpop.f32.mrf.mxu0  ;;  %4153 = vmatmul.mubr.f32.gmra.mxu1 %v1131_v9 }
 0x1d0   : > { %3061 = vst [vmem:[%s5649_s4 + $0xa8] sm:$0xff] %v1133_v16  ;;  %v1132_v19 = vmax.f32 %v1054_v17, 0.0  ;;  %v1069_v20 = vadd.f32 %v4080_v18, %v5644_v15 }
 0x1d1   : > { %v1063_v21 = vpop.f32.mrf.mxu0 }
 0x1d2   : > { %3060 = vst [vmem:[%s5649_s4 + $0xa0] sm:$0xff] %v1132_v19  ;;  %v1135_v22 = vmax.f32 %v1069_v20, 0.0  ;;  %v1064_v23 = vadd.f32 %v5644_v15, %v1063_v21  ;;  %4155 = vmatprep.mubr.f32.mxu1 %v1132_v19 }
 0x1d3   : > { %v4083_v24 = vpop.f32.mrf.mxu0  ;;  %4156 = vmatmul.mubr.f32.gmra.mxu1 %v1133_v16 }
 0x1d4   : > { %3063 = vst [vmem:[%s5649_s4 + $0xb8] sm:$0xff] %v1135_v22  ;;  %v1134_v25 = vmax.f32 %v1064_v23, 0.0  ;;  %v1079_v26 = vadd.f32 %v4083_v24, %v5644_v15 }
 0x1d5   : > { %v1073_v27 = vpop.f32.mrf.mxu0 }
 0x1d6   : > { %3062 = vst [vmem:[%s5649_s4 + $0xb0] sm:$0xff] %v1134_v25  ;;  %v1137_v28 = vmax.f32 %v1079_v26, 0.0  ;;  %v1074_v29 = vadd.f32 %v5644_v15, %v1073_v27  ;;  %4158 = vmatprep.mubr.f32.mxu1 %v1134_v25 }
 0x1d7   : > { %v4086_v30 = vpop.f32.mrf.mxu0  ;;  %4159 = vmatmul.mubr.f32.gmra.mxu1 %v1135_v22 }
 0x1d8   : > { %3065 = vst [vmem:[%s5649_s4 + $0xc8] sm:$0xff] %v1137_v28  ;;  %v1136_v31 = vmax.f32 %v1074_v29, 0.0  ;;  %v1089_v32 = vadd.f32 %v4086_v30, %v5644_v15 }
 0x1d9   : > { %v1083_v33 = vpop.f32.mrf.mxu0 }
 0x1da   : > { %3064 = vst [vmem:[%s5649_s4 + $0xc0] sm:$0xff] %v1136_v31  ;;  %v1139_v34 = vmax.f32 %v1089_v32, 0.0  ;;  %v1084_v35 = vadd.f32 %v5644_v15, %v1083_v33  ;;  %4161 = vmatprep.mubr.f32.mxu1 %v1136_v31 }
 0x1db   : > { %v4089_v36 = vpop.f32.mrf.mxu0  ;;  %4162 = vmatmul.mubr.f32.gmra.mxu1 %v1137_v28 }
 0x1dc   : > { %3067 = vst [vmem:[%s5649_s4 + $0xd8] sm:$0xff] %v1139_v34  ;;  %v1138_v37 = vmax.f32 %v1084_v35, 0.0  ;;  %v1099_v38 = vadd.f32 %v4089_v36, %v5644_v15 }
 0x1dd   : > { %v1093_v39 = vpop.f32.mrf.mxu0 }
 0x1de   : > { %3066 = vst [vmem:[%s5649_s4 + $0xd0] sm:$0xff] %v1138_v37  ;;  %v1141_v40 = vmax.f32 %v1099_v38, 0.0  ;;  %v1094_v41 = vadd.f32 %v5644_v15, %v1093_v39  ;;  %4164 = vmatprep.mubr.f32.mxu1 %v1138_v37 }
 0x1df   : > { %v4092_v42 = vpop.f32.mrf.mxu0  ;;  %4165 = vmatmul.mubr.f32.gmra.mxu1 %v1139_v34 }
 0x1e0   : > { %3069 = vst [vmem:[%s5649_s4 + $0xe8] sm:$0xff] %v1141_v40  ;;  %v1140_v43 = vmax.f32 %v1094_v41, 0.0  ;;  %v1109_v44 = vadd.f32 %v4092_v42, %v5644_v15 }
 0x1e1   : > { %v1103_v45 = vpop.f32.mrf.mxu0 }
 0x1e2   : > { %3068 = vst [vmem:[%s5649_s4 + $0xe0] sm:$0xff] %v1140_v43  ;;  %v1143_v46 = vmax.f32 %v1109_v44, 0.0  ;;  %v1104_v47 = vadd.f32 %v5644_v15, %v1103_v45  ;;  %4167 = vmatprep.mubr.f32.mxu1 %v1140_v43  ;;  %v1715_v15 = vld [vmem:[#allocation10 + $0x58] sm:$0xff] }
 0x1e3   : > { %4168 = vmatmul.mubr.f32.gmra.mxu1 %v1141_v40  ;;  %4261 = vmatprep.subr.mxu1 %v1715_v15 }
 0x1e4   : > { %3071 = vst [vmem:[%s5649_s4 + $0xf8] sm:$0xff] %v1143_v46  ;;  %v1142_v48 = vmax.f32 %v1104_v47, 0.0  ;;  %4262 = vmatpush3.msra.mxu1 %v1715_v15 }
 0x1e5   : > { %4263 = vmatprep.subr.mxu1 %v1714_v54 }
 0x1e6   : > { %3070 = vst [vmem:[%s5649_s4 + $0xf0] sm:$0xff] %v1142_v48  ;;  %4170 = vmatprep.mubr.f32.mxu1 %v1142_v48  ;;  %4264 = vmatpush3.msra.mxu1 %v1714_v54 }
 0x1e7   : > { %4171 = vmatmul.mubr.f32.gmra.mxu1 %v1143_v46  ;;  %4265 = vmatprep.subr.mxu1 %v1713_v55 }
 0x1e8   : > { %4266 = vmatpush3.msra.mxu1 %v1713_v55 }
 0x1e9   : > { %4267 = vmatprep.subr.mxu1 %v1712_v56 }
 0x1ea   : > { %4268 = vmatpush3.msra.mxu1 %v1712_v56 }
 0x1eb   : > { %4269 = vmatprep.subr.mxu1 %v1711_v57 }
 0x1ec   : > { %4270 = vmatpush3.msra.mxu1 %v1711_v57 }
 0x1ed   : > { %4271 = vmatprep.subr.mxu1 %v1710_v58 }
 0x1ee   : > { %4272 = vmatpush3.msra.mxu1 %v1710_v58 }
 0x1ef   : > { %4273 = vmatprep.subr.mxu1 %v1709_v59 }
 0x1f0   : > { %4274 = vmatpush3.msra.mxu1 %v1709_v59 }
 0x1f1   : > { %4275 = vmatprep.subr.mxu1 %v1708_v60 }
 0x1f2   : > { %4276 = vmatpush3.msra.mxu1 %v1708_v60 }
 0x1f3   : > { %4277 = vmatprep.subr.mxu1 %v1707_v61 }
 0x1f4   : > { %4278 = vmatpush3.msra.mxu1 %v1707_v61 }
 0x1f5   : > { %4279 = vmatprep.subr.mxu1 %v1706_v62 }
 0x1f6   : > { %4280 = vmatpush3.msra.mxu1 %v1706_v62 }
 0x1f7   : > { %4281 = vmatprep.subr.mxu1 %v1705_v63 }
 0x1f8   : > { %4282 = vmatpush3.msra.mxu1 %v1705_v63 }
 0x26b   : > { %v4127_v1 = vpop.f32.mrf.mxu1 }
 0x26c   : > { %v1239_v2 = vadd.f32 %v4127_v1, %v5716_v0 }
 0x26d   : > { %v1233_v3 = vpop.f32.mrf.mxu1 }
 0x26e   : > { %v1393_v4 = vmax.f32 %v1239_v2, 0.0  ;;  %v1234_v5 = vadd.f32 %v5716_v0, %v1233_v3 }
 0x26f   : > { %v4130_v6 = vpop.f32.mrf.mxu1 }
 0x270   : > { %3073 = vst [vmem:[%s5721_s28 + $0x8] sm:$0xff] %v1393_v4  ;;  %v1392_v7 = vmax.f32 %v1234_v5, 0.0  ;;  %v1249_v8 = vadd.f32 %v4130_v6, %v5716_v0 }
 0x271   : > { %v1243_v9 = vpop.f32.mrf.mxu1 }
 0x272   : > { %3072 = vst [vmem:[%s5721_s28] sm:$0xff] %v1392_v7  ;;  %v1395_v10 = vmax.f32 %v1249_v8, 0.0  ;;  %v1244_v11 = vadd.f32 %v5716_v0, %v1243_v9  ;;  %4205 = vmatprep.mubr.f32.mxu0 %v1392_v7 }
 0x273   : > { %v4133_v12 = vpop.f32.mrf.mxu1  ;;  %4206 = vmatmul.mubr.f32.vlgmr.msra.gmra.mxu0 %v1393_v4 }
 0x274   : > { %3075 = vst [vmem:[%s5721_s28 + $0x18] sm:$0xff] %v1395_v10  ;;  %v1394_v13 = vmax.f32 %v1244_v11, 0.0  ;;  %v1259_v14 = vadd.f32 %v4133_v12, %v5716_v0 }
 0x275   : > { %v1253_v16 = vpop.f32.mrf.mxu1 }
 0x276   : > { %3074 = vst [vmem:[%s5721_s28 + $0x10] sm:$0xff] %v1394_v13  ;;  %v1397_v17 = vmax.f32 %v1259_v14, 0.0  ;;  %v1254_v18 = vadd.f32 %v5716_v0, %v1253_v16  ;;  %4208 = vmatprep.mubr.f32.mxu0 %v1394_v13 }
 0x277   : > { %v4136_v19 = vpop.f32.mrf.mxu1  ;;  %4209 = vmatmul.mubr.f32.gmra.mxu0 %v1395_v10 }
 0x278   : > { %3077 = vst [vmem:[%s5721_s28 + $0x28] sm:$0xff] %v1397_v17  ;;  %v1396_v20 = vmax.f32 %v1254_v18, 0.0  ;;  %v1269_v21 = vadd.f32 %v4136_v19, %v5716_v0 }
 0x279   : > { %v1263_v22 = vpop.f32.mrf.mxu1 }
 0x27a   : > { %3076 = vst [vmem:[%s5721_s28 + $0x20] sm:$0xff] %v1396_v20  ;;  %v1399_v23 = vmax.f32 %v1269_v21, 0.0  ;;  %v1264_v24 = vadd.f32 %v5716_v0, %v1263_v22  ;;  %4211 = vmatprep.mubr.f32.mxu0 %v1396_v20 }
 0x27b   : > { %v4139_v25 = vpop.f32.mrf.mxu1  ;;  %4212 = vmatmul.mubr.f32.gmra.mxu0 %v1397_v17 }
 0x27c   : > { %3079 = vst [vmem:[%s5721_s28 + $0x38] sm:$0xff] %v1399_v23  ;;  %v1398_v26 = vmax.f32 %v1264_v24, 0.0  ;;  %v1279_v27 = vadd.f32 %v4139_v25, %v5716_v0 }
 0x27d   : > { %v1273_v28 = vpop.f32.mrf.mxu1 }
 0x27e   : > { %3078 = vst [vmem:[%s5721_s28 + $0x30] sm:$0xff] %v1398_v26  ;;  %v1401_v29 = vmax.f32 %v1279_v27, 0.0  ;;  %v1274_v30 = vadd.f32 %v5716_v0, %v1273_v28  ;;  %4214 = vmatprep.mubr.f32.mxu0 %v1398_v26 }
 0x27f   : > { %v4142_v31 = vpop.f32.mrf.mxu1  ;;  %4215 = vmatmul.mubr.f32.gmra.mxu0 %v1399_v23 }
 0x280   : > { %3081 = vst [vmem:[%s5721_s28 + $0x48] sm:$0xff] %v1401_v29  ;;  %v1400_v32 = vmax.f32 %v1274_v30, 0.0  ;;  %v1289_v33 = vadd.f32 %v4142_v31, %v5716_v0 }
 0x281   : > { %v1283_v34 = vpop.f32.mrf.mxu1 }
 0x282   : > { %3080 = vst [vmem:[%s5721_s28 + $0x40] sm:$0xff] %v1400_v32  ;;  %v1403_v35 = vmax.f32 %v1289_v33, 0.0  ;;  %v1284_v36 = vadd.f32 %v5716_v0, %v1283_v34  ;;  %4217 = vmatprep.mubr.f32.mxu0 %v1400_v32 }
 0x283   : > { %v4145_v37 = vpop.f32.mrf.mxu1  ;;  %4218 = vmatmul.mubr.f32.gmra.mxu0 %v1401_v29 }
 0x284   : > { %3083 = vst [vmem:[%s5721_s28 + $0x58] sm:$0xff] %v1403_v35  ;;  %v1402_v38 = vmax.f32 %v1284_v36, 0.0  ;;  %v1299_v39 = vadd.f32 %v4145_v37, %v5716_v0  ;;  %v1967_v36 = vld [vmem:[#allocation11 + $0x78] sm:$0xff]  ;;  %v1966_v37 = vld [vmem:[#allocation11 + $0x70] sm:$0xff] }
 0x285   : > { %v1293_v40 = vpop.f32.mrf.mxu1  ;;  %4333 = vmatprep.subr.mxu0 %v1967_v36 }
 0x286   : > { %3082 = vst [vmem:[%s5721_s28 + $0x50] sm:$0xff] %v1402_v38  ;;  %v1405_v41 = vmax.f32 %v1299_v39, 0.0  ;;  %v1294_v42 = vadd.f32 %v5716_v0, %v1293_v40  ;;  %4220 = vmatprep.mubr.f32.mxu0 %v1402_v38  ;;  %4334 = vmatpush3.msra.mxu0 %v1967_v36  ;;  %v1965_v38 = vld [vmem:[#allocation11 + $0x68] sm:$0xff]  ;;  %v1964_v39 = vld [vmem:[#allocation11 + $0x60] sm:$0xff]  ;;  %v1962_v40 = vld [vmem:[#allocation11 + $0x50] sm:$0xff] }
 0x287   : > { %v4148_v43 = vpop.f32.mrf.mxu1  ;;  %4221 = vmatmul.mubr.f32.gmra.mxu0 %v1403_v35  ;;  %v1704_v35 = vld [vmem:[#allocation10] sm:$0xff]  ;;  %4335 = vmatprep.subr.mxu0 %v1966_v37 }
 0x288   : > { %3085 = vst [vmem:[%s5721_s28 + $0x68] sm:$0xff] %v1405_v41  ;;  %v1404_v44 = vmax.f32 %v1294_v42, 0.0  ;;  %v1309_v45 = vadd.f32 %v4148_v43, %v5716_v0  ;;  %4283 = vmatprep.subr.mxu1 %v1704_v35  ;;  %4336 = vmatpush3.msra.mxu0 %v1966_v37  ;;  %v1960_v42 = vld [vmem:[#allocation11 + $0x40] sm:$0xff]  ;;  %v1959_v43 = vld [vmem:[#allocation11 + $0x38] sm:$0xff] }
 0x289   : > { %v1303_v46 = vpop.f32.mrf.mxu1  ;;  %4284 = vmatpush3.msra.mxu1 %v1704_v35  ;;  %4337 = vmatprep.subr.mxu0 %v1965_v38 }
 0x28a   : > { %3084 = vst [vmem:[%s5721_s28 + $0x60] sm:$0xff] %v1404_v44  ;;  %v1407_v47 = vmax.f32 %v1309_v45, 0.0  ;;  %v1304_v48 = vadd.f32 %v5716_v0, %v1303_v46  ;;  %4223 = vmatprep.mubr.f32.mxu0 %v1404_v44  ;;  %4338 = vmatpush3.msra.mxu0 %v1965_v38  ;;  %v1958_v44 = vld [vmem:[#allocation11 + $0x30] sm:$0xff]  ;;  %v1957_v45 = vld [vmem:[#allocation11 + $0x28] sm:$0xff]  ;;  %v1956_v46 = vld [vmem:[#allocation11 + $0x20] sm:$0xff] }
 0x28b   : > { %v4151_v49 = vpop.f32.mrf.mxu1  ;;  %4224 = vmatmul.mubr.f32.gmra.mxu0 %v1405_v41  ;;  %4339 = vmatprep.subr.mxu0 %v1964_v39  ;;  %v1961_v41 = vld [vmem:[#allocation11 + $0x48] sm:$0xff] }
 0x28c   : > { %3087 = vst [vmem:[%s5721_s28 + $0x78] sm:$0xff] %v1407_v47  ;;  %v1406_v50 = vmax.f32 %v1304_v48, 0.0  ;;  %v1319_v51 = vadd.f32 %v4151_v49, %v5716_v0  ;;  %4340 = vmatpush3.msra.mxu0 %v1964_v39  ;;  %v1954_v48 = vld [vmem:[#allocation11 + $0x10] sm:$0xff]  ;;  %v1953_v49 = vld [vmem:[#allocation11 + $0x8] sm:$0xff] }
 0x28d   : > { %v1313_v52 = vpop.f32.mrf.mxu1 }
 0x28e   : > { %3086 = vst [vmem:[%s5721_s28 + $0x70] sm:$0xff] %v1406_v50  ;;  %v1409_v53 = vmax.f32 %v1319_v51, 0.0  ;;  %v1314_v15 = vadd.f32 %v5716_v0, %v1313_v52  ;;  %4226 = vmatprep.mubr.f32.mxu0 %v1406_v50  ;;  %v5788_v50 = vld [vmem:[%s6383_s6] ss:$0 sm:$0xff] }
 0x28f   : > { %v4154_v54 = vpop.f32.mrf.mxu1  ;;  %4227 = vmatmul.mubr.f32.gmra.mxu0 %v1407_v47  ;;  %v1955_v47 = vld [vmem:[#allocation11 + $0x18] sm:$0xff] }
 0x290   : > { %3089 = vst [vmem:[%s5721_s28 + $0x88] sm:$0xff] %v1409_v53  ;;  %v1408_v55 = vmax.f32 %v1314_v15, 0.0  ;;  %v1329_v56 = vadd.f32 %v4154_v54, %v5716_v0 }
 0x291   : > { %v1323_v57 = vpop.f32.mrf.mxu1 }
 0x292   : > { %3088 = vst [vmem:[%s5721_s28 + $0x80] sm:$0xff] %v1408_v55  ;;  %v1411_v58 = vmax.f32 %v1329_v56, 0.0  ;;  %v1324_v59 = vadd.f32 %v5716_v0, %v1323_v57  ;;  %4229 = vmatprep.mubr.f32.mxu0 %v1408_v55 }
 0x293   : > { %v4157_v60 = vpop.f32.mrf.mxu1  ;;  %4230 = vmatmul.mubr.f32.gmra.mxu0 %v1409_v53 }
 0x294   : > { %3091 = vst [vmem:[%s5721_s28 + $0x98] sm:$0xff] %v1411_v58  ;;  %v1410_v61 = vmax.f32 %v1324_v59, 0.0  ;;  %v1339_v62 = vadd.f32 %v4157_v60, %v5716_v0 }
 0x295   : > { %v1333_v63 = vpop.f32.mrf.mxu1 }
 0x296   : > { %3090 = vst [vmem:[%s5721_s28 + $0x90] sm:$0xff] %v1410_v61  ;;  %v1413_v1 = vmax.f32 %v1339_v62, 0.0  ;;  %v1334_v2 = vadd.f32 %v5716_v0, %v1333_v63  ;;  %4232 = vmatprep.mubr.f32.mxu0 %v1410_v61 }
 0x297   : > { %v4160_v3 = vpop.f32.mrf.mxu1  ;;  %4233 = vmatmul.mubr.f32.gmra.mxu0 %v1411_v58 }
 0x298   : > { %3093 = vst [vmem:[%s5721_s28 + $0xa8] sm:$0xff] %v1413_v1  ;;  %v1412_v4 = vmax.f32 %v1334_v2, 0.0  ;;  %v1349_v5 = vadd.f32 %v4160_v3, %v5716_v0 }
 0x299   : > { %v1343_v6 = vpop.f32.mrf.mxu1 }
 0x29a   : > { %3092 = vst [vmem:[%s5721_s28 + $0xa0] sm:$0xff] %v1412_v4  ;;  %v1415_v7 = vmax.f32 %v1349_v5, 0.0  ;;  %v1344_v8 = vadd.f32 %v5716_v0, %v1343_v6  ;;  %4235 = vmatprep.mubr.f32.mxu0 %v1412_v4 }
 0x29b   : > { %v4163_v9 = vpop.f32.mrf.mxu1  ;;  %4236 = vmatmul.mubr.f32.gmra.mxu0 %v1413_v1 }
 0x29c   : > { %3095 = vst [vmem:[%s5721_s28 + $0xb8] sm:$0xff] %v1415_v7  ;;  %v1414_v10 = vmax.f32 %v1344_v8, 0.0  ;;  %v1359_v11 = vadd.f32 %v4163_v9, %v5716_v0 }
 0x29d   : > { %v1353_v12 = vpop.f32.mrf.mxu1 }
 0x29e   : > { %3094 = vst [vmem:[%s5721_s28 + $0xb0] sm:$0xff] %v1414_v10  ;;  %v1417_v13 = vmax.f32 %v1359_v11, 0.0  ;;  %v1354_v14 = vadd.f32 %v5716_v0, %v1353_v12  ;;  %4238 = vmatprep.mubr.f32.mxu0 %v1414_v10 }
 0x29f   : > { %v4166_v16 = vpop.f32.mrf.mxu1  ;;  %4239 = vmatmul.mubr.f32.gmra.mxu0 %v1415_v7 }
 0x2a0   : > { %3097 = vst [vmem:[%s5721_s28 + $0xc8] sm:$0xff] %v1417_v13  ;;  %v1416_v17 = vmax.f32 %v1354_v14, 0.0  ;;  %v1369_v18 = vadd.f32 %v4166_v16, %v5716_v0 }
 0x2a1   : > { %v1363_v19 = vpop.f32.mrf.mxu1 }
 0x2a2   : > { %3096 = vst [vmem:[%s5721_s28 + $0xc0] sm:$0xff] %v1416_v17  ;;  %v1419_v20 = vmax.f32 %v1369_v18, 0.0  ;;  %v1364_v21 = vadd.f32 %v5716_v0, %v1363_v19  ;;  %4241 = vmatprep.mubr.f32.mxu0 %v1416_v17 }
 0x2a3   : > { %v4169_v22 = vpop.f32.mrf.mxu1  ;;  %4242 = vmatmul.mubr.f32.gmra.mxu0 %v1417_v13 }
 0x2a4   : > { %3099 = vst [vmem:[%s5721_s28 + $0xd8] sm:$0xff] %v1419_v20  ;;  %v1418_v23 = vmax.f32 %v1364_v21, 0.0  ;;  %v1379_v24 = vadd.f32 %v4169_v22, %v5716_v0 }
 0x2a5   : > { %v1373_v25 = vpop.f32.mrf.mxu1 }
 0x2a6   : > { %3098 = vst [vmem:[%s5721_s28 + $0xd0] sm:$0xff] %v1418_v23  ;;  %v1421_v26 = vmax.f32 %v1379_v24, 0.0  ;;  %v1374_v27 = vadd.f32 %v5716_v0, %v1373_v25  ;;  %4244 = vmatprep.mubr.f32.mxu0 %v1418_v23 }
 0x2a7   : > { %v4172_v28 = vpop.f32.mrf.mxu1  ;;  %4245 = vmatmul.mubr.f32.gmra.mxu0 %v1419_v20 }
 0x2a8   : > { %3101 = vst [vmem:[%s5721_s28 + $0xe8] sm:$0xff] %v1421_v26  ;;  %v1420_v29 = vmax.f32 %v1374_v27, 0.0  ;;  %v1389_v30 = vadd.f32 %v4172_v28, %v5716_v0 }
 0x2a9   : > { %v1383_v31 = vpop.f32.mrf.mxu1 }
 0x2aa   : > { %3100 = vst [vmem:[%s5721_s28 + $0xe0] sm:$0xff] %v1420_v29  ;;  %v1423_v32 = vmax.f32 %v1389_v30, 0.0  ;;  %v1384_v33 = vadd.f32 %v5716_v0, %v1383_v31  ;;  %4247 = vmatprep.mubr.f32.mxu0 %v1420_v29  ;;  %v1963_v0 = vld [vmem:[#allocation11 + $0x58] sm:$0xff] }
 0x2ab   : > { %4248 = vmatmul.mubr.f32.gmra.mxu0 %v1421_v26  ;;  %4341 = vmatprep.subr.mxu0 %v1963_v0 }
 0x2ac   : > { %3103 = vst [vmem:[%s5721_s28 + $0xf8] sm:$0xff] %v1423_v32  ;;  %v1422_v34 = vmax.f32 %v1384_v33, 0.0  ;;  %4342 = vmatpush3.msra.mxu0 %v1963_v0 }
 0x2ad   : > { %4343 = vmatprep.subr.mxu0 %v1962_v40 }
 0x2ae   : > { %3102 = vst [vmem:[%s5721_s28 + $0xf0] sm:$0xff] %v1422_v34  ;;  %4250 = vmatprep.mubr.f32.mxu0 %v1422_v34  ;;  %4344 = vmatpush3.msra.mxu0 %v1962_v40 }
 0x2af   : > { %4251 = vmatmul.mubr.f32.gmra.mxu0 %v1423_v32  ;;  %4345 = vmatprep.subr.mxu0 %v1961_v41 }
 0x2b0   : > { %4346 = vmatpush3.msra.mxu0 %v1961_v41 }
 0x2b1   : > { %4347 = vmatprep.subr.mxu0 %v1960_v42 }
 0x2b2   : > { %4348 = vmatpush3.msra.mxu0 %v1960_v42 }
 0x2b3   : > { %4349 = vmatprep.subr.mxu0 %v1959_v43 }
 0x2b4   : > { %4350 = vmatpush3.msra.mxu0 %v1959_v43 }
 0x2b5   : > { %4351 = vmatprep.subr.mxu0 %v1958_v44 }
 0x2b6   : > { %4352 = vmatpush3.msra.mxu0 %v1958_v44 }
 0x2b7   : > { %4353 = vmatprep.subr.mxu0 %v1957_v45 }
 0x2b8   : > { %4354 = vmatpush3.msra.mxu0 %v1957_v45 }
 0x2b9   : > { %4355 = vmatprep.subr.mxu0 %v1956_v46 }
 0x2ba   : > { %4356 = vmatpush3.msra.mxu0 %v1956_v46 }
 0x2bb   : > { %4357 = vmatprep.subr.mxu0 %v1955_v47 }
 0x2bc   : > { %4358 = vmatpush3.msra.mxu0 %v1955_v47 }
 0x2bd   : > { %4359 = vmatprep.subr.mxu0 %v1954_v48 }
 0x2be   : > { %4360 = vmatpush3.msra.mxu0 %v1954_v48 }
 0x2bf   : > { %4361 = vmatprep.subr.mxu0 %v1953_v49 }
 0x2c0   : > { %4362 = vmatpush3.msra.mxu0 %v1953_v49 }
 0x333   : > { %v4207_v51 = vpop.f32.mrf.mxu0 }
 0x334   : > { %v1519_v52 = vadd.f32 %v4207_v51, %v5788_v50 }
 0x335   : > { %v1513_v53 = vpop.f32.mrf.mxu0 }
 0x336   : > { %v1673_v15 = vmax.f32 %v1519_v52, 0.0  ;;  %v1514_v54 = vadd.f32 %v5788_v50, %v1513_v53 }
 0x337   : > { %v4210_v55 = vpop.f32.mrf.mxu0 }
 0x338   : > { %3105 = vst [vmem:[%s5793_s16 + $0x8] sm:$0xff] %v1673_v15  ;;  %v1672_v56 = vmax.f32 %v1514_v54, 0.0  ;;  %v1529_v57 = vadd.f32 %v4210_v55, %v5788_v50 }
 0x339   : > { %v1523_v58 = vpop.f32.mrf.mxu0 }
 0x33a   : > { %3104 = vst [vmem:[%s5793_s16] sm:$0xff] %v1672_v56  ;;  %v1675_v59 = vmax.f32 %v1529_v57, 0.0  ;;  %v1524_v60 = vadd.f32 %v5788_v50, %v1523_v58  ;;  %4285 = vmatprep.mubr.f32.mxu1 %v1672_v56 }
 0x33b   : > { %v4213_v61 = vpop.f32.mrf.mxu0  ;;  %4286 = vmatmul.mubr.f32.vlgmr.msra.gmra.mxu1 %v1673_v15 }
 0x33c   : > { %3107 = vst [vmem:[%s5793_s16 + $0x18] sm:$0xff] %v1675_v59  ;;  %v1674_v62 = vmax.f32 %v1524_v60, 0.0  ;;  %v1539_v63 = vadd.f32 %v4213_v61, %v5788_v50 }
 0x33d   : > { %v1533_v1 = vpop.f32.mrf.mxu0 }
 0x33e   : > { %3106 = vst [vmem:[%s5793_s16 + $0x10] sm:$0xff] %v1674_v62  ;;  %v1677_v2 = vmax.f32 %v1539_v63, 0.0  ;;  %v1534_v3 = vadd.f32 %v5788_v50, %v1533_v1  ;;  %4288 = vmatprep.mubr.f32.mxu1 %v1674_v62 }
 0x33f   : > { %v4216_v4 = vpop.f32.mrf.mxu0  ;;  %4289 = vmatmul.mubr.f32.gmra.mxu1 %v1675_v59 }
 0x340   : > { %3109 = vst [vmem:[%s5793_s16 + $0x28] sm:$0xff] %v1677_v2  ;;  %v1676_v5 = vmax.f32 %v1534_v3, 0.0  ;;  %v1549_v6 = vadd.f32 %v4216_v4, %v5788_v50 }
 0x341   : > { %v1543_v7 = vpop.f32.mrf.mxu0 }
 0x342   : > { %3108 = vst [vmem:[%s5793_s16 + $0x20] sm:$0xff] %v1676_v5  ;;  %v1679_v8 = vmax.f32 %v1549_v6, 0.0  ;;  %v1544_v9 = vadd.f32 %v5788_v50, %v1543_v7  ;;  %4291 = vmatprep.mubr.f32.mxu1 %v1676_v5 }
 0x343   : > { %v4219_v10 = vpop.f32.mrf.mxu0  ;;  %4292 = vmatmul.mubr.f32.gmra.mxu1 %v1677_v2 }
 0x344   : > { %3111 = vst [vmem:[%s5793_s16 + $0x38] sm:$0xff] %v1679_v8  ;;  %v1678_v11 = vmax.f32 %v1544_v9, 0.0  ;;  %v1559_v12 = vadd.f32 %v4219_v10, %v5788_v50 }
 0x345   : > { %v1553_v13 = vpop.f32.mrf.mxu0 }
 0x346   : > { %3110 = vst [vmem:[%s5793_s16 + $0x30] sm:$0xff] %v1678_v11  ;;  %v1681_v14 = vmax.f32 %v1559_v12, 0.0  ;;  %v1554_v16 = vadd.f32 %v5788_v50, %v1553_v13  ;;  %4294 = vmatprep.mubr.f32.mxu1 %v1678_v11 }
 0x347   : > { %v4222_v17 = vpop.f32.mrf.mxu0  ;;  %4295 = vmatmul.mubr.f32.gmra.mxu1 %v1679_v8 }
 0x348   : > { %3113 = vst [vmem:[%s5793_s16 + $0x48] sm:$0xff] %v1681_v14  ;;  %v1680_v18 = vmax.f32 %v1554_v16, 0.0  ;;  %v1569_v19 = vadd.f32 %v4222_v17, %v5788_v50 }
 0x349   : > { %v1563_v20 = vpop.f32.mrf.mxu0 }
 0x34a   : > { %3112 = vst [vmem:[%s5793_s16 + $0x40] sm:$0xff] %v1680_v18  ;;  %v1683_v21 = vmax.f32 %v1569_v19, 0.0  ;;  %v1564_v22 = vadd.f32 %v5788_v50, %v1563_v20  ;;  %4297 = vmatprep.mubr.f32.mxu1 %v1680_v18 }
 0x34b   : > { %v4225_v23 = vpop.f32.mrf.mxu0  ;;  %4298 = vmatmul.mubr.f32.gmra.mxu1 %v1681_v14 }
 0x34c   : > { %3115 = vst [vmem:[%s5793_s16 + $0x58] sm:$0xff] %v1683_v21  ;;  %v1682_v24 = vmax.f32 %v1564_v22, 0.0  ;;  %v1579_v25 = vadd.f32 %v4225_v23, %v5788_v50  ;;  %v2247_v22 = vld [vmem:[#allocation13 + $0x78] sm:$0xff]  ;;  %v2246_v23 = vld [vmem:[#allocation13 + $0x70] sm:$0xff] }
 0x34d   : > { %v1573_v26 = vpop.f32.mrf.mxu0  ;;  %4413 = vmatprep.subr.mxu1 %v2247_v22 }
 0x34e   : > { %3114 = vst [vmem:[%s5793_s16 + $0x50] sm:$0xff] %v1682_v24  ;;  %v1685_v27 = vmax.f32 %v1579_v25, 0.0  ;;  %v1574_v28 = vadd.f32 %v5788_v50, %v1573_v26  ;;  %4300 = vmatprep.mubr.f32.mxu1 %v1682_v24  ;;  %4414 = vmatpush3.msra.mxu1 %v2247_v22  ;;  %v2245_v24 = vld [vmem:[#allocation13 + $0x68] sm:$0xff]  ;;  %v2244_v25 = vld [vmem:[#allocation13 + $0x60] sm:$0xff]  ;;  %v2242_v26 = vld [vmem:[#allocation13 + $0x50] sm:$0xff] }
 0x34f   : > { %v4228_v29 = vpop.f32.mrf.mxu0  ;;  %4301 = vmatmul.mubr.f32.gmra.mxu1 %v1683_v21  ;;  %v1952_v21 = vld [vmem:[#allocation11] sm:$0xff]  ;;  %4415 = vmatprep.subr.mxu1 %v2246_v23 }
 0x350   : > { %3117 = vst [vmem:[%s5793_s16 + $0x68] sm:$0xff] %v1685_v27  ;;  %v1684_v30 = vmax.f32 %v1574_v28, 0.0  ;;  %v1589_v31 = vadd.f32 %v4228_v29, %v5788_v50  ;;  %4363 = vmatprep.subr.mxu0 %v1952_v21  ;;  %4416 = vmatpush3.msra.mxu1 %v2246_v23  ;;  %v2240_v28 = vld [vmem:[#allocation13 + $0x40] sm:$0xff]  ;;  %v2239_v29 = vld [vmem:[#allocation13 + $0x38] sm:$0xff] }
 0x351   : > { %v1583_v32 = vpop.f32.mrf.mxu0  ;;  %4364 = vmatpush3.msra.mxu0 %v1952_v21  ;;  %4417 = vmatprep.subr.mxu1 %v2245_v24 }
 0x352   : > { %3116 = vst [vmem:[%s5793_s16 + $0x60] sm:$0xff] %v1684_v30  ;;  %v1687_v33 = vmax.f32 %v1589_v31, 0.0  ;;  %v1584_v34 = vadd.f32 %v5788_v50, %v1583_v32  ;;  %4303 = vmatprep.mubr.f32.mxu1 %v1684_v30  ;;  %4418 = vmatpush3.msra.mxu1 %v2245_v24  ;;  %v2238_v30 = vld [vmem:[#allocation13 + $0x30] sm:$0xff]  ;;  %v2237_v31 = vld [vmem:[#allocation13 + $0x28] sm:$0xff]  ;;  %v2236_v32 = vld [vmem:[#allocation13 + $0x20] sm:$0xff] }
 0x353   : > { %v4231_v35 = vpop.f32.mrf.mxu0  ;;  %4304 = vmatmul.mubr.f32.gmra.mxu1 %v1685_v27  ;;  %4419 = vmatprep.subr.mxu1 %v2244_v25  ;;  %v2241_v27 = vld [vmem:[#allocation13 + $0x48] sm:$0xff] }
 0x354   : > { %3119 = vst [vmem:[%s5793_s16 + $0x78] sm:$0xff] %v1687_v33  ;;  %v1686_v36 = vmax.f32 %v1584_v34, 0.0  ;;  %v1599_v37 = vadd.f32 %v4231_v35, %v5788_v50  ;;  %4420 = vmatpush3.msra.mxu1 %v2244_v25  ;;  %v2234_v34 = vld [vmem:[#allocation13 + $0x10] sm:$0xff]  ;;  %v2233_v35 = vld [vmem:[#allocation13 + $0x8] sm:$0xff] }
 0x355   : > { %v1593_v38 = vpop.f32.mrf.mxu0 }
 0x356   : > { %3118 = vst [vmem:[%s5793_s16 + $0x70] sm:$0xff] %v1686_v36  ;;  %v1689_v39 = vmax.f32 %v1599_v37, 0.0  ;;  %v1594_v0 = vadd.f32 %v5788_v50, %v1593_v38  ;;  %4306 = vmatprep.mubr.f32.mxu1 %v1686_v36  ;;  %v5860_v36 = vld [vmem:[%s6384_s8] ss:$0 sm:$0xff] }
 0x357   : > { %v4234_v40 = vpop.f32.mrf.mxu0  ;;  %4307 = vmatmul.mubr.f32.gmra.mxu1 %v1687_v33  ;;  %v2235_v33 = vld [vmem:[#allocation13 + $0x18] sm:$0xff] }
 0x358   : > { %3121 = vst [vmem:[%s5793_s16 + $0x88] sm:$0xff] %v1689_v39  ;;  %v1688_v41 = vmax.f32 %v1594_v0, 0.0  ;;  %v1609_v42 = vadd.f32 %v4234_v40, %v5788_v50 }
 0x359   : > { %v1603_v43 = vpop.f32.mrf.mxu0 }
 0x35a   : > { %3120 = vst [vmem:[%s5793_s16 + $0x80] sm:$0xff] %v1688_v41  ;;  %v1691_v44 = vmax.f32 %v1609_v42, 0.0  ;;  %v1604_v45 = vadd.f32 %v5788_v50, %v1603_v43  ;;  %4309 = vmatprep.mubr.f32.mxu1 %v1688_v41 }
 0x35b   : > { %v4237_v46 = vpop.f32.mrf.mxu0  ;;  %4310 = vmatmul.mubr.f32.gmra.mxu1 %v1689_v39 }
 0x35c   : > { %3123 = vst [vmem:[%s5793_s16 + $0x98] sm:$0xff] %v1691_v44  ;;  %v1690_v47 = vmax.f32 %v1604_v45, 0.0  ;;  %v1619_v48 = vadd.f32 %v4237_v46, %v5788_v50 }
 0x35d   : > { %v1613_v49 = vpop.f32.mrf.mxu0 }
 0x35e   : > { %3122 = vst [vmem:[%s5793_s16 + $0x90] sm:$0xff] %v1690_v47  ;;  %v1693_v51 = vmax.f32 %v1619_v48, 0.0  ;;  %v1614_v52 = vadd.f32 %v5788_v50, %v1613_v49  ;;  %4312 = vmatprep.mubr.f32.mxu1 %v1690_v47 }
 0x35f   : > { %v4240_v53 = vpop.f32.mrf.mxu0  ;;  %4313 = vmatmul.mubr.f32.gmra.mxu1 %v1691_v44 }
 0x360   : > { %3125 = vst [vmem:[%s5793_s16 + $0xa8] sm:$0xff] %v1693_v51  ;;  %v1692_v15 = vmax.f32 %v1614_v52, 0.0  ;;  %v1629_v54 = vadd.f32 %v4240_v53, %v5788_v50 }
 0x361   : > { %v1623_v55 = vpop.f32.mrf.mxu0 }
 0x362   : > { %3124 = vst [vmem:[%s5793_s16 + $0xa0] sm:$0xff] %v1692_v15  ;;  %v1695_v56 = vmax.f32 %v1629_v54, 0.0  ;;  %v1624_v57 = vadd.f32 %v5788_v50, %v1623_v55  ;;  %4315 = vmatprep.mubr.f32.mxu1 %v1692_v15 }
 0x363   : > { %v4243_v58 = vpop.f32.mrf.mxu0  ;;  %4316 = vmatmul.mubr.f32.gmra.mxu1 %v1693_v51 }
 0x364   : > { %3127 = vst [vmem:[%s5793_s16 + $0xb8] sm:$0xff] %v1695_v56  ;;  %v1694_v59 = vmax.f32 %v1624_v57, 0.0  ;;  %v1639_v60 = vadd.f32 %v4243_v58, %v5788_v50 }
 0x365   : > { %v1633_v61 = vpop.f32.mrf.mxu0 }
 0x366   : > { %3126 = vst [vmem:[%s5793_s16 + $0xb0] sm:$0xff] %v1694_v59  ;;  %v1697_v62 = vmax.f32 %v1639_v60, 0.0  ;;  %v1634_v63 = vadd.f32 %v5788_v50, %v1633_v61  ;;  %4318 = vmatprep.mubr.f32.mxu1 %v1694_v59 }
 0x367   : > { %v4246_v1 = vpop.f32.mrf.mxu0  ;;  %4319 = vmatmul.mubr.f32.gmra.mxu1 %v1695_v56 }
 0x368   : > { %3129 = vst [vmem:[%s5793_s16 + $0xc8] sm:$0xff] %v1697_v62  ;;  %v1696_v2 = vmax.f32 %v1634_v63, 0.0  ;;  %v1649_v3 = vadd.f32 %v4246_v1, %v5788_v50 }
 0x369   : > { %v1643_v4 = vpop.f32.mrf.mxu0 }
 0x36a   : > { %3128 = vst [vmem:[%s5793_s16 + $0xc0] sm:$0xff] %v1696_v2  ;;  %v1699_v5 = vmax.f32 %v1649_v3, 0.0  ;;  %v1644_v6 = vadd.f32 %v5788_v50, %v1643_v4  ;;  %4321 = vmatprep.mubr.f32.mxu1 %v1696_v2 }
 0x36b   : > { %v4249_v7 = vpop.f32.mrf.mxu0  ;;  %4322 = vmatmul.mubr.f32.gmra.mxu1 %v1697_v62 }
 0x36c   : > { %3131 = vst [vmem:[%s5793_s16 + $0xd8] sm:$0xff] %v1699_v5  ;;  %v1698_v8 = vmax.f32 %v1644_v6, 0.0  ;;  %v1659_v9 = vadd.f32 %v4249_v7, %v5788_v50 }
 0x36d   : > { %v1653_v10 = vpop.f32.mrf.mxu0 }
 0x36e   : > { %3130 = vst [vmem:[%s5793_s16 + $0xd0] sm:$0xff] %v1698_v8  ;;  %v1701_v11 = vmax.f32 %v1659_v9, 0.0  ;;  %v1654_v12 = vadd.f32 %v5788_v50, %v1653_v10  ;;  %4324 = vmatprep.mubr.f32.mxu1 %v1698_v8 }
 0x36f   : > { %v4252_v13 = vpop.f32.mrf.mxu0  ;;  %4325 = vmatmul.mubr.f32.gmra.mxu1 %v1699_v5 }
 0x370   : > { %3133 = vst [vmem:[%s5793_s16 + $0xe8] sm:$0xff] %v1701_v11  ;;  %v1700_v14 = vmax.f32 %v1654_v12, 0.0  ;;  %v1669_v16 = vadd.f32 %v4252_v13, %v5788_v50 }
 0x371   : > { %v1663_v17 = vpop.f32.mrf.mxu0 }
 0x372   : > { %3132 = vst [vmem:[%s5793_s16 + $0xe0] sm:$0xff] %v1700_v14  ;;  %v1703_v18 = vmax.f32 %v1669_v16, 0.0  ;;  %v1664_v19 = vadd.f32 %v5788_v50, %v1663_v17  ;;  %4327 = vmatprep.mubr.f32.mxu1 %v1700_v14  ;;  %v2243_v50 = vld [vmem:[#allocation13 + $0x58] sm:$0xff] }
 0x373   : > { %4328 = vmatmul.mubr.f32.gmra.mxu1 %v1701_v11  ;;  %4421 = vmatprep.subr.mxu1 %v2243_v50 }
 0x374   : > { %3135 = vst [vmem:[%s5793_s16 + $0xf8] sm:$0xff] %v1703_v18  ;;  %v1702_v20 = vmax.f32 %v1664_v19, 0.0  ;;  %4422 = vmatpush3.msra.mxu1 %v2243_v50 }
 0x375   : > { %4423 = vmatprep.subr.mxu1 %v2242_v26 }
 0x376   : > { %3134 = vst [vmem:[%s5793_s16 + $0xf0] sm:$0xff] %v1702_v20  ;;  %4330 = vmatprep.mubr.f32.mxu1 %v1702_v20  ;;  %4424 = vmatpush3.msra.mxu1 %v2242_v26 }
 0x377   : > { %4331 = vmatmul.mubr.f32.gmra.mxu1 %v1703_v18  ;;  %4425 = vmatprep.subr.mxu1 %v2241_v27 }
 0x378   : > { %4426 = vmatpush3.msra.mxu1 %v2241_v27 }
 0x379   : > { %4427 = vmatprep.subr.mxu1 %v2240_v28 }
 0x37a   : > { %4428 = vmatpush3.msra.mxu1 %v2240_v28 }
 0x37b   : > { %4429 = vmatprep.subr.mxu1 %v2239_v29 }
 0x37c   : > { %4430 = vmatpush3.msra.mxu1 %v2239_v29 }
 0x37d   : > { %4431 = vmatprep.subr.mxu1 %v2238_v30 }
 0x37e   : > { %4432 = vmatpush3.msra.mxu1 %v2238_v30 }
 0x37f   : > { %4433 = vmatprep.subr.mxu1 %v2237_v31 }
 0x380   : > { %4434 = vmatpush3.msra.mxu1 %v2237_v31 }
 0x381   : > { %4435 = vmatprep.subr.mxu1 %v2236_v32 }
 0x382   : > { %4436 = vmatpush3.msra.mxu1 %v2236_v32 }
 0x383   : > { %4437 = vmatprep.subr.mxu1 %v2235_v33 }
 0x384   : > { %4438 = vmatpush3.msra.mxu1 %v2235_v33 }
 0x385   : > { %4439 = vmatprep.subr.mxu1 %v2234_v34 }
 0x386   : > { %4440 = vmatpush3.msra.mxu1 %v2234_v34 }
 0x387   : > { %4441 = vmatprep.subr.mxu1 %v2233_v35 }
 0x388   : > { %4442 = vmatpush3.msra.mxu1 %v2233_v35 }
 0x3fb   : > { %v4287_v37 = vpop.f32.mrf.mxu1 }
 0x3fc   : > { %v1799_v38 = vadd.f32 %v4287_v37, %v5860_v36 }
 0x3fd   : > { %v1793_v39 = vpop.f32.mrf.mxu1 }
 0x3fe   : > { %3137 = vst [vmem:[%s5864_s7 + $0x8] sm:$0xff] %v1799_v38  ;;  %v1794_v0 = vadd.f32 %v5860_v36, %v1793_v39  ;;  %v2527_v39 = vld [vmem:[#allocation14 + $0x78] sm:$0xff] }
 0x3ff   : > { %v4290_v40 = vpop.f32.mrf.mxu1  ;;  %4493 = vmatprep.subr.mxu0 %v2527_v39 }
 0x400   : > { %3136 = vst [vmem:[%s5864_s7] sm:$0xff] %v1794_v0  ;;  %v1809_v41 = vadd.f32 %v4290_v40, %v5860_v36  ;;  %4365 = vmatprep.mubr.f32.mxu0 %v1794_v0  ;;  %v2526_v0 = vld [vmem:[#allocation14 + $0x70] sm:$0xff]  ;;  %v2525_v40 = vld [vmem:[#allocation14 + $0x68] sm:$0xff] }
 0x401   : > { %v1803_v42 = vpop.f32.mrf.mxu1  ;;  %4366 = vmatmul.mubr.f32.vlgmr.msra.gmra.mxu0 %v1799_v38  ;;  %v2232_v38 = vld [vmem:[#allocation13] sm:$0xff] }
 0x402   : > { %3139 = vst [vmem:[%s5864_s7 + $0x18] sm:$0xff] %v1809_v41  ;;  %v1804_v43 = vadd.f32 %v5860_v36, %v1803_v42  ;;  %4443 = vmatprep.subr.mxu1 %v2232_v38  ;;  %4494 = vmatpush3.msra.mxu0 %v2527_v39  ;;  %v2523_v42 = vld [vmem:[#allocation14 + $0x58] sm:$0xff] }
 0x403   : > { %v4293_v44 = vpop.f32.mrf.mxu1  ;;  %4444 = vmatpush3.msra.mxu1 %v2232_v38  ;;  %4495 = vmatprep.subr.mxu0 %v2526_v0 }
 0x404   : > { %3138 = vst [vmem:[%s5864_s7 + $0x10] sm:$0xff] %v1804_v43  ;;  %v1819_v45 = vadd.f32 %v4293_v44, %v5860_v36  ;;  %4368 = vmatprep.mubr.f32.mxu0 %v1804_v43  ;;  %4496 = vmatpush3.msra.mxu0 %v2526_v0  ;;  %v2521_v43 = vld [vmem:[#allocation14 + $0x48] sm:$0xff]  ;;  %v2520_v44 = vld [vmem:[#allocation14 + $0x40] sm:$0xff] }
 0x405   : > { %v1813_v46 = vpop.f32.mrf.mxu1  ;;  %4369 = vmatmul.mubr.f32.gmra.mxu0 %v1809_v41  ;;  %v2524_v41 = vld [vmem:[#allocation14 + $0x60] sm:$0xff]  ;;  %4497 = vmatprep.subr.mxu0 %v2525_v40 }
 0x406   : > { %3141 = vst [vmem:[%s5864_s7 + $0x28] sm:$0xff] %v1819_v45  ;;  %v1814_v47 = vadd.f32 %v5860_v36, %v1813_v46  ;;  %4498 = vmatpush3.msra.mxu0 %v2525_v40  ;;  %v2518_v46 = vld [vmem:[#allocation14 + $0x30] sm:$0xff] }
 0x407   : > { %v4296_v48 = vpop.f32.mrf.mxu1  ;;  %4499 = vmatprep.subr.mxu0 %v2524_v41 }
 0x408   : > { %3140 = vst [vmem:[%s5864_s7 + $0x20] sm:$0xff] %v1814_v47  ;;  %v1829_v49 = vadd.f32 %v4296_v48, %v5860_v36  ;;  %4371 = vmatprep.mubr.f32.mxu0 %v1814_v47  ;;  %4500 = vmatpush3.msra.mxu0 %v2524_v41  ;;  %v2517_v47 = vld [vmem:[#allocation14 + $0x28] sm:$0xff]  ;;  %v2516_v48 = vld [vmem:[#allocation14 + $0x20] sm:$0xff] }
 0x409   : > { %v1823_v51 = vpop.f32.mrf.mxu1  ;;  %4372 = vmatmul.mubr.f32.gmra.mxu0 %v1819_v45  ;;  %4501 = vmatprep.subr.mxu0 %v2523_v42  ;;  %v2519_v45 = vld [vmem:[#allocation14 + $0x38] sm:$0xff] }
 0x40a   : > { %3143 = vst [vmem:[%s5864_s7 + $0x38] sm:$0xff] %v1829_v49  ;;  %v1824_v52 = vadd.f32 %v5860_v36, %v1823_v51  ;;  %4502 = vmatpush3.msra.mxu0 %v2523_v42  ;;  %v2514_v51 = vld [vmem:[#allocation14 + $0x10] sm:$0xff] }
 0x40b   : > { %v4299_v53 = vpop.f32.mrf.mxu1 }
 0x40c   : > { %3142 = vst [vmem:[%s5864_s7 + $0x30] sm:$0xff] %v1824_v52  ;;  %v1839_v15 = vadd.f32 %v4299_v53, %v5860_v36  ;;  %4374 = vmatprep.mubr.f32.mxu0 %v1824_v52  ;;  %v2513_v52 = vld [vmem:[#allocation14 + $0x8] sm:$0xff]  ;;  %v5932_v53 = vld [vmem:[%s6385_s10] ss:$0 sm:$0xff] }
 0x40d   : > { %v1833_v54 = vpop.f32.mrf.mxu1  ;;  %4375 = vmatmul.mubr.f32.gmra.mxu0 %v1829_v49  ;;  %v2515_v49 = vld [vmem:[#allocation14 + $0x18] sm:$0xff] }
 0x40e   : > { %3145 = vst [vmem:[%s5864_s7 + $0x48] sm:$0xff] %v1839_v15  ;;  %v1834_v55 = vadd.f32 %v5860_v36, %v1833_v54 }
 0x40f   : > { %v4302_v56 = vpop.f32.mrf.mxu1 }
 0x410   : > { %3144 = vst [vmem:[%s5864_s7 + $0x40] sm:$0xff] %v1834_v55  ;;  %v1849_v57 = vadd.f32 %v4302_v56, %v5860_v36  ;;  %4377 = vmatprep.mubr.f32.mxu0 %v1834_v55 }
 0x411   : > { %v1843_v58 = vpop.f32.mrf.mxu1  ;;  %4378 = vmatmul.mubr.f32.gmra.mxu0 %v1839_v15 }
 0x412   : > { %3147 = vst [vmem:[%s5864_s7 + $0x58] sm:$0xff] %v1849_v57  ;;  %v1844_v59 = vadd.f32 %v5860_v36, %v1843_v58 }
 0x413   : > { %v4305_v60 = vpop.f32.mrf.mxu1 }
 0x414   : > { %3146 = vst [vmem:[%s5864_s7 + $0x50] sm:$0xff] %v1844_v59  ;;  %v1859_v61 = vadd.f32 %v4305_v60, %v5860_v36  ;;  %4380 = vmatprep.mubr.f32.mxu0 %v1844_v59 }
 0x415   : > { %v1853_v62 = vpop.f32.mrf.mxu1  ;;  %4381 = vmatmul.mubr.f32.gmra.mxu0 %v1849_v57 }
 0x416   : > { %3149 = vst [vmem:[%s5864_s7 + $0x68] sm:$0xff] %v1859_v61  ;;  %v1854_v63 = vadd.f32 %v5860_v36, %v1853_v62 }
 0x417   : > { %v4308_v1 = vpop.f32.mrf.mxu1 }
 0x418   : > { %3148 = vst [vmem:[%s5864_s7 + $0x60] sm:$0xff] %v1854_v63  ;;  %v1869_v2 = vadd.f32 %v4308_v1, %v5860_v36  ;;  %4383 = vmatprep.mubr.f32.mxu0 %v1854_v63 }
 0x419   : > { %v1863_v3 = vpop.f32.mrf.mxu1  ;;  %4384 = vmatmul.mubr.f32.gmra.mxu0 %v1859_v61 }
 0x41a   : > { %3151 = vst [vmem:[%s5864_s7 + $0x78] sm:$0xff] %v1869_v2  ;;  %v1864_v4 = vadd.f32 %v5860_v36, %v1863_v3 }
 0x41b   : > { %v4311_v5 = vpop.f32.mrf.mxu1 }
 0x41c   : > { %3150 = vst [vmem:[%s5864_s7 + $0x70] sm:$0xff] %v1864_v4  ;;  %v1879_v6 = vadd.f32 %v4311_v5, %v5860_v36  ;;  %4386 = vmatprep.mubr.f32.mxu0 %v1864_v4 }
 0x41d   : > { %v1873_v7 = vpop.f32.mrf.mxu1  ;;  %4387 = vmatmul.mubr.f32.gmra.mxu0 %v1869_v2 }
 0x41e   : > { %3153 = vst [vmem:[%s5864_s7 + $0x88] sm:$0xff] %v1879_v6  ;;  %v1874_v8 = vadd.f32 %v5860_v36, %v1873_v7 }
 0x41f   : > { %v4314_v9 = vpop.f32.mrf.mxu1 }
 0x420   : > { %3152 = vst [vmem:[%s5864_s7 + $0x80] sm:$0xff] %v1874_v8  ;;  %v1889_v10 = vadd.f32 %v4314_v9, %v5860_v36  ;;  %4389 = vmatprep.mubr.f32.mxu0 %v1874_v8 }
 0x421   : > { %v1883_v11 = vpop.f32.mrf.mxu1  ;;  %4390 = vmatmul.mubr.f32.gmra.mxu0 %v1879_v6 }
 0x422   : > { %3155 = vst [vmem:[%s5864_s7 + $0x98] sm:$0xff] %v1889_v10  ;;  %v1884_v12 = vadd.f32 %v5860_v36, %v1883_v11 }
 0x423   : > { %v4317_v13 = vpop.f32.mrf.mxu1 }
 0x424   : > { %3154 = vst [vmem:[%s5864_s7 + $0x90] sm:$0xff] %v1884_v12  ;;  %v1899_v14 = vadd.f32 %v4317_v13, %v5860_v36  ;;  %4392 = vmatprep.mubr.f32.mxu0 %v1884_v12 }
 0x425   : > { %v1893_v16 = vpop.f32.mrf.mxu1  ;;  %4393 = vmatmul.mubr.f32.gmra.mxu0 %v1889_v10 }
 0x426   : > { %3157 = vst [vmem:[%s5864_s7 + $0xa8] sm:$0xff] %v1899_v14  ;;  %v1894_v17 = vadd.f32 %v5860_v36, %v1893_v16 }
 0x427   : > { %v4320_v18 = vpop.f32.mrf.mxu1 }
 0x428   : > { %3156 = vst [vmem:[%s5864_s7 + $0xa0] sm:$0xff] %v1894_v17  ;;  %v1909_v19 = vadd.f32 %v4320_v18, %v5860_v36  ;;  %4395 = vmatprep.mubr.f32.mxu0 %v1894_v17 }
 0x429   : > { %v1903_v20 = vpop.f32.mrf.mxu1  ;;  %4396 = vmatmul.mubr.f32.gmra.mxu0 %v1899_v14 }
 0x42a   : > { %3159 = vst [vmem:[%s5864_s7 + $0xb8] sm:$0xff] %v1909_v19  ;;  %v1904_v21 = vadd.f32 %v5860_v36, %v1903_v20 }
 0x42b   : > { %v4323_v22 = vpop.f32.mrf.mxu1 }
 0x42c   : > { %3158 = vst [vmem:[%s5864_s7 + $0xb0] sm:$0xff] %v1904_v21  ;;  %v1919_v23 = vadd.f32 %v4323_v22, %v5860_v36  ;;  %4398 = vmatprep.mubr.f32.mxu0 %v1904_v21 }
 0x42d   : > { %v1913_v24 = vpop.f32.mrf.mxu1  ;;  %4399 = vmatmul.mubr.f32.gmra.mxu0 %v1909_v19 }
 0x42e   : > { %3161 = vst [vmem:[%s5864_s7 + $0xc8] sm:$0xff] %v1919_v23  ;;  %v1914_v25 = vadd.f32 %v5860_v36, %v1913_v24 }
 0x42f   : > { %v4326_v50 = vpop.f32.mrf.mxu1 }
 0x430   : > { %3160 = vst [vmem:[%s5864_s7 + $0xc0] sm:$0xff] %v1914_v25  ;;  %v1929_v26 = vadd.f32 %v4326_v50, %v5860_v36  ;;  %4401 = vmatprep.mubr.f32.mxu0 %v1914_v25 }
 0x431   : > { %v1923_v27 = vpop.f32.mrf.mxu1  ;;  %4402 = vmatmul.mubr.f32.gmra.mxu0 %v1919_v23 }
 0x432   : > { %3163 = vst [vmem:[%s5864_s7 + $0xd8] sm:$0xff] %v1929_v26  ;;  %v1924_v28 = vadd.f32 %v5860_v36, %v1923_v27 }
 0x433   : > { %v4329_v29 = vpop.f32.mrf.mxu1 }
 0x434   : > { %3162 = vst [vmem:[%s5864_s7 + $0xd0] sm:$0xff] %v1924_v28  ;;  %v1939_v30 = vadd.f32 %v4329_v29, %v5860_v36  ;;  %4404 = vmatprep.mubr.f32.mxu0 %v1924_v28 }
 0x435   : > { %v1933_v31 = vpop.f32.mrf.mxu1  ;;  %4405 = vmatmul.mubr.f32.gmra.mxu0 %v1929_v26 }
 0x436   : > { %3165 = vst [vmem:[%s5864_s7 + $0xe8] sm:$0xff] %v1939_v30  ;;  %v1934_v32 = vadd.f32 %v5860_v36, %v1933_v31 }
 0x437   : > { %v4332_v33 = vpop.f32.mrf.mxu1 }
 0x438   : > { %3164 = vst [vmem:[%s5864_s7 + $0xe0] sm:$0xff] %v1934_v32  ;;  %v1949_v34 = vadd.f32 %v4332_v33, %v5860_v36  ;;  %4407 = vmatprep.mubr.f32.mxu0 %v1934_v32 }
 0x439   : > { %v1943_v35 = vpop.f32.mrf.mxu1  ;;  %4408 = vmatmul.mubr.f32.gmra.mxu0 %v1939_v30 }
 0x43a   : > { %3167 = vst [vmem:[%s5864_s7 + $0xf8] sm:$0xff] %v1949_v34  ;;  %v1944_v37 = vadd.f32 %v5860_v36, %v1943_v35  ;;  %v2522_v36 = vld [vmem:[#allocation14 + $0x50] sm:$0xff] }
 0x43b   : > { %4503 = vmatprep.subr.mxu0 %v2522_v36 }
 0x43c   : > { %3166 = vst [vmem:[%s5864_s7 + $0xf0] sm:$0xff] %v1944_v37  ;;  %4410 = vmatprep.mubr.f32.mxu0 %v1944_v37  ;;  %4504 = vmatpush3.msra.mxu0 %v2522_v36 }
 0x43d   : > { %4411 = vmatmul.mubr.f32.gmra.mxu0 %v1949_v34  ;;  %4505 = vmatprep.subr.mxu0 %v2521_v43 }
 0x43e   : > { %4506 = vmatpush3.msra.mxu0 %v2521_v43 }
 0x43f   : > { %4507 = vmatprep.subr.mxu0 %v2520_v44 }
 0x440   : > { %4508 = vmatpush3.msra.mxu0 %v2520_v44 }
 0x441   : > { %4509 = vmatprep.subr.mxu0 %v2519_v45 }
 0x442   : > { %4510 = vmatpush3.msra.mxu0 %v2519_v45 }
 0x443   : > { %4511 = vmatprep.subr.mxu0 %v2518_v46 }
 0x444   : > { %4512 = vmatpush3.msra.mxu0 %v2518_v46 }
 0x445   : > { %4513 = vmatprep.subr.mxu0 %v2517_v47 }
 0x446   : > { %4514 = vmatpush3.msra.mxu0 %v2517_v47 }
 0x447   : > { %4515 = vmatprep.subr.mxu0 %v2516_v48 }
 0x448   : > { %4516 = vmatpush3.msra.mxu0 %v2516_v48 }
 0x449   : > { %4517 = vmatprep.subr.mxu0 %v2515_v49 }
 0x44a   : > { %4518 = vmatpush3.msra.mxu0 %v2515_v49 }
 0x44b   : > { %4519 = vmatprep.subr.mxu0 %v2514_v51 }
 0x44c   : > { %4520 = vmatpush3.msra.mxu0 %v2514_v51 }
 0x44d   : > { %4521 = vmatprep.subr.mxu0 %v2513_v52 }
 0x44e   : > { %4522 = vmatpush3.msra.mxu0 %v2513_v52 }
 0x4c1   : > { %v4367_v15 = vpop.f32.mrf.mxu0 }
 0x4c2   : > { %v2047_v54 = vadd.f32 %v4367_v15, %v5932_v53 }
 0x4c3   : > { %v2041_v55 = vpop.f32.mrf.mxu0 }
 0x4c4   : > { %v2042_v56 = vadd.f32 %v5932_v53, %v2041_v55  ;;  %v2201_v59 = vmax.f32 %v2047_v54, 0.0 }
 0x4c5   : > { %v4370_v57 = vpop.f32.mrf.mxu0 }
 0x4c6   : > { %v2200_v58 = vmax.f32 %v2042_v56, 0.0  ;;  %v2057_v60 = vadd.f32 %v4370_v57, %v5932_v53 }
 0x4c7   : > { %v2051_v61 = vpop.f32.mrf.mxu0 }
 0x4c8   : > { %v2052_v62 = vadd.f32 %v5932_v53, %v2051_v61  ;;  %4445 = vmatprep.mubr.f32.mxu1 %v2200_v58  ;;  %v2203_v2 = vmax.f32 %v2057_v60, 0.0 }
 0x4c9   : > { %v4373_v63 = vpop.f32.mrf.mxu0  ;;  %4446 = vmatmul.mubr.f32.vlgmr.msra.gmra.mxu1 %v2201_v59 }
 0x4ca   : > { %v2202_v1 = vmax.f32 %v2052_v62, 0.0  ;;  %v2067_v3 = vadd.f32 %v4373_v63, %v5932_v53 }
 0x4cb   : > { %v2061_v4 = vpop.f32.mrf.mxu0 }
 0x4cc   : > { %v2062_v5 = vadd.f32 %v5932_v53, %v2061_v4  ;;  %4448 = vmatprep.mubr.f32.mxu1 %v2202_v1  ;;  %v2205_v8 = vmax.f32 %v2067_v3, 0.0 }
 0x4cd   : > { %v4376_v6 = vpop.f32.mrf.mxu0  ;;  %4449 = vmatmul.mubr.f32.gmra.mxu1 %v2203_v2 }
 0x4ce   : > { %v2204_v7 = vmax.f32 %v2062_v5, 0.0  ;;  %v2077_v9 = vadd.f32 %v4376_v6, %v5932_v53 }
 0x4cf   : > { %v2071_v10 = vpop.f32.mrf.mxu0 }
 0x4d0   : > { %v2072_v11 = vadd.f32 %v5932_v53, %v2071_v10  ;;  %4451 = vmatprep.mubr.f32.mxu1 %v2204_v7  ;;  %v2207_v14 = vmax.f32 %v2077_v9, 0.0 }
 0x4d1   : > { %v4379_v12 = vpop.f32.mrf.mxu0  ;;  %4452 = vmatmul.mubr.f32.gmra.mxu1 %v2205_v8 }
 0x4d2   : > { %v2206_v13 = vmax.f32 %v2072_v11, 0.0  ;;  %v2087_v16 = vadd.f32 %v4379_v12, %v5932_v53 }
 0x4d3   : > { %v2081_v17 = vpop.f32.mrf.mxu0 }
 0x4d4   : > { %v2082_v18 = vadd.f32 %v5932_v53, %v2081_v17  ;;  %4454 = vmatprep.mubr.f32.mxu1 %v2206_v13  ;;  %v2209_v21 = vmax.f32 %v2087_v16, 0.0 }
 0x4d5   : > { %v4382_v19 = vpop.f32.mrf.mxu0  ;;  %4455 = vmatmul.mubr.f32.gmra.mxu1 %v2207_v14 }
 0x4d6   : > { %v2208_v20 = vmax.f32 %v2082_v18, 0.0  ;;  %v2097_v22 = vadd.f32 %v4382_v19, %v5932_v53 }
 0x4d7   : > { %v2091_v23 = vpop.f32.mrf.mxu0 }
 0x4d8   : > { %v2092_v24 = vadd.f32 %v5932_v53, %v2091_v23  ;;  %4457 = vmatprep.mubr.f32.mxu1 %v2208_v20  ;;  %v2211_v26 = vmax.f32 %v2097_v22, 0.0 }
 0x4d9   : > { %v4385_v25 = vpop.f32.mrf.mxu0  ;;  %4458 = vmatmul.mubr.f32.gmra.mxu1 %v2209_v21 }
 0x4da   : > { %v2210_v50 = vmax.f32 %v2092_v24, 0.0  ;;  %v2107_v27 = vadd.f32 %v4385_v25, %v5932_v53  ;;  %v2512_v24 = vld [vmem:[#allocation14] sm:$0xff]  ;;  %v2807_v25 = vld [vmem:[#allocation16 + $0x78] sm:$0xff] }
 0x4db   : > { %v2101_v28 = vpop.f32.mrf.mxu0  ;;  %4523 = vmatprep.subr.mxu0 %v2512_v24  ;;  %4573 = vmatprep.subr.mxu1 %v2807_v25 }
 0x4dc   : > { %v2102_v29 = vadd.f32 %v5932_v53, %v2101_v28  ;;  %4460 = vmatprep.mubr.f32.mxu1 %v2210_v50  ;;  %v2213_v32 = vmax.f32 %v2107_v27, 0.0  ;;  %4524 = vmatpush3.msra.mxu0 %v2512_v24  ;;  %v2806_v50 = vld [vmem:[#allocation16 + $0x70] sm:$0xff]  ;;  %v2804_v27 = vld [vmem:[#allocation16 + $0x60] sm:$0xff] }
 0x4dd   : > { %v4388_v30 = vpop.f32.mrf.mxu0  ;;  %4461 = vmatmul.mubr.f32.gmra.mxu1 %v2211_v26  ;;  %v2805_v26 = vld [vmem:[#allocation16 + $0x68] sm:$0xff]  ;;  %v2802_v28 = vld [vmem:[#allocation16 + $0x50] sm:$0xff] }
 0x4de   : > { %v2212_v31 = vmax.f32 %v2102_v29, 0.0  ;;  %v2117_v33 = vadd.f32 %v4388_v30, %v5932_v53  ;;  %4574 = vmatpush3.msra.mxu1 %v2807_v25  ;;  %v2801_v29 = vld [vmem:[#allocation16 + $0x48] sm:$0xff]  ;;  %v2800_v30 = vld [vmem:[#allocation16 + $0x40] sm:$0xff] }
 0x4df   : > { %v2111_v34 = vpop.f32.mrf.mxu0  ;;  %4575 = vmatprep.subr.mxu1 %v2806_v50 }
 0x4e0   : > { %v2112_v35 = vadd.f32 %v5932_v53, %v2111_v34  ;;  %4463 = vmatprep.mubr.f32.mxu1 %v2212_v31  ;;  %v2215_v39 = vmax.f32 %v2117_v33, 0.0  ;;  %4576 = vmatpush3.msra.mxu1 %v2806_v50  ;;  %v2799_v31 = vld [vmem:[#allocation16 + $0x38] sm:$0xff]  ;;  %v2797_v33 = vld [vmem:[#allocation16 + $0x28] sm:$0xff]  ;;  %v2796_v34 = vld [vmem:[#allocation16 + $0x20] sm:$0xff] }
 0x4e1   : > { %v4391_v37 = vpop.f32.mrf.mxu0  ;;  %4464 = vmatmul.mubr.f32.gmra.mxu1 %v2213_v32  ;;  %4577 = vmatprep.subr.mxu1 %v2805_v26  ;;  %v2798_v32 = vld [vmem:[#allocation16 + $0x30] sm:$0xff] }
 0x4e2   : > { %v2214_v38 = vmax.f32 %v2112_v35, 0.0  ;;  %v2127_v0 = vadd.f32 %v4391_v37, %v5932_v53  ;;  %4578 = vmatpush3.msra.mxu1 %v2805_v26  ;;  %v2795_v35 = vld [vmem:[#allocation16 + $0x18] sm:$0xff]  ;;  %v2794_v37 = vld [vmem:[#allocation16 + $0x10] sm:$0xff] }
 0x4e3   : > { %v2121_v40 = vpop.f32.mrf.mxu0  ;;  %4579 = vmatprep.subr.mxu1 %v2804_v27 }
 0x4e4   : > { %v2122_v41 = vadd.f32 %v5932_v53, %v2121_v40  ;;  %4466 = vmatprep.mubr.f32.mxu1 %v2214_v38  ;;  %v2217_v43 = vmax.f32 %v2127_v0, 0.0  ;;  %4580 = vmatpush3.msra.mxu1 %v2804_v27  ;;  %v2793_v38 = vld [vmem:[#allocation16 + $0x8] sm:$0xff] }
 0x4e5   : > { %v4394_v42 = vpop.f32.mrf.mxu0  ;;  %4467 = vmatmul.mubr.f32.gmra.mxu1 %v2215_v39  ;;  %v5969_v39 = vld [vmem:[%s6386_s12] ss:$0 sm:$0xff] }
 0x4e6   : > { %v2216_v36 = vmax.f32 %v2122_v41, 0.0  ;;  %v2137_v44 = vadd.f32 %v4394_v42, %v5932_v53 }
 0x4e7   : > { %v2131_v45 = vpop.f32.mrf.mxu0 }
 0x4e8   : > { %v2132_v46 = vadd.f32 %v5932_v53, %v2131_v45  ;;  %4469 = vmatprep.mubr.f32.mxu1 %v2216_v36  ;;  %v2219_v49 = vmax.f32 %v2137_v44, 0.0 }
 0x4e9   : > { %v4397_v47 = vpop.f32.mrf.mxu0  ;;  %4470 = vmatmul.mubr.f32.gmra.mxu1 %v2217_v43 }
 0x4ea   : > { %v2218_v48 = vmax.f32 %v2132_v46, 0.0  ;;  %v2147_v51 = vadd.f32 %v4397_v47, %v5932_v53 }
 0x4eb   : > { %v2141_v52 = vpop.f32.mrf.mxu0 }
 0x4ec   : > { %v2142_v15 = vadd.f32 %v5932_v53, %v2141_v52  ;;  %4472 = vmatprep.mubr.f32.mxu1 %v2218_v48  ;;  %v2221_v56 = vmax.f32 %v2147_v51, 0.0 }
 0x4ed   : > { %v4400_v54 = vpop.f32.mrf.mxu0  ;;  %4473 = vmatmul.mubr.f32.gmra.mxu1 %v2219_v49 }
 0x4ee   : > { %v2220_v55 = vmax.f32 %v2142_v15, 0.0  ;;  %v2157_v57 = vadd.f32 %v4400_v54, %v5932_v53 }
 0x4ef   : > { %v2151_v58 = vpop.f32.mrf.mxu0 }
 0x4f0   : > { %v2152_v59 = vadd.f32 %v5932_v53, %v2151_v58  ;;  %4475 = vmatprep.mubr.f32.mxu1 %v2220_v55  ;;  %v2223_v62 = vmax.f32 %v2157_v57, 0.0 }
 0x4f1   : > { %v4403_v60 = vpop.f32.mrf.mxu0  ;;  %4476 = vmatmul.mubr.f32.gmra.mxu1 %v2221_v56 }
 0x4f2   : > { %v2222_v61 = vmax.f32 %v2152_v59, 0.0  ;;  %v2167_v63 = vadd.f32 %v4403_v60, %v5932_v53 }
 0x4f3   : > { %v2161_v1 = vpop.f32.mrf.mxu0 }
 0x4f4   : > { %v2162_v2 = vadd.f32 %v5932_v53, %v2161_v1  ;;  %4478 = vmatprep.mubr.f32.mxu1 %v2222_v61  ;;  %v2225_v5 = vmax.f32 %v2167_v63, 0.0 }
 0x4f5   : > { %v4406_v3 = vpop.f32.mrf.mxu0  ;;  %4479 = vmatmul.mubr.f32.gmra.mxu1 %v2223_v62 }
 0x4f6   : > { %v2224_v4 = vmax.f32 %v2162_v2, 0.0  ;;  %v2177_v6 = vadd.f32 %v4406_v3, %v5932_v53 }
 0x4f7   : > { %v2171_v7 = vpop.f32.mrf.mxu0 }
 0x4f8   : > { %v2172_v8 = vadd.f32 %v5932_v53, %v2171_v7  ;;  %4481 = vmatprep.mubr.f32.mxu1 %v2224_v4  ;;  %v2227_v11 = vmax.f32 %v2177_v6, 0.0 }
 0x4f9   : > { %v4409_v9 = vpop.f32.mrf.mxu0  ;;  %4482 = vmatmul.mubr.f32.gmra.mxu1 %v2225_v5 }
 0x4fa   : > { %v2226_v10 = vmax.f32 %v2172_v8, 0.0  ;;  %v2187_v12 = vadd.f32 %v4409_v9, %v5932_v53 }
 0x4fb   : > { %v2181_v13 = vpop.f32.mrf.mxu0 }
 0x4fc   : > { %v2182_v14 = vadd.f32 %v5932_v53, %v2181_v13  ;;  %4484 = vmatprep.mubr.f32.mxu1 %v2226_v10  ;;  %v2229_v18 = vmax.f32 %v2187_v12, 0.0 }
 0x4fd   : > { %v4412_v16 = vpop.f32.mrf.mxu0  ;;  %4485 = vmatmul.mubr.f32.gmra.mxu1 %v2227_v11 }
 0x4fe   : > { %v2228_v17 = vmax.f32 %v2182_v14, 0.0  ;;  %v2197_v19 = vadd.f32 %v4412_v16, %v5932_v53 }
 0x4ff   : > { %v2191_v20 = vpop.f32.mrf.mxu0 }
 0x500   : > { %v2192_v21 = vadd.f32 %v5932_v53, %v2191_v20  ;;  %4487 = vmatprep.mubr.f32.mxu1 %v2228_v17  ;;  %v2231_v23 = vmax.f32 %v2197_v19, 0.0  ;;  %v2803_v53 = vld [vmem:[#allocation16 + $0x58] sm:$0xff] }
 0x501   : > { %4488 = vmatmul.mubr.f32.gmra.mxu1 %v2229_v18  ;;  %4581 = vmatprep.subr.mxu1 %v2803_v53 }
 0x502   : > { %v2230_v22 = vmax.f32 %v2192_v21, 0.0  ;;  %4582 = vmatpush3.msra.mxu1 %v2803_v53 }
 0x503   : > { %4583 = vmatprep.subr.mxu1 %v2802_v28 }
 0x504   : > { %4490 = vmatprep.mubr.f32.mxu1 %v2230_v22  ;;  %4584 = vmatpush3.msra.mxu1 %v2802_v28 }
 0x505   : > { %4491 = vmatmul.mubr.f32.gmra.mxu1 %v2231_v23  ;;  %4585 = vmatprep.subr.mxu1 %v2801_v29 }
 0x506   : > { %4586 = vmatpush3.msra.mxu1 %v2801_v29 }
 0x507   : > { %4587 = vmatprep.subr.mxu1 %v2800_v30 }
 0x508   : > { %4588 = vmatpush3.msra.mxu1 %v2800_v30 }
 0x509   : > { %4589 = vmatprep.subr.mxu1 %v2799_v31 }
 0x50a   : > { %4590 = vmatpush3.msra.mxu1 %v2799_v31 }
 0x50b   : > { %4591 = vmatprep.subr.mxu1 %v2798_v32 }
 0x50c   : > { %4592 = vmatpush3.msra.mxu1 %v2798_v32 }
 0x50d   : > { %4593 = vmatprep.subr.mxu1 %v2797_v33 }
 0x50e   : > { %4594 = vmatpush3.msra.mxu1 %v2797_v33 }
 0x50f   : > { %4595 = vmatprep.subr.mxu1 %v2796_v34 }
 0x510   : > { %4596 = vmatpush3.msra.mxu1 %v2796_v34 }
 0x511   : > { %4597 = vmatprep.subr.mxu1 %v2795_v35 }
 0x512   : > { %4598 = vmatpush3.msra.mxu1 %v2795_v35 }
 0x513   : > { %4599 = vmatprep.subr.mxu1 %v2794_v37 }
 0x514   : > { %4600 = vmatpush3.msra.mxu1 %v2794_v37 }
 0x515   : > { %4601 = vmatprep.subr.mxu1 %v2793_v38 }
 0x516   : > { %4602 = vmatpush3.msra.mxu1 %v2793_v38 }
 0x589   : > { %v4447_v0 = vpop.f32.mrf.mxu1 }
 0x58a   : > { %v2327_v40 = vadd.f32 %v4447_v0, %v5969_v39 }
 0x58b   : > { %v2321_v41 = vpop.f32.mrf.mxu1 }
 0x58c   : > { %v2322_v42 = vadd.f32 %v5969_v39, %v2321_v41  ;;  %v2481_v44 = vmax.f32 %v2327_v40, 0.0 }
 0x58d   : > { %v4450_v36 = vpop.f32.mrf.mxu1 }
 0x58e   : > { %v2480_v43 = vmax.f32 %v2322_v42, 0.0  ;;  %v2337_v45 = vadd.f32 %v4450_v36, %v5969_v39 }
 0x58f   : > { %v2331_v46 = vpop.f32.mrf.mxu1 }
 0x590   : > { %v2332_v47 = vadd.f32 %v5969_v39, %v2331_v46  ;;  %4525 = vmatprep.mubr.f32.mxu0 %v2480_v43  ;;  %v2483_v51 = vmax.f32 %v2337_v45, 0.0 }
 0x591   : > { %v4453_v48 = vpop.f32.mrf.mxu1  ;;  %4526 = vmatmul.mubr.f32.vlgmr.msra.gmra.mxu0 %v2481_v44 }
 0x592   : > { %v2482_v49 = vmax.f32 %v2332_v47, 0.0  ;;  %v2347_v52 = vadd.f32 %v4453_v48, %v5969_v39 }
 0x593   : > { %v2341_v15 = vpop.f32.mrf.mxu1 }
 0x594   : > { %v2342_v54 = vadd.f32 %v5969_v39, %v2341_v15  ;;  %4528 = vmatprep.mubr.f32.mxu0 %v2482_v49  ;;  %v2485_v57 = vmax.f32 %v2347_v52, 0.0 }
 0x595   : > { %v4456_v55 = vpop.f32.mrf.mxu1  ;;  %4529 = vmatmul.mubr.f32.gmra.mxu0 %v2483_v51 }
 0x596   : > { %v2484_v56 = vmax.f32 %v2342_v54, 0.0  ;;  %v2357_v58 = vadd.f32 %v4456_v55, %v5969_v39 }
 0x597   : > { %v2351_v59 = vpop.f32.mrf.mxu1 }
 0x598   : > { %v2352_v60 = vadd.f32 %v5969_v39, %v2351_v59  ;;  %4531 = vmatprep.mubr.f32.mxu0 %v2484_v56  ;;  %v2487_v63 = vmax.f32 %v2357_v58, 0.0 }
 0x599   : > { %v4459_v61 = vpop.f32.mrf.mxu1  ;;  %4532 = vmatmul.mubr.f32.gmra.mxu0 %v2485_v57 }
 0x59a   : > { %v2486_v62 = vmax.f32 %v2352_v60, 0.0  ;;  %v2367_v1 = vadd.f32 %v4459_v61, %v5969_v39 }
 0x59b   : > { %v2361_v2 = vpop.f32.mrf.mxu1 }
 0x59c   : > { %v2362_v3 = vadd.f32 %v5969_v39, %v2361_v2  ;;  %4534 = vmatprep.mubr.f32.mxu0 %v2486_v62  ;;  %v2489_v6 = vmax.f32 %v2367_v1, 0.0 }
 0x59d   : > { %v4462_v4 = vpop.f32.mrf.mxu1  ;;  %4535 = vmatmul.mubr.f32.gmra.mxu0 %v2487_v63 }
 0x59e   : > { %v2488_v5 = vmax.f32 %v2362_v3, 0.0  ;;  %v2377_v7 = vadd.f32 %v4462_v4, %v5969_v39 }
 0x59f   : > { %v2371_v8 = vpop.f32.mrf.mxu1 }
 0x5a0   : > { %v2372_v9 = vadd.f32 %v5969_v39, %v2371_v8  ;;  %4537 = vmatprep.mubr.f32.mxu0 %v2488_v5  ;;  %v2491_v12 = vmax.f32 %v2377_v7, 0.0 }
 0x5a1   : > { %v4465_v10 = vpop.f32.mrf.mxu1  ;;  %4538 = vmatmul.mubr.f32.gmra.mxu0 %v2489_v6 }
 0x5a2   : > { %v2490_v11 = vmax.f32 %v2372_v9, 0.0  ;;  %v2387_v13 = vadd.f32 %v4465_v10, %v5969_v39  ;;  %v2792_v9 = vld [vmem:[#allocation16] sm:$0xff] }
 0x5a3   : > { %v2381_v14 = vpop.f32.mrf.mxu1  ;;  %4603 = vmatprep.subr.mxu1 %v2792_v9  ;;  %v6006_v10 = vld [vmem:[%s6311_s14] ss:$0 sm:$0xff] }
 0x5a4   : > { %v2382_v16 = vadd.f32 %v5969_v39, %v2381_v14  ;;  %4540 = vmatprep.mubr.f32.mxu0 %v2490_v11  ;;  %v2493_v19 = vmax.f32 %v2387_v13, 0.0  ;;  %4604 = vmatpush3.msra.mxu1 %v2792_v9 }
 0x5a5   : > { %v4468_v17 = vpop.f32.mrf.mxu1  ;;  %4541 = vmatmul.mubr.f32.gmra.mxu0 %v2491_v12 }
 0x5a6   : > { %v2492_v18 = vmax.f32 %v2382_v16, 0.0  ;;  %v2397_v20 = vadd.f32 %v4468_v17, %v5969_v39 }
 0x5a7   : > { %v2391_v21 = vpop.f32.mrf.mxu1 }
 0x5a8   : > { %v2392_v22 = vadd.f32 %v5969_v39, %v2391_v21  ;;  %4543 = vmatprep.mubr.f32.mxu0 %v2492_v18  ;;  %v2495_v25 = vmax.f32 %v2397_v20, 0.0 }
 0x5a9   : > { %v4471_v23 = vpop.f32.mrf.mxu1  ;;  %4544 = vmatmul.mubr.f32.gmra.mxu0 %v2493_v19 }
 0x5aa   : > { %v2494_v24 = vmax.f32 %v2392_v22, 0.0  ;;  %v2407_v50 = vadd.f32 %v4471_v23, %v5969_v39 }
 0x5ab   : > { %v2401_v26 = vpop.f32.mrf.mxu1 }
 0x5ac   : > { %v2402_v27 = vadd.f32 %v5969_v39, %v2401_v26  ;;  %4546 = vmatprep.mubr.f32.mxu0 %v2494_v24  ;;  %v2497_v29 = vmax.f32 %v2407_v50, 0.0 }
 0x5ad   : > { %v4474_v53 = vpop.f32.mrf.mxu1  ;;  %4547 = vmatmul.mubr.f32.gmra.mxu0 %v2495_v25 }
 0x5ae   : > { %v2496_v28 = vmax.f32 %v2402_v27, 0.0  ;;  %v2417_v30 = vadd.f32 %v4474_v53, %v5969_v39 }
 0x5af   : > { %v2411_v31 = vpop.f32.mrf.mxu1 }
 0x5b0   : > { %v2412_v32 = vadd.f32 %v5969_v39, %v2411_v31  ;;  %4549 = vmatprep.mubr.f32.mxu0 %v2496_v28  ;;  %v2499_v35 = vmax.f32 %v2417_v30, 0.0 }
 0x5b1   : > { %v4477_v33 = vpop.f32.mrf.mxu1  ;;  %4550 = vmatmul.mubr.f32.gmra.mxu0 %v2497_v29 }
 0x5b2   : > { %v2498_v34 = vmax.f32 %v2412_v32, 0.0  ;;  %v2427_v37 = vadd.f32 %v4477_v33, %v5969_v39 }
 0x5b3   : > { %v2421_v38 = vpop.f32.mrf.mxu1 }
 0x5b4   : > { %v2422_v0 = vadd.f32 %v5969_v39, %v2421_v38  ;;  %4552 = vmatprep.mubr.f32.mxu0 %v2498_v34  ;;  %v2501_v42 = vmax.f32 %v2427_v37, 0.0 }
 0x5b5   : > { %v4480_v40 = vpop.f32.mrf.mxu1  ;;  %4553 = vmatmul.mubr.f32.gmra.mxu0 %v2499_v35 }
 0x5b6   : > { %v2500_v41 = vmax.f32 %v2422_v0, 0.0  ;;  %v2437_v36 = vadd.f32 %v4480_v40, %v5969_v39 }
 0x5b7   : > { %v2431_v43 = vpop.f32.mrf.mxu1 }
 0x5b8   : > { %v2432_v44 = vadd.f32 %v5969_v39, %v2431_v43  ;;  %4555 = vmatprep.mubr.f32.mxu0 %v2500_v41  ;;  %v2503_v47 = vmax.f32 %v2437_v36, 0.0 }
 0x5b9   : > { %v4483_v45 = vpop.f32.mrf.mxu1  ;;  %4556 = vmatmul.mubr.f32.gmra.mxu0 %v2501_v42 }
 0x5ba   : > { %v2502_v46 = vmax.f32 %v2432_v44, 0.0  ;;  %v2447_v48 = vadd.f32 %v4483_v45, %v5969_v39 }
 0x5bb   : > { %v2441_v49 = vpop.f32.mrf.mxu1 }
 0x5bc   : > { %v2442_v51 = vadd.f32 %v5969_v39, %v2441_v49  ;;  %4558 = vmatprep.mubr.f32.mxu0 %v2502_v46  ;;  %v2505_v54 = vmax.f32 %v2447_v48, 0.0 }
 0x5bd   : > { %v4486_v52 = vpop.f32.mrf.mxu1  ;;  %4559 = vmatmul.mubr.f32.gmra.mxu0 %v2503_v47 }
 0x5be   : > { %v2504_v15 = vmax.f32 %v2442_v51, 0.0  ;;  %v2457_v55 = vadd.f32 %v4486_v52, %v5969_v39 }
 0x5bf   : > { %v2451_v56 = vpop.f32.mrf.mxu1 }
 0x5c0   : > { %v2452_v57 = vadd.f32 %v5969_v39, %v2451_v56  ;;  %4561 = vmatprep.mubr.f32.mxu0 %v2504_v15  ;;  %v2507_v60 = vmax.f32 %v2457_v55, 0.0 }
 0x5c1   : > { %v4489_v58 = vpop.f32.mrf.mxu1  ;;  %4562 = vmatmul.mubr.f32.gmra.mxu0 %v2505_v54 }
 0x5c2   : > { %v2506_v59 = vmax.f32 %v2452_v57, 0.0  ;;  %v2467_v61 = vadd.f32 %v4489_v58, %v5969_v39 }
 0x5c3   : > { %v2461_v62 = vpop.f32.mrf.mxu1 }
 0x5c4   : > { %v2462_v63 = vadd.f32 %v5969_v39, %v2461_v62  ;;  %4564 = vmatprep.mubr.f32.mxu0 %v2506_v59  ;;  %v2509_v3 = vmax.f32 %v2467_v61, 0.0 }
 0x5c5   : > { %v4492_v1 = vpop.f32.mrf.mxu1  ;;  %4565 = vmatmul.mubr.f32.gmra.mxu0 %v2507_v60 }
 0x5c6   : > { %v2508_v2 = vmax.f32 %v2462_v63, 0.0  ;;  %v2477_v4 = vadd.f32 %v4492_v1, %v5969_v39 }
 0x5c7   : > { %v2471_v5 = vpop.f32.mrf.mxu1 }
 0x5c8   : > { %v2472_v6 = vadd.f32 %v5969_v39, %v2471_v5  ;;  %4567 = vmatprep.mubr.f32.mxu0 %v2508_v2  ;;  %v2511_v8 = vmax.f32 %v2477_v4, 0.0 }
 0x5c9   : > { %4568 = vmatmul.mubr.f32.gmra.mxu0 %v2509_v3 }
 0x5ca   : > { %v2510_v7 = vmax.f32 %v2472_v6, 0.0 }
 0x5cc   : > { %4570 = vmatprep.mubr.f32.mxu0 %v2510_v7 }
 0x5cd   : > { %4571 = vmatmul.mubr.f32.gmra.mxu0 %v2511_v8 }
 0x651   : > { %v4527_v11 = vpop.f32.mrf.mxu0 }
 0x652   : > { %v2607_v12 = vadd.f32 %v4527_v11, %v6006_v10 }
 0x653   : > { %v2601_v13 = vpop.f32.mrf.mxu0 }
 0x654   : > { %v2602_v39 = vadd.f32 %v6006_v10, %v2601_v13  ;;  %v2761_v17 = vmax.f32 %v2607_v12, 0.0 }
 0x655   : > { %v4530_v14 = vpop.f32.mrf.mxu0 }
 0x656   : > { %v2760_v16 = vmax.f32 %v2602_v39, 0.0  ;;  %v2617_v18 = vadd.f32 %v4530_v14, %v6006_v10 }
 0x657   : > { %v2611_v19 = vpop.f32.mrf.mxu0 }
 0x658   : > { %v2612_v20 = vadd.f32 %v6006_v10, %v2611_v19  ;;  %4605 = vmatprep.mubr.f32.mxu1 %v2760_v16  ;;  %v2763_v23 = vmax.f32 %v2617_v18, 0.0 }
 0x659   : > { %v4533_v21 = vpop.f32.mrf.mxu0  ;;  %4606 = vmatmul.mubr.f32.vlgmr.msra.gmra.mxu1 %v2761_v17 }
 0x65a   : > { %v2762_v22 = vmax.f32 %v2612_v20, 0.0  ;;  %v2627_v24 = vadd.f32 %v4533_v21, %v6006_v10 }
 0x65b   : > { %v2621_v25 = vpop.f32.mrf.mxu0 }
 0x65c   : > { %v2622_v50 = vadd.f32 %v6006_v10, %v2621_v25  ;;  %4608 = vmatprep.mubr.f32.mxu1 %v2762_v22  ;;  %v2765_v53 = vmax.f32 %v2627_v24, 0.0 }
 0x65d   : > { %v4536_v26 = vpop.f32.mrf.mxu0  ;;  %4609 = vmatmul.mubr.f32.gmra.mxu1 %v2763_v23 }
 0x65e   : > { %v2764_v27 = vmax.f32 %v2622_v50, 0.0  ;;  %v2637_v28 = vadd.f32 %v4536_v26, %v6006_v10 }
 0x65f   : > { %v2631_v29 = vpop.f32.mrf.mxu0 }
 0x660   : > { %v2632_v30 = vadd.f32 %v6006_v10, %v2631_v29  ;;  %4611 = vmatprep.mubr.f32.mxu1 %v2764_v27  ;;  %v2767_v33 = vmax.f32 %v2637_v28, 0.0 }
 0x661   : > { %v4539_v31 = vpop.f32.mrf.mxu0  ;;  %4612 = vmatmul.mubr.f32.gmra.mxu1 %v2765_v53 }
 0x662   : > { %v2766_v32 = vmax.f32 %v2632_v30, 0.0  ;;  %v2647_v34 = vadd.f32 %v4539_v31, %v6006_v10 }
 0x663   : > { %v2641_v35 = vpop.f32.mrf.mxu0 }
 0x664   : > { %v2642_v37 = vadd.f32 %v6006_v10, %v2641_v35  ;;  %4614 = vmatprep.mubr.f32.mxu1 %v2766_v32  ;;  %v2769_v40 = vmax.f32 %v2647_v34, 0.0 }
 0x665   : > { %v4542_v38 = vpop.f32.mrf.mxu0  ;;  %4615 = vmatmul.mubr.f32.gmra.mxu1 %v2767_v33 }
 0x666   : > { %v2768_v0 = vmax.f32 %v2642_v37, 0.0  ;;  %v2657_v41 = vadd.f32 %v4542_v38, %v6006_v10 }
 0x667   : > { %v2651_v42 = vpop.f32.mrf.mxu0 }
 0x668   : > { %v2652_v36 = vadd.f32 %v6006_v10, %v2651_v42  ;;  %4617 = vmatprep.mubr.f32.mxu1 %v2768_v0  ;;  %v2771_v45 = vmax.f32 %v2657_v41, 0.0 }
 0x669   : > { %v4545_v43 = vpop.f32.mrf.mxu0  ;;  %4618 = vmatmul.mubr.f32.gmra.mxu1 %v2769_v40 }
 0x66a   : > { %v2770_v44 = vmax.f32 %v2652_v36, 0.0  ;;  %v2667_v46 = vadd.f32 %v4545_v43, %v6006_v10 }
 0x66b   : > { %v2661_v47 = vpop.f32.mrf.mxu0 }
 0x66c   : > { %v2662_v48 = vadd.f32 %v6006_v10, %v2661_v47  ;;  %4620 = vmatprep.mubr.f32.mxu1 %v2770_v44  ;;  %v2773_v52 = vmax.f32 %v2667_v46, 0.0 }
 0x66d   : > { %v4548_v49 = vpop.f32.mrf.mxu0  ;;  %4621 = vmatmul.mubr.f32.gmra.mxu1 %v2771_v45 }
 0x66e   : > { %v2772_v51 = vmax.f32 %v2662_v48, 0.0  ;;  %v2677_v15 = vadd.f32 %v4548_v49, %v6006_v10 }
 0x66f   : > { %v2671_v54 = vpop.f32.mrf.mxu0 }
 0x670   : > { %v2672_v55 = vadd.f32 %v6006_v10, %v2671_v54  ;;  %4623 = vmatprep.mubr.f32.mxu1 %v2772_v51  ;;  %v2775_v58 = vmax.f32 %v2677_v15, 0.0 }
 0x671   : > { %v4551_v56 = vpop.f32.mrf.mxu0  ;;  %4624 = vmatmul.mubr.f32.gmra.mxu1 %v2773_v52 }
 0x672   : > { %v2774_v57 = vmax.f32 %v2672_v55, 0.0  ;;  %v2687_v59 = vadd.f32 %v4551_v56, %v6006_v10 }
 0x673   : > { %v2681_v60 = vpop.f32.mrf.mxu0 }
 0x674   : > { %v2682_v61 = vadd.f32 %v6006_v10, %v2681_v60  ;;  %4626 = vmatprep.mubr.f32.mxu1 %v2774_v57  ;;  %v2777_v1 = vmax.f32 %v2687_v59, 0.0 }
 0x675   : > { %v4554_v62 = vpop.f32.mrf.mxu0  ;;  %4627 = vmatmul.mubr.f32.gmra.mxu1 %v2775_v58 }
 0x676   : > { %v2776_v63 = vmax.f32 %v2682_v61, 0.0  ;;  %v2697_v2 = vadd.f32 %v4554_v62, %v6006_v10 }
 0x677   : > { %v2691_v3 = vpop.f32.mrf.mxu0 }
 0x678   : > { %v2692_v4 = vadd.f32 %v6006_v10, %v2691_v3  ;;  %4629 = vmatprep.mubr.f32.mxu1 %v2776_v63  ;;  %v2779_v7 = vmax.f32 %v2697_v2, 0.0 }
 0x679   : > { %v4557_v5 = vpop.f32.mrf.mxu0  ;;  %4630 = vmatmul.mubr.f32.gmra.mxu1 %v2777_v1 }
 0x67a   : > { %v2778_v6 = vmax.f32 %v2692_v4, 0.0  ;;  %v2707_v8 = vadd.f32 %v4557_v5, %v6006_v10 }
 0x67b   : > { %v2701_v9 = vpop.f32.mrf.mxu0 }
 0x67c   : > { %v2702_v11 = vadd.f32 %v6006_v10, %v2701_v9  ;;  %4632 = vmatprep.mubr.f32.mxu1 %v2778_v6  ;;  %v2781_v39 = vmax.f32 %v2707_v8, 0.0 }
 0x67d   : > { %v4560_v12 = vpop.f32.mrf.mxu0  ;;  %4633 = vmatmul.mubr.f32.gmra.mxu1 %v2779_v7 }
 0x67e   : > { %v2780_v13 = vmax.f32 %v2702_v11, 0.0  ;;  %v2717_v14 = vadd.f32 %v4560_v12, %v6006_v10 }
 0x67f   : > { %v2711_v16 = vpop.f32.mrf.mxu0 }
 0x680   : > { %v2712_v17 = vadd.f32 %v6006_v10, %v2711_v16  ;;  %4635 = vmatprep.mubr.f32.mxu1 %v2780_v13  ;;  %v2783_v20 = vmax.f32 %v2717_v14, 0.0 }
 0x681   : > { %v4563_v18 = vpop.f32.mrf.mxu0  ;;  %4636 = vmatmul.mubr.f32.gmra.mxu1 %v2781_v39 }
 0x682   : > { %v2782_v19 = vmax.f32 %v2712_v17, 0.0  ;;  %v2727_v21 = vadd.f32 %v4563_v18, %v6006_v10 }
 0x683   : > { %v2721_v22 = vpop.f32.mrf.mxu0 }
 0x684   : > { %v2722_v23 = vadd.f32 %v6006_v10, %v2721_v22  ;;  %4638 = vmatprep.mubr.f32.mxu1 %v2782_v19  ;;  %v2785_v50 = vmax.f32 %v2727_v21, 0.0 }
 0x685   : > { %v4566_v24 = vpop.f32.mrf.mxu0  ;;  %4639 = vmatmul.mubr.f32.gmra.mxu1 %v2783_v20 }
 0x686   : > { %v2784_v25 = vmax.f32 %v2722_v23, 0.0  ;;  %v2737_v26 = vadd.f32 %v4566_v24, %v6006_v10 }
 0x687   : > { %v2731_v27 = vpop.f32.mrf.mxu0 }
 0x688   : > { %v2732_v53 = vadd.f32 %v6006_v10, %v2731_v27  ;;  %4641 = vmatprep.mubr.f32.mxu1 %v2784_v25  ;;  %v2787_v30 = vmax.f32 %v2737_v26, 0.0 }
 0x689   : > { %v4569_v28 = vpop.f32.mrf.mxu0  ;;  %4642 = vmatmul.mubr.f32.gmra.mxu1 %v2785_v50 }
 0x68a   : > { %v2786_v29 = vmax.f32 %v2732_v53, 0.0  ;;  %v2747_v31 = vadd.f32 %v4569_v28, %v6006_v10 }
 0x68b   : > { %v2741_v32 = vpop.f32.mrf.mxu0 }
 0x68c   : > { %v2742_v33 = vadd.f32 %v6006_v10, %v2741_v32  ;;  %4644 = vmatprep.mubr.f32.mxu1 %v2786_v29  ;;  %v2789_v37 = vmax.f32 %v2747_v31, 0.0 }
 0x68d   : > { %v4572_v34 = vpop.f32.mrf.mxu0  ;;  %4645 = vmatmul.mubr.f32.gmra.mxu1 %v2787_v30 }
 0x68e   : > { %v2788_v35 = vmax.f32 %v2742_v33, 0.0  ;;  %v2757_v38 = vadd.f32 %v4572_v34, %v6006_v10 }
 0x68f   : > { %v2751_v0 = vpop.f32.mrf.mxu0 }
 0x690   : > { %v2752_v40 = vadd.f32 %v6006_v10, %v2751_v0  ;;  %4647 = vmatprep.mubr.f32.mxu1 %v2788_v35  ;;  %v2791_v42 = vmax.f32 %v2757_v38, 0.0 }
 0x691   : > { %4648 = vmatmul.mubr.f32.gmra.mxu1 %v2789_v37 }
 0x692   : > { %v2790_v41 = vmax.f32 %v2752_v40, 0.0 }
 0x694   : > { %4650 = vmatprep.mubr.f32.mxu1 %v2790_v41 }
 0x695   : > { %4651 = vmatmul.mubr.f32.gmra.mxu1 %v2791_v42 }
 0x696   : > { %5053 = shalt.err (!%p5050_p6)
}
 0x697   : > { %s5054_s4 = scalar_lea.hbm %s6048_s0, 4096  ;;  %s5058_s9 = scalar_lea.hbm %s6315_s18, 8192 }
 0x698   : > { %p5055_p8 = scmp.ne.s32.totalorder %s6048_s0, %s5054_s4  ;;  %p5059_p11 = scmp.lt.s32.totalorder %s6048_s0, %s6315_s18 }
 0x699   : > { %p5060_p13 = scmp.lt.s32.totalorder %s5058_s9, %s5054_s4 }
 0x69a   : > { %p5056_p10 = pnand %p5055_p8, %p6387_p5 }
 0x69b   : > { %p5061_p0 = por %p5060_p13, %p5059_p11 }
 0x69c   : > { %p5057_p7 = pneg %p5056_p10 }
 0x69e   : > { %p5062_p2 = pnand %p5061_p0, %p5057_p7 }
 0x6a0   : > { %5065 = shalt.err (!%p5062_p2)
}
 0x6a1   : > { %s5246_s3 = smov 128   ;;  %s5247_s30 = smov 8  }
 0x6a2   : > { %4688 = dma.vmem_to_hbm [thread:$0]  (%p6387_p5), %s6051_s17, 4096, %s6048_s0, %s6055_s22, %s5246_s3, %s5246_s3, %s5247_s30  }
 0x6a3   : > { %s6085_s13 = scalar_lea.hbm %s6317_s20, %s6042_s11  ;;  %s3282_s21 = sshll.u32 %s5793_s16, 4  ;;  %s6094_s21 = int_to_ptr.vmem [resolvable:$true] %s3282_s21 }
 0x6a4   : > { %s6092_s9 = scalar_lea.hbm %s6316_s19, %s6042_s11  ;;  %s6388_s10 = sand.u32 1, %s5383_s29  }
 0x6a5   : > { %s6098_s12 = scalar_lea.sflag [#allocation22], %s6388_s10  ;;  %s5066_s0 = scalar_lea.vmem %s6094_s21, 4096 }
 0x6a6   : > { %p5067_p9 = scmp.ne.s32.totalorder %s6094_s21, %s5066_s0  ;;  %s5248_s17 = smov [#allocation21]  }
 0x6a7   : > { %s5070_s16 = sshll.u32 %s5248_s17, 4  ;;  %s5071_s16 = int_to_ptr.vmem [resolvable:$false] %s5070_s16 }
 0x6a8   : > { %p5068_p12 = pnand %p5067_p9, %p6387_p5  ;;  %s5072_s6 = scalar_lea.vmem %s5071_s16, 8192 }
 0x6a9   : > { %p5073_p3 = scmp.lt.s32.totalorder %s6094_s21, %s5071_s16  ;;  %p5074_p4 = scmp.lt.s32.totalorder %s5072_s6, %s5066_s0 }
 0x6aa   : > { %p5069_p1 = pneg %p5068_p12 }
 0x6ab   : > { %p5075_p6 = por %p5074_p4, %p5073_p3 }
 0x6ad   : > { %p5076_p8 = pnand %p5075_p6, %p5069_p1 }
 0x6af   : > { %5079 = shalt.err (!%p5076_p8)
}
 0x6b0   : > { %s5080_s10 = scalar_lea.hbm %s6085_s13, 4096  ;;  %s5084_s4 = scalar_lea.hbm %s6317_s20, 8192 }
 0x6b1   : > { %p5081_p10 = scmp.ne.s32.totalorder %s6085_s13, %s5080_s10  ;;  %p5085_p13 = scmp.lt.s32.totalorder %s6085_s13, %s6317_s20 }
 0x6b2   : > { %p5086_p0 = scmp.lt.s32.totalorder %s5084_s4, %s5080_s10 }
 0x6b3   : > { %p5082_p7 = pnand %p5081_p10, %p6387_p5 }
 0x6b4   : > { %p5087_p2 = por %p5086_p0, %p5085_p13 }
 0x6b5   : > { %p5083_p11 = pneg %p5082_p7 }
 0x6b7   : > { %p5088_p9 = pnand %p5087_p2, %p5083_p11 }
 0x6b9   : > { %5091 = shalt.err (!%p5088_p9)
}
 0x6ba   : > { %4690 = dma.vmem_to_hbm [thread:$0]  (%p6387_p5), %s6094_s21, 4096, %s6085_s13, %s6098_s12, %s5246_s3, %s5246_s3, %s5247_s30  }
 0x6bb   : > { %s3266_s0 = sshll.u32 %s5721_s28, 4  ;;  %s6389_s29 = sld [smem:[#allocation51_spill]]  ;;  %s3267_s0 = int_to_ptr.vmem [resolvable:$true] %s3266_s0 }
 0x6bc   : > { %s5092_s8 = scalar_lea.vmem %s3267_s0, 4096  ;;  %s5249_s4 = smov [#allocation20]  }
 0x6bd   : > { %p5093_p12 = scmp.ne.s32.totalorder %s3267_s0, %s5092_s8  ;;  %s5096_s15 = sshll.u32 %s5249_s4, 4  ;;  %s5097_s15 = int_to_ptr.vmem [resolvable:$false] %s5096_s15 }
 0x6be   : > { %s5098_s17 = scalar_lea.vmem %s5097_s15, 8192  ;;  %p5099_p4 = scmp.lt.s32.totalorder %s3267_s0, %s5097_s15 }
 0x6bf   : > { %p5094_p1 = pnand %p5093_p12, %p6387_p5  ;;  %p5100_p6 = scmp.lt.s32.totalorder %s5098_s17, %s5092_s8 }
 0x6c1   : > { %s6129_s10 = scalar_lea.hbm %s6389_s29, %s6042_s11  ;;  %p5095_p3 = pneg %p5094_p1 }
 0x6c2   : > { %p5101_p8 = por %p5100_p6, %p5099_p4 }
 0x6c4   : > { %p5102_p10 = pnand %p5101_p8, %p5095_p3 }
 0x6c6   : > { %5105 = shalt.err (!%p5102_p10)
}
 0x6c7   : > { %s5106_s28 = scalar_lea.hbm %s6092_s9, 4096  ;;  %s5110_s16 = scalar_lea.hbm %s6316_s19, 8192 }
 0x6c8   : > { %p5107_p7 = scmp.ne.s32.totalorder %s6092_s9, %s5106_s28  ;;  %p5111_p0 = scmp.lt.s32.totalorder %s6092_s9, %s6316_s19 }
 0x6c9   : > { %p5112_p2 = scmp.lt.s32.totalorder %s5110_s16, %s5106_s28 }
 0x6ca   : > { %p5108_p11 = pnand %p5107_p7, %p6387_p5 }
 0x6cb   : > { %p5113_p9 = por %p5112_p2, %p5111_p0 }
 0x6cc   : > { %p5109_p13 = pneg %p5108_p11 }
 0x6ce   : > { %p5114_p12 = pnand %p5113_p9, %p5109_p13 }
 0x6d0   : > { %5117 = shalt.err (!%p5114_p12)
}
 0x6d1   : > { %4689 = dma.vmem_to_hbm [thread:$0]  (%p6387_p5), %s3267_s0, 4096, %s6092_s9, %s6055_s22, %s5246_s3, %s5246_s3, %s5247_s30  }
 0x6d2   : > { %s3298_s8 = sshll.u32 %s5864_s7, 4  ;;  %s5250_s17 = smov [#allocation23]   ;;  %s3299_s8 = int_to_ptr.vmem [resolvable:$true] %s3298_s8 }
 0x6d3   : > { %s5118_s15 = scalar_lea.vmem %s3299_s8, 4096  ;;  %s5122_s28 = sshll.u32 %s5250_s17, 4  ;;  %s5123_s28 = int_to_ptr.vmem [resolvable:$false] %s5122_s28 }
 0x6d4   : > { %p5119_p1 = scmp.ne.s32.totalorder %s3299_s8, %s5118_s15  ;;  %s5124_s13 = scalar_lea.vmem %s5123_s28, 8192 }
 0x6d5   : > { %p5125_p6 = scmp.lt.s32.totalorder %s3299_s8, %s5123_s28  ;;  %p5126_p8 = scmp.lt.s32.totalorder %s5124_s13, %s5118_s15 }
 0x6d6   : > { %p5120_p3 = pnand %p5119_p1, %p6387_p5 }
 0x6d7   : > { %p5127_p10 = por %p5126_p8, %p5125_p6 }
 0x6d8   : > { %p5121_p4 = pneg %p5120_p3 }
 0x6da   : > { %p5128_p7 = pnand %p5127_p10, %p5121_p4 }
 0x6dc   : > { %5131 = shalt.err (!%p5128_p7)
}
 0x6dd   : > { %s5132_s7 = scalar_lea.hbm %s6129_s10, 4096  ;;  %s5136_s0 = scalar_lea.hbm %s6389_s29, 8192 }
 0x6de   : > { %p5133_p11 = scmp.ne.s32.totalorder %s6129_s10, %s5132_s7  ;;  %p5137_p2 = scmp.lt.s32.totalorder %s6129_s10, %s6389_s29 }
 0x6df   : > { %p5138_p9 = scmp.lt.s32.totalorder %s5136_s0, %s5132_s7 }
 0x6e0   : > { %p5134_p13 = pnand %p5133_p11, %p6387_p5 }
 0x6e1   : > { %p5139_p12 = por %p5138_p9, %p5137_p2 }
 0x6e2   : > { %p5135_p0 = pneg %p5134_p13 }
 0x6e4   : > { %p5140_p1 = pnand %p5139_p12, %p5135_p0 }
 0x6e6   : > { %5143 = shalt.err (!%p5140_p1)
}
 0x6e7   : > { %4691 = dma.vmem_to_hbm [thread:$0]  (%p6387_p5), %s3299_s8, 4096, %s6129_s10, %s6098_s12, %s5246_s3, %s5246_s3, %s5247_s30  }
 0x6e8   : > { %s6390_s15 = sld [smem:[#allocation49_spill]]  ;;  %s6179_s17 = scalar_lea.vmem [#allocation17], %s5583_s26 }
 0x6e9   : > { %s3234_s12 = sshll.u32 %s6179_s17, 4  ;;  %s6391_s8 = sld [smem:[#allocation50_spill]]  ;;  %s6250_s12 = int_to_ptr.vmem [resolvable:$true] %s3234_s12 }
 0x6ea   : > { %s3201_s13 = scalar_lea.sflag [#allocation4], %s5580_s5  ;;  %s5144_s7 = scalar_lea.vmem %s6250_s12, 4096 }
 0x6eb   : > { %p5145_p3 = scmp.ne.s32.totalorder %s6250_s12, %s5144_s7  ;;  %s5251_s22 = smov [#allocation17]  }
 0x6ec   : > { %s5148_s9 = sshll.u32 %s5251_s22, 4  ;;  %s5149_s9 = int_to_ptr.vmem [resolvable:$false] %s5148_s9 }
 0x6ed   : > { %p5146_p4 = pnand %p5145_p3, %p6387_p5  ;;  %s5150_s0 = scalar_lea.vmem %s5149_s9, 8192 }
 0x6ee   : > { %v6175_v10 = vld [vmem:[%s6390_s15] ss:$0 sm:$0xff]  ;;  %p5151_p8 = scmp.lt.s32.totalorder %s6250_s12, %s5149_s9  ;;  %p5152_p10 = scmp.lt.s32.totalorder %s5150_s0, %s5144_s7 }
 0x6ef   : > { %s6248_s28 = scalar_lea.hbm %s6391_s8, %s6042_s11  ;;  %p5147_p6 = pneg %p5146_p4 }
 0x6f0   : > { %p5153_p7 = por %p5152_p10, %p5151_p8 }
 0x6f2   : > { %p5154_p11 = pnand %p5153_p7, %p5147_p6 }
 0x719   : > { %v4607_v36 = vpop.f32.mrf.mxu1 }
 0x71a   : > { %v2887_v43 = vadd.f32 %v4607_v36, %v6175_v10 }
 0x71b   : > { %v2881_v44 = vpop.f32.mrf.mxu1 }
 0x71c   : > { %3169 = vst [vmem:[%s6179_s17 + $0x8] sm:$0xff] %v2887_v43  ;;  %v2882_v45 = vadd.f32 %v6175_v10, %v2881_v44 }
 0x71d   : > { %v4610_v46 = vpop.f32.mrf.mxu1 }
 0x71e   : > { %3168 = vst [vmem:[%s6179_s17] sm:$0xff] %v2882_v45  ;;  %v2897_v47 = vadd.f32 %v4610_v46, %v6175_v10 }
 0x71f   : > { %v2891_v48 = vpop.f32.mrf.mxu1 }
 0x720   : > { %3171 = vst [vmem:[%s6179_s17 + $0x18] sm:$0xff] %v2897_v47  ;;  %v2892_v49 = vadd.f32 %v6175_v10, %v2891_v48 }
 0x721   : > { %v4613_v51 = vpop.f32.mrf.mxu1 }
 0x722   : > { %3170 = vst [vmem:[%s6179_s17 + $0x10] sm:$0xff] %v2892_v49  ;;  %v2907_v52 = vadd.f32 %v4613_v51, %v6175_v10 }
 0x723   : > { %v2901_v15 = vpop.f32.mrf.mxu1 }
 0x724   : > { %3173 = vst [vmem:[%s6179_s17 + $0x28] sm:$0xff] %v2907_v52  ;;  %v2902_v54 = vadd.f32 %v6175_v10, %v2901_v15 }
 0x725   : > { %v4616_v55 = vpop.f32.mrf.mxu1 }
 0x726   : > { %3172 = vst [vmem:[%s6179_s17 + $0x20] sm:$0xff] %v2902_v54  ;;  %v2917_v56 = vadd.f32 %v4616_v55, %v6175_v10 }
 0x727   : > { %v2911_v57 = vpop.f32.mrf.mxu1 }
 0x728   : > { %3175 = vst [vmem:[%s6179_s17 + $0x38] sm:$0xff] %v2917_v56  ;;  %v2912_v58 = vadd.f32 %v6175_v10, %v2911_v57 }
 0x729   : > { %v4619_v59 = vpop.f32.mrf.mxu1 }
 0x72a   : > { %3174 = vst [vmem:[%s6179_s17 + $0x30] sm:$0xff] %v2912_v58  ;;  %v2927_v60 = vadd.f32 %v4619_v59, %v6175_v10 }
 0x72b   : > { %v2921_v61 = vpop.f32.mrf.mxu1 }
 0x72c   : > { %3177 = vst [vmem:[%s6179_s17 + $0x48] sm:$0xff] %v2927_v60  ;;  %v2922_v62 = vadd.f32 %v6175_v10, %v2921_v61 }
 0x72d   : > { %v4622_v63 = vpop.f32.mrf.mxu1 }
 0x72e   : > { %3176 = vst [vmem:[%s6179_s17 + $0x40] sm:$0xff] %v2922_v62  ;;  %v2937_v1 = vadd.f32 %v4622_v63, %v6175_v10 }
 0x72f   : > { %v2931_v2 = vpop.f32.mrf.mxu1 }
 0x730   : > { %3179 = vst [vmem:[%s6179_s17 + $0x58] sm:$0xff] %v2937_v1  ;;  %v2932_v3 = vadd.f32 %v6175_v10, %v2931_v2 }
 0x731   : > { %v4625_v4 = vpop.f32.mrf.mxu1 }
 0x732   : > { %3178 = vst [vmem:[%s6179_s17 + $0x50] sm:$0xff] %v2932_v3  ;;  %v2947_v5 = vadd.f32 %v4625_v4, %v6175_v10 }
 0x733   : > { %v2941_v6 = vpop.f32.mrf.mxu1 }
 0x734   : > { %3181 = vst [vmem:[%s6179_s17 + $0x68] sm:$0xff] %v2947_v5  ;;  %v2942_v7 = vadd.f32 %v6175_v10, %v2941_v6 }
 0x735   : > { %v4628_v8 = vpop.f32.mrf.mxu1 }
 0x736   : > { %3180 = vst [vmem:[%s6179_s17 + $0x60] sm:$0xff] %v2942_v7  ;;  %v2957_v9 = vadd.f32 %v4628_v8, %v6175_v10 }
 0x737   : > { %v2951_v11 = vpop.f32.mrf.mxu1 }
 0x738   : > { %3183 = vst [vmem:[%s6179_s17 + $0x78] sm:$0xff] %v2957_v9  ;;  %v2952_v12 = vadd.f32 %v6175_v10, %v2951_v11 }
 0x739   : > { %v4631_v13 = vpop.f32.mrf.mxu1 }
 0x73a   : > { %3182 = vst [vmem:[%s6179_s17 + $0x70] sm:$0xff] %v2952_v12  ;;  %v2967_v39 = vadd.f32 %v4631_v13, %v6175_v10 }
 0x73b   : > { %v2961_v14 = vpop.f32.mrf.mxu1 }
 0x73c   : > { %3185 = vst [vmem:[%s6179_s17 + $0x88] sm:$0xff] %v2967_v39  ;;  %v2962_v16 = vadd.f32 %v6175_v10, %v2961_v14 }
 0x73d   : > { %v4634_v17 = vpop.f32.mrf.mxu1 }
 0x73e   : > { %3184 = vst [vmem:[%s6179_s17 + $0x80] sm:$0xff] %v2962_v16  ;;  %v2977_v18 = vadd.f32 %v4634_v17, %v6175_v10 }
 0x73f   : > { %v2971_v19 = vpop.f32.mrf.mxu1 }
 0x740   : > { %3187 = vst [vmem:[%s6179_s17 + $0x98] sm:$0xff] %v2977_v18  ;;  %v2972_v20 = vadd.f32 %v6175_v10, %v2971_v19 }
 0x741   : > { %v4637_v21 = vpop.f32.mrf.mxu1 }
 0x742   : > { %3186 = vst [vmem:[%s6179_s17 + $0x90] sm:$0xff] %v2972_v20  ;;  %v2987_v22 = vadd.f32 %v4637_v21, %v6175_v10 }
 0x743   : > { %v2981_v23 = vpop.f32.mrf.mxu1 }
 0x744   : > { %3189 = vst [vmem:[%s6179_s17 + $0xa8] sm:$0xff] %v2987_v22  ;;  %v2982_v24 = vadd.f32 %v6175_v10, %v2981_v23 }
 0x745   : > { %v4640_v25 = vpop.f32.mrf.mxu1 }
 0x746   : > { %3188 = vst [vmem:[%s6179_s17 + $0xa0] sm:$0xff] %v2982_v24  ;;  %v2997_v50 = vadd.f32 %v4640_v25, %v6175_v10 }
 0x747   : > { %v2991_v26 = vpop.f32.mrf.mxu1 }
 0x748   : > { %3191 = vst [vmem:[%s6179_s17 + $0xb8] sm:$0xff] %v2997_v50  ;;  %v2992_v27 = vadd.f32 %v6175_v10, %v2991_v26 }
 0x749   : > { %v4643_v53 = vpop.f32.mrf.mxu1 }
 0x74a   : > { %3190 = vst [vmem:[%s6179_s17 + $0xb0] sm:$0xff] %v2992_v27  ;;  %v3007_v28 = vadd.f32 %v4643_v53, %v6175_v10 }
 0x74b   : > { %v3001_v29 = vpop.f32.mrf.mxu1 }
 0x74c   : > { %3193 = vst [vmem:[%s6179_s17 + $0xc8] sm:$0xff] %v3007_v28  ;;  %v3002_v30 = vadd.f32 %v6175_v10, %v3001_v29 }
 0x74d   : > { %v4646_v31 = vpop.f32.mrf.mxu1 }
 0x74e   : > { %3192 = vst [vmem:[%s6179_s17 + $0xc0] sm:$0xff] %v3002_v30  ;;  %v3017_v32 = vadd.f32 %v4646_v31, %v6175_v10 }
 0x74f   : > { %v3011_v33 = vpop.f32.mrf.mxu1 }
 0x750   : > { %3195 = vst [vmem:[%s6179_s17 + $0xd8] sm:$0xff] %v3017_v32  ;;  %v3012_v34 = vadd.f32 %v6175_v10, %v3011_v33 }
 0x751   : > { %v4649_v35 = vpop.f32.mrf.mxu1 }
 0x752   : > { %3194 = vst [vmem:[%s6179_s17 + $0xd0] sm:$0xff] %v3012_v34  ;;  %v3027_v37 = vadd.f32 %v4649_v35, %v6175_v10 }
 0x753   : > { %v3021_v38 = vpop.f32.mrf.mxu1 }
 0x754   : > { %3197 = vst [vmem:[%s6179_s17 + $0xe8] sm:$0xff] %v3027_v37  ;;  %v3022_v0 = vadd.f32 %v6175_v10, %v3021_v38 }
 0x755   : > { %v4652_v40 = vpop.f32.mrf.mxu1 }
 0x756   : > { %3196 = vst [vmem:[%s6179_s17 + $0xe0] sm:$0xff] %v3022_v0  ;;  %v3037_v41 = vadd.f32 %v4652_v40, %v6175_v10 }
 0x757   : > { %v3031_v42 = vpop.f32.mrf.mxu1 }
 0x758   : > { %3199 = vst [vmem:[%s6179_s17 + $0xf8] sm:$0xff] %v3037_v41  ;;  %v3032_v36 = vadd.f32 %v6175_v10, %v3031_v42 }
 0x75a   : > { %3198 = vst [vmem:[%s6179_s17 + $0xf0] sm:$0xff] %v3032_v36 }
 0x75b   : > { %5157 = shalt.err (!%p5154_p11)
}
 0x75c   : > { %s5158_s11 = scalar_lea.hbm %s6248_s28, 4096  ;;  %s5162_s16 = scalar_lea.hbm %s6391_s8, 8192 }
 0x75d   : > { %p5159_p13 = scmp.ne.s32.totalorder %s6248_s28, %s5158_s11  ;;  %p5163_p9 = scmp.lt.s32.totalorder %s6248_s28, %s6391_s8 }
 0x75e   : > { %p5164_p12 = scmp.lt.s32.totalorder %s5162_s16, %s5158_s11 }
 0x75f   : > { %p5160_p0 = pnand %p5159_p13, %p6387_p5 }
 0x760   : > { %p5165_p1 = por %p5164_p12, %p5163_p9 }
 0x761   : > { %p5161_p2 = pneg %p5160_p0 }
 0x763   : > { %p5166_p3 = pnand %p5165_p1, %p5161_p2 }
 0x765   : > { %5169 = shalt.err (!%p5166_p3)
}
 0x766   : > { %4687 = dma.vmem_to_hbm [thread:$0]  (%p6387_p5), %s6250_s12, 4096, %s6248_s28, %s3201_s13, %s5246_s3, %s5246_s3, %s5247_s30  }
 0x767 PF: > { %s3313_s15 = sand.u32 1, %s5220_s2   ;;  %p6392_p4 = scmp.ne.s32.totalorder %s6366_s23, 0 }
 0x768   : > { %p6393_p6 = scmp.ge.s32.totalorder %s5232_s27, 2  ;;  %s3314_s17 = scalar_lea.sflag [#allocation4], %s3313_s15 }
 0x76a   : > { %p4727_p8 = pnand %p6393_p6, %p6392_p4 }
 0x76c   : > { %p4728_p10 = pneg %p4727_p8 }
 0x76e   : > { %5207 = dma.done.wait (%p4728_p10), %s3314_s17, 4096  }
 0x76f   : > { %5209 = vsyncadd (%p4728_p10), %s3314_s17, 4294963200  ;;  %s6394_s24 = sadd.s32 4294967294, %s5232_s27  }
 0x770   : > { %s3322_s26 = sand.u32 1, %s6394_s24  }
 0x771   : > { %s3323_s10 = scalar_lea.sflag [#allocation19], %s3322_s26 }
 0x772   : > { %5211 = dma.done.wait (%p4728_p10), %s3323_s10, 8192  }
 0x773   : > { %5213 = vsyncadd (%p4728_p10), %s3323_s10, 4294959104  ;;  %s3341_s7 = scalar_lea.sflag [#allocation22], %s3322_s26 }
 0x774   : > { %5215 = dma.done.wait (%p4728_p10), %s3341_s7, 8192  }
 0x775   : > { %5217 = vsyncadd (%p4728_p10), %s3341_s7, 4294959104  ;;  %s6395_s3 = sld [smem:[#allocation32_spill]]  ;;  %p45_p5 = scmp.ge.s32.totalorder %s5503_s1, 4  }
 0x776   : > { %s6396_s26 = sld [smem:[#allocation33_spill]]  ;;  %s6397_s2 = smov %s5224_s25 }
 0x777   : > { %s6399_s27 = smov %s5503_s1  ;;  %47 = sbr.rel (!%p45_p5) target bundleno = 32 (0x20), region = 229 }
 0x77b   : > { %s6398_s25 = smov %s6395_s3 }
 0x77c   :  { %3355 = vsyncpa [#allocation3], 1 }
 0x77d   :  { %3357 = vsyncpa [#allocation3 + $0x1], 1 }
 0x77e   :  { %3358 = vsyncpa [#allocation6], 1 }
 0x77f   :  { %3359 = vsyncpa [#allocation9], 1 }
 0x780   :  { %3360 = vsyncpa [#allocation12], 1 }
 0x781   :  { %3361 = vsyncpa [#allocation15], 1 }
 0x782   :  { %3362 = vsyncpa [#allocation4], 1 }
 0x783   :  { %3364 = vsyncpa [#allocation4 + $0x1], 1 }
 0x784   :  { %3365 = vsyncpa [#allocation19], 1 }
 0x785   :  { %3367 = vsyncpa [#allocation19 + $0x1], 1 }
 0x786   :  { %3368 = vsyncpa [#allocation22], 1 }
 0x787   :  { %3370 = vsyncpa [#allocation22 + $0x1], 1 }

</bundles_post_ra>
